<compile_context>
chip_gen: v6e
topology: v6e:2x2x1
jax: 0.10.0
libtpu: 0.0.40
codegen_flags: <defaults>
</compile_context>

<pallas_src>
import jax
import jax.numpy as jnp
from jax import lax
from jax.experimental import pallas as pl
from jax.experimental.pallas import tpu as pltpu

X_DIMS = (0, 1, 2)
SPA_DIMS = (3, 4)
Y_DIMS = (5,)
D_MODEL = 32
DH = D_MODEL // 2          # 16 : per-branch embedding width (d_model // 2)
N_HEADS = 4
HEAD_DIM = DH // N_HEADS   # 4  : RotaryEmbedding2D(d = d_model // 8)
N_GROUPS = 2 * N_HEADS     # 8  : (branch, head) groups when both branches are fused
FPAD = 8                   # raw feature dim padded 6 -> 8 (lanes 6, 7 carry geo, mask)
ATTN_BIAS_FACTOR = 1.0     # TODO(synk): learnable scalar in the original model; fixed here.


def _tanhshrink(x):
    return x - jnp.tanh(x)


def geoaggregator_kernel(ctx_ref, tgt_ref, w_tok_ref, b_tok_ref, sel_ref,
                         w_reg_ref, b_reg_ref, out_ref):
    n_ctx_rows = ctx_ref.shape[0]
    tb = tgt_ref.shape[0]
    ctxp = n_ctx_rows // tb

    ctx = ctx_ref[...]                       # [tb*ctxp, 8]  feats | geo | mask
    tgt = tgt_ref[...]                       # [tb, 8]       target x + spa (+ unused y)
    w_tok = w_tok_ref[...]                   # [40, 32]
    b_tok = b_tok_ref[...]                   # [8, 32]
    sel = sel_ref[...]                       # [40, 32]
    w_reg = w_reg_ref[...]                   # [88, 32]
    b_reg = b_reg_ref[...]                   # [8, 32]

    w1 = w_tok[0:FPAD, :]                    # [8, 32]  fused first tokenizer layer
    w2 = w_tok[FPAD:FPAD + D_MODEL, :]       # [32, 32] block-diagonal second layer
    b1 = b_tok[0:1, :]
    b2 = b_tok[1:2, :]
    ly = b_tok[2:3, :]
    head_sel = sel[0:N_GROUPS, :]                                # [8, 32]
    head_sel_t = sel[N_GROUPS:N_GROUPS + D_MODEL, 0:N_GROUPS]    # [32, 8]

    # ---------------- FCNTokenizer (x & y branch fused block-diagonally) ----
    def tokenize(feats):
        h = _tanhshrink(jnp.dot(feats, w1, preferred_element_type=jnp.float32) + b1)
        return jnp.dot(h, w2, preferred_element_type=jnp.float32) + b2

    k_embed = tokenize(ctx)                  # [tb*ctxp, 32]  (x-half | y-half)
    q_embed = tokenize(tgt)                  # [tb, 32]

    # learnable_y replaces the y-branch half of the query embedding
    col = lax.broadcasted_iota(jnp.int32, (1, D_MODEL), 1)
    q_embed = jnp.where(col >= DH, ly, q_embed)

    # ---------------- RotaryEmbedding2D (d=4, inv_freq=[1.0]) ---------------
    sel_x = (col % HEAD_DIM) < 2             # dims 0,1 of each head: x-angle; 2,3: y-angle
    even = (col % 2) == 0

    def rotate(v, feats):
        # v: [n, 32]; feats lanes 3,4 hold the spatial coordinates (= angles).
        ang = jnp.where(sel_x, feats[:, 3:4], feats[:, 4:5])     # [n, 32]
        cos_v = jnp.cos(ang)
        sin_v = jnp.sin(ang)
        v_next = pltpu.roll(v, shift=D_MODEL - 1, axis=1)        # v[..., j+1] (wrap masked)
        v_prev = pltpu.roll(v, shift=1, axis=1)                  # v[..., j-1] (wrap masked)
        partner = jnp.where(even, -v_next, v_prev)
        return cos_v * v + sin_v * partner

    k_rot = rotate(k_embed, ctx)             # [tb*ctxp, 32]
    q_rot = rotate(q_embed, tgt)             # [tb, 32]

    # ---------------- masked, geo-biased rotary cross attention -------------
    # TODO(synk): CartesianPerceiver source not provided; implemented as one rotary
    # multi-head cross-attention per branch, both branches fused over 8 groups.
    k_rot3 = k_rot.reshape(tb, ctxp, D_MODEL)
    qk = (q_rot[:, None, :] * k_rot3).reshape(tb * ctxp, D_MODEL)       # [tb*ctxp, 32]
    scores = jnp.dot(qk, head_sel_t, preferred_element_type=jnp.float32)
    scores = scores * (1.0 / (HEAD_DIM ** 0.5))                          # [tb*ctxp, 8]
    scores = scores - ATTN_BIAS_FACTOR * ctx[:, 6:7]                     # geo-proximity bias
    scores = jnp.where(ctx[:, 7:8] > 0.5, -1e30, scores)                 # NaN / pad mask

    # softmax over the context axis (sublane-within-tile reduction)
    s3 = scores.reshape(tb, ctxp, N_GROUPS)
    m = jnp.max(s3, axis=1, keepdims=True)                               # [tb, 1, 8]
    e = jnp.exp(s3 - m)
    den = jnp.sum(e, axis=1, keepdims=True)
    attn = (e / den).reshape(tb * ctxp, N_GROUPS)                        # exact divide

    # values: expand attention to the 32 embedding lanes, weight un-rotated embeds
    attn_exp = jnp.dot(attn, head_sel, preferred_element_type=jnp.float32)   # [tb*ctxp, 32]
    weighted = attn_exp * k_embed
    agg = jnp.sum(weighted.reshape(tb, ctxp, D_MODEL), axis=1)               # [tb, 32]

    # ---------------- FCNRegressor on [x_out | y_out] + target x/spa --------
    # (lane-axis concat replaced by two accumulated matmuls)
    wr0a = w_reg[0:32, :]
    wr0b = w_reg[32:40, :]                   # rows 5..7 zero -> target y / pads ignored
    wr1 = w_reg[40:72, 0:16]
    wr2 = w_reg[72:88, 0:8]
    br0 = b_reg[0:1, :]
    br1 = b_reg[1:2, 0:16]
    br2 = b_reg[2:3, 0:8]
    h0 = _tanhshrink(jnp.dot(agg, wr0a, preferred_element_type=jnp.float32)
                     + jnp.dot(tgt, wr0b, preferred_element_type=jnp.float32)
                     + br0)
    h1 = _tanhshrink(jnp.dot(h0, wr1, preferred_element_type=jnp.float32) + br1)
    out_ref[...] = jnp.dot(h1, wr2, preferred_element_type=jnp.float32) + br2   # [tb, 8]


def init_params(key):
    ks = jax.random.split(key, 8)

    def lin(k, fan_in, fan_out):
        kw, kb = jax.random.split(k)
        bound = 1.0 / (fan_in ** 0.5)
        w = jax.random.uniform(kw, (fan_in, fan_out), jnp.float32, -bound, bound)
        b = jax.random.uniform(kb, (1, fan_out), jnp.float32, -bound, bound)
        return w, b

    p = {}
    p['wx1'], p['bx1'] = lin(ks[0], len(X_DIMS), DH)
    p['wx2'], p['bx2'] = lin(ks[1], DH, DH)
    p['wy1'], p['by1'] = lin(ks[2], len(Y_DIMS), DH)
    p['wy2'], p['by2'] = lin(ks[3], DH, DH)
    p['ly'] = jax.random.normal(ks[4], (1, DH), jnp.float32)
    # dc_lin_dims = [32, 16, 1] with d_model + len(x+spa) = 37 prepended -> [37, 32, 16, 1]
    p['wr0'], p['br0'] = lin(ks[5], D_MODEL + len(X_DIMS) + len(SPA_DIMS), 32)
    p['wr1'], p['br1'] = lin(ks[6], 32, 16)
    p['wr2'], p['br2'] = lin(ks[7], 16, 1)
    return p


def pack_params(p):
    f32 = jnp.float32
    # Fused first tokenizer layer over the padded 8 feature lanes:
    #   rows 0..2 (x feats) -> cols 0..15 (x branch); row 5 (y feat) -> cols 16..31.
    #   rows 3,4 (spa) and 6,7 (geo, mask lanes) stay zero.
    w1 = jnp.zeros((FPAD, D_MODEL), f32)
    w1 = w1.at[0:3, 0:DH].set(p['wx1'])
    w1 = w1.at[5:6, DH:D_MODEL].set(p['wy1'])
    w2 = jnp.zeros((D_MODEL, D_MODEL), f32)
    w2 = w2.at[0:DH, 0:DH].set(p['wx2'])
    w2 = w2.at[DH:D_MODEL, DH:D_MODEL].set(p['wy2'])
    w_tok = jnp.concatenate([w1, w2], axis=0)                        # [40, 32]
    b1 = jnp.concatenate([p['bx1'], p['by1']], axis=1)
    b2 = jnp.concatenate([p['bx2'], p['by2']], axis=1)
    ly_pad = jnp.zeros((1, D_MODEL), f32).at[:, DH:D_MODEL].set(p['ly'])
    b_tok = (jnp.zeros((8, D_MODEL), f32)
             .at[0:1].set(b1).at[1:2].set(b2).at[2:3].set(ly_pad))   # [8, 32]
    # (branch, head) group selector and its transpose (both kernel-resident).
    head_sel = (jnp.arange(D_MODEL)[None, :] // HEAD_DIM
                == jnp.arange(N_GROUPS)[:, None]).astype(f32)        # [8, 32]
    sel = jnp.zeros((N_GROUPS + D_MODEL, D_MODEL), f32)
    sel = sel.at[0:N_GROUPS, :].set(head_sel)
    sel = sel.at[N_GROUPS:, 0:N_GROUPS].set(head_sel.T)              # [40, 32]
    # Regressor slab; final layer only tiled to 8 columns (small writeback).
    w_reg = jnp.zeros((88, D_MODEL), f32)
    w_reg = w_reg.at[0:32, :].set(p['wr0'][0:32, :])
    w_reg = w_reg.at[32:37, :].set(p['wr0'][32:37, :])
    w_reg = w_reg.at[40:72, 0:16].set(p['wr1'])
    w_reg = w_reg.at[72:88, 0:8].set(jnp.tile(p['wr2'], (1, 8)))
    b_reg = jnp.zeros((8, D_MODEL), f32)
    b_reg = b_reg.at[0:1, :].set(p['br0'])
    b_reg = b_reg.at[1:2, 0:16].set(p['br1'])
    b_reg = b_reg.at[2:3, 0:8].set(jnp.tile(p['br2'], (1, 8)))
    return w_tok, b_tok, sel, w_reg, b_reg


def _round_up(x, m):
    return ((x + m - 1) // m) * m


def geoaggregator_forward(input_tensor, geo_proximity, params, tile_b=512):
    bs, sl, fd = input_tensor.shape
    assert fd == len(X_DIMS) + len(SPA_DIMS) + len(Y_DIMS)
    ctx = sl - 1
    ctxp = _round_up(ctx, 8)                 # pad context length -> tile-aligned reshapes
    f32 = jnp.float32
    inp = input_tensor.astype(f32)

    # mask: 1.0 where the raw context input (feature column 0) was NaN (matches reference)
    mask = jnp.where(jnp.isnan(inp[:, :ctx, 0]), 1.0, 0.0).astype(f32)        # [bs, ctx]

    # NanBatchNorm1dNaive on x+y feature columns.
    # TODO(synk): NanBatchNorm1dNaive source not provided; implemented as NaN-ignoring
    # per-feature mean/var normalization over (batch, seq), no affine, eps=1e-5.
    xy = jnp.concatenate([inp[:, :, 0:3], inp[:, :, 5:6]], axis=-1)
    valid = ~jnp.isnan(xy)
    cnt = jnp.maximum(jnp.sum(valid, axis=(0, 1), keepdims=True), 1)
    mean = jnp.sum(jnp.where(valid, xy, 0.0), axis=(0, 1), keepdims=True) / cnt
    var = jnp.sum(jnp.where(valid, (xy - mean) ** 2, 0.0), axis=(0, 1), keepdims=True) / cnt
    xy_norm = (xy - mean) / jnp.sqrt(var + 1e-5)
    inp = jnp.concatenate([xy_norm[:, :, 0:3], inp[:, :, 3:5], xy_norm[:, :, 3:4]], axis=-1)

    inp = jnp.nan_to_num(inp)
    geo = jnp.nan_to_num(geo_proximity.astype(f32))[:, :ctx]                  # [bs, ctx]

    # ---- batch tiling: tb samples per grid step (tb multiple of 8) ----------
    tile_b = max(8, _round_up(int(tile_b), 8))
    bs8 = _round_up(bs, 8)
    tb = min(tile_b, bs8)
    if bs8 >= 16:
        tb = min(tb, _round_up(bs8 // 2, 8))     # keep grid >= 2 -> both v7x TensorCores busy
    bs_pad = _round_up(bs, tb)
    pb = bs_pad - bs

    # ---- context slab [bs_pad*ctxp, 8]: feats(0..5) | geo(6) | mask(7) ------
    ctx_feat = jnp.concatenate([inp[:, :ctx, :], geo[:, :, None], mask[:, :, None]],
                               axis=-1)                                       # [bs, ctx, 8]
    ctx_feat = jnp.pad(ctx_feat, ((0, pb), (0, ctxp - ctx), (0, 0)))          # [bs_pad, ctxp, 8]
    pad_row = (jnp.arange(ctxp)[None, :] >= ctx) | (jnp.arange(bs_pad)[:, None] >= bs)
    ctx_feat = ctx_feat.at[:, :, 7].set(jnp.where(pad_row, 1.0, ctx_feat[:, :, 7]))
    ctx_flat = ctx_feat.reshape(bs_pad * ctxp, FPAD)

    # ---- target slab [bs_pad, 8]: target-row features (x, spa, y) -----------
    tgt_slab = jnp.pad(inp[:, ctx, :], ((0, pb), (0, FPAD - fd)))

    w_tok, b_tok, sel, w_reg, b_reg = pack_params(params)

    grid = bs_pad // tb
    out = pl.pallas_call(
        geoaggregator_kernel,
        out_shape=jax.ShapeDtypeStruct((bs_pad, 8), f32),
        grid=(grid,),
        in_specs=[
            pl.BlockSpec((tb * ctxp, FPAD), lambda b: (b, 0)),
            pl.BlockSpec((tb, FPAD), lambda b: (b, 0)),
            pl.BlockSpec((FPAD + D_MODEL, D_MODEL), lambda b: (0, 0)),
            pl.BlockSpec((8, D_MODEL), lambda b: (0, 0)),
            pl.BlockSpec((N_GROUPS + D_MODEL, D_MODEL), lambda b: (0, 0)),
            pl.BlockSpec((88, D_MODEL), lambda b: (0, 0)),
            pl.BlockSpec((8, D_MODEL), lambda b: (0, 0)),
        ],
        out_specs=pl.BlockSpec((tb, 8), lambda b: (b, 0)),
        compiler_params=pltpu.CompilerParams(
            dimension_semantics=("parallel",),
            vmem_limit_bytes=48 * 1024 * 1024),
    )(ctx_flat, tgt_slab, w_tok, b_tok, sel, w_reg, b_reg)

    # lane 0 carries the prediction; drop batch padding
    return out[:bs, 0:1].reshape(bs, 1, 1)


if __name__ == "__main__":
    key = jax.random.PRNGKey(0)
    k_inp, k_geo, k_par = jax.random.split(key, 3)
    bs, sl, fd = 2, 8, 6                        # fd = 3 x-feats + 2 spa coords + 1 y-feat
    inp = jax.random.normal(k_inp, (bs, sl, fd), jnp.float32)
    # inject NaNs: a couple of masked context points + unknown target y
    inp = inp.at[0, 2, :].set(jnp.nan)
    inp = inp.at[1, 5, :].set(jnp.nan)
    inp = inp.at[:, -1, 5].set(jnp.nan)
    geo = jnp.abs(jax.random.normal(k_geo, (bs, sl), jnp.float32))

    params = init_params(k_par)
    pred = geoaggregator_forward(inp, geo, params)
    pred = jax.block_until_ready(pred)
    assert pred.shape == (bs, 1, 1)
    assert bool(jnp.all(jnp.isfinite(pred)))
    print("KERNEL_OK")
</pallas_src>

<mosaic_0001>
module attributes {stable_mosaic.version = 11 : i64} {
  func.func @geoaggregator_kernel(%arg0: i32, %arg1: memref<64x8xf32, #tpu.memory_space<vmem>>, %arg2: memref<8x8xf32, #tpu.memory_space<vmem>>, %arg3: memref<40x32xf32, #tpu.memory_space<vmem>>, %arg4: memref<8x32xf32, #tpu.memory_space<vmem>>, %arg5: memref<40x32xf32, #tpu.memory_space<vmem>>, %arg6: memref<88x32xf32, #tpu.memory_space<vmem>>, %arg7: memref<8x32xf32, #tpu.memory_space<vmem>>, %arg8: memref<8x8xf32, #tpu.memory_space<vmem>>) attributes {dimension_semantics = [#tpu.dimension_semantics<parallel>], iteration_bounds = array<i64: 1>, scalar_prefetch = 0 : i64, scratch_operands = 0 : i64, tpu.core_type = #tpu.core_type<tc>, window_params = [{transform_indices = @transform_0, window_bounds = array<i64: 64, 8>}, {transform_indices = @transform_1, window_bounds = array<i64: 8, 8>}, {pipeline_mode = #tpu.pipeline_mode<synchronous>, transform_indices = @transform_2, window_bounds = array<i64: 40, 32>}, {pipeline_mode = #tpu.pipeline_mode<synchronous>, transform_indices = @transform_3, window_bounds = array<i64: 8, 32>}, {pipeline_mode = #tpu.pipeline_mode<synchronous>, transform_indices = @transform_4, window_bounds = array<i64: 40, 32>}, {pipeline_mode = #tpu.pipeline_mode<synchronous>, transform_indices = @transform_5, window_bounds = array<i64: 88, 32>}, {pipeline_mode = #tpu.pipeline_mode<synchronous>, transform_indices = @transform_6, window_bounds = array<i64: 8, 32>}, {transform_indices = @transform_7, window_bounds = array<i64: 8, 8>}]} {
    %c0 = arith.constant 0 : index
    %c0_0 = arith.constant 0 : index
    %0 = vector.load %arg1[%c0, %c0_0] : memref<64x8xf32, #tpu.memory_space<vmem>>, vector<64x8xf32>
    %c0_1 = arith.constant 0 : index
    %c0_2 = arith.constant 0 : index
    %1 = vector.load %arg2[%c0_1, %c0_2] : memref<8x8xf32, #tpu.memory_space<vmem>>, vector<8x8xf32>
    %c0_3 = arith.constant 0 : index
    %c0_4 = arith.constant 0 : index
    %2 = vector.load %arg3[%c0_3, %c0_4] : memref<40x32xf32, #tpu.memory_space<vmem>>, vector<40x32xf32>
    %c0_5 = arith.constant 0 : index
    %c0_6 = arith.constant 0 : index
    %3 = vector.load %arg4[%c0_5, %c0_6] : memref<8x32xf32, #tpu.memory_space<vmem>>, vector<8x32xf32>
    %c0_7 = arith.constant 0 : index
    %c0_8 = arith.constant 0 : index
    %4 = vector.load %arg5[%c0_7, %c0_8] : memref<40x32xf32, #tpu.memory_space<vmem>>, vector<40x32xf32>
    %c0_9 = arith.constant 0 : index
    %c0_10 = arith.constant 0 : index
    %5 = vector.load %arg6[%c0_9, %c0_10] : memref<88x32xf32, #tpu.memory_space<vmem>>, vector<88x32xf32>
    %c0_11 = arith.constant 0 : index
    %c0_12 = arith.constant 0 : index
    %6 = vector.load %arg7[%c0_11, %c0_12] : memref<8x32xf32, #tpu.memory_space<vmem>>, vector<8x32xf32>
    %7 = vector.extract_strided_slice %2 {offsets = [0, 0], sizes = [8, 32], strides = [1, 1]} : vector<40x32xf32> to vector<8x32xf32>
    %8 = vector.extract_strided_slice %2 {offsets = [8, 0], sizes = [32, 32], strides = [1, 1]} : vector<40x32xf32> to vector<32x32xf32>
    %9 = vector.extract_strided_slice %3 {offsets = [0, 0], sizes = [1, 32], strides = [1, 1]} : vector<8x32xf32> to vector<1x32xf32>
    %10 = vector.extract_strided_slice %3 {offsets = [1, 0], sizes = [1, 32], strides = [1, 1]} : vector<8x32xf32> to vector<1x32xf32>
    %11 = vector.extract_strided_slice %3 {offsets = [2, 0], sizes = [1, 32], strides = [1, 1]} : vector<8x32xf32> to vector<1x32xf32>
    %12 = vector.extract_strided_slice %4 {offsets = [0, 0], sizes = [8, 32], strides = [1, 1]} : vector<40x32xf32> to vector<8x32xf32>
    %13 = vector.extract_strided_slice %4 {offsets = [8, 0], sizes = [32, 8], strides = [1, 1]} : vector<40x32xf32> to vector<32x8xf32>
    %cst = arith.constant dense<0.000000e+00> : vector<64x32xf32>
    %14 = tpu.matmul %0, %7, %cst {dimension_numbers = #tpu.dot_dimension_numbers<[1], [0], [0], [1], [0, 0, 1, 1], [], []>} : vector<64x8xf32>, vector<8x32xf32>, vector<64x32xf32> -> vector<64x32xf32>
    %15 = vector.broadcast %9 : vector<1x32xf32> to vector<64x32xf32>
    %16 = arith.addf %14, %15 : vector<64x32xf32>
    %17 = math.tanh %16 : vector<64x32xf32>
    %18 = arith.subf %16, %17 : vector<64x32xf32>
    %cst_13 = arith.constant dense<0.000000e+00> : vector<64x32xf32>
    %19 = tpu.matmul %18, %8, %cst_13 {dimension_numbers = #tpu.dot_dimension_numbers<[1], [0], [0], [1], [0, 0, 1, 1], [], []>} : vector<64x32xf32>, vector<32x32xf32>, vector<64x32xf32> -> vector<64x32xf32>
    %20 = vector.broadcast %10 : vector<1x32xf32> to vector<64x32xf32>
    %21 = arith.addf %19, %20 : vector<64x32xf32>
    %cst_14 = arith.constant dense<0.000000e+00> : vector<8x32xf32>
    %22 = tpu.matmul %1, %7, %cst_14 {dimension_numbers = #tpu.dot_dimension_numbers<[1], [0], [0], [1], [0, 0, 1, 1], [], []>} : vector<8x8xf32>, vector<8x32xf32>, vector<8x32xf32> -> vector<8x32xf32>
    %23 = vector.broadcast %9 : vector<1x32xf32> to vector<8x32xf32>
    %24 = arith.addf %22, %23 : vector<8x32xf32>
    %25 = math.tanh %24 : vector<8x32xf32>
    %26 = arith.subf %24, %25 : vector<8x32xf32>
    %cst_15 = arith.constant dense<0.000000e+00> : vector<8x32xf32>
    %27 = tpu.matmul %26, %8, %cst_15 {dimension_numbers = #tpu.dot_dimension_numbers<[1], [0], [0], [1], [0, 0, 1, 1], [], []>} : vector<8x32xf32>, vector<32x32xf32>, vector<8x32xf32> -> vector<8x32xf32>
    %28 = vector.broadcast %10 : vector<1x32xf32> to vector<8x32xf32>
    %29 = arith.addf %27, %28 : vector<8x32xf32>
    %30 = tpu.iota {dimensions = array<i32: 1>} : vector<1x32xi32>
    %c16_i32 = arith.constant 16 : i32
    %31 = vector.broadcast %c16_i32 : i32 to vector<1x32xi32>
    %32 = arith.cmpi sge, %30, %31 : vector<1x32xi32>
    %33 = vector.shape_cast %32 : vector<1x32xi1> to vector<1x32xi1>
    %34 = vector.broadcast %33 : vector<1x32xi1> to vector<8x32xi1>
    %35 = vector.shape_cast %11 : vector<1x32xf32> to vector<1x32xf32>
    %36 = vector.broadcast %35 : vector<1x32xf32> to vector<8x32xf32>
    %37 = arith.select %34, %36, %29 : vector<8x32xi1>, vector<8x32xf32>
    %c4_i32 = arith.constant 4 : i32
    %c0_i32 = arith.constant 0 : i32
    %38 = arith.cmpi eq, %c4_i32, %c0_i32 : i32
    %c1_i32 = arith.constant 1 : i32
    %39 = arith.select %38, %c1_i32, %c4_i32 : i32
    %40 = vector.broadcast %39 : i32 to vector<1x32xi32>
    %41 = arith.remsi %30, %40 : vector<1x32xi32>
    %c0_i32_16 = arith.constant 0 : i32
    %42 = vector.broadcast %c0_i32_16 : i32 to vector<1x32xi32>
    %43 = arith.cmpi ne, %41, %42 : vector<1x32xi32>
    %c0_i32_17 = arith.constant 0 : i32
    %44 = vector.broadcast %c0_i32_17 : i32 to vector<1x32xi32>
    %45 = arith.cmpi slt, %41, %44 : vector<1x32xi32>
    %c0_i32_18 = arith.constant 0 : i32
    %46 = arith.cmpi slt, %39, %c0_i32_18 : i32
    %47 = vector.broadcast %46 : i1 to vector<1x32xi1>
    %48 = vector.broadcast %47 : vector<1x32xi1> to vector<1x32xi1>
    %49 = arith.xori %45, %48 : vector<1x32xi1>
    %50 = arith.andi %49, %43 : vector<1x32xi1>
    %51 = vector.broadcast %39 : i32 to vector<1x32xi32>
    %52 = arith.addi %41, %51 : vector<1x32xi32>
    %53 = arith.select %50, %52, %41 : vector<1x32xi1>, vector<1x32xi32>
    %c2_i32 = arith.constant 2 : i32
    %54 = vector.broadcast %c2_i32 : i32 to vector<1x32xi32>
    %55 = arith.cmpi slt, %53, %54 : vector<1x32xi32>
    %c2_i32_19 = arith.constant 2 : i32
    %c0_i32_20 = arith.constant 0 : i32
    %56 = arith.cmpi eq, %c2_i32_19, %c0_i32_20 : i32
    %c1_i32_21 = arith.constant 1 : i32
    %57 = arith.select %56, %c1_i32_21, %c2_i32_19 : i32
    %58 = vector.broadcast %57 : i32 to vector<1x32xi32>
    %59 = arith.remsi %30, %58 : vector<1x32xi32>
    %c0_i32_22 = arith.constant 0 : i32
    %60 = vector.broadcast %c0_i32_22 : i32 to vector<1x32xi32>
    %61 = arith.cmpi ne, %59, %60 : vector<1x32xi32>
    %c0_i32_23 = arith.constant 0 : i32
    %62 = vector.broadcast %c0_i32_23 : i32 to vector<1x32xi32>
    %63 = arith.cmpi slt, %59, %62 : vector<1x32xi32>
    %c0_i32_24 = arith.constant 0 : i32
    %64 = arith.cmpi slt, %57, %c0_i32_24 : i32
    %65 = vector.broadcast %64 : i1 to vector<1x32xi1>
    %66 = vector.broadcast %65 : vector<1x32xi1> to vector<1x32xi1>
    %67 = arith.xori %63, %66 : vector<1x32xi1>
    %68 = arith.andi %67, %61 : vector<1x32xi1>
    %69 = vector.broadcast %57 : i32 to vector<1x32xi32>
    %70 = arith.addi %59, %69 : vector<1x32xi32>
    %71 = arith.select %68, %70, %59 : vector<1x32xi1>, vector<1x32xi32>
    %c0_i32_25 = arith.constant 0 : i32
    %72 = vector.broadcast %c0_i32_25 : i32 to vector<1x32xi32>
    %73 = arith.cmpi eq, %71, %72 : vector<1x32xi32>
    %74 = vector.extract_strided_slice %0 {offsets = [0, 3], sizes = [64, 1], strides = [1, 1]} : vector<64x8xf32> to vector<64x1xf32>
    %75 = vector.extract_strided_slice %0 {offsets = [0, 4], sizes = [64, 1], strides = [1, 1]} : vector<64x8xf32> to vector<64x1xf32>
    %76 = vector.shape_cast %55 : vector<1x32xi1> to vector<1x32xi1>
    %77 = vector.broadcast %76 : vector<1x32xi1> to vector<64x32xi1>
    %78 = vector.shape_cast %74 : vector<64x1xf32> to vector<64x1xf32>
    %79 = vector.broadcast %78 : vector<64x1xf32> to vector<64x32xf32>
    %80 = vector.shape_cast %75 : vector<64x1xf32> to vector<64x1xf32>
    %81 = vector.broadcast %80 : vector<64x1xf32> to vector<64x32xf32>
    %82 = arith.select %77, %79, %81 : vector<64x32xi1>, vector<64x32xf32>
    %83 = math.cos %82 : vector<64x32xf32>
    %84 = math.sin %82 : vector<64x32xf32>
    %c31_i32 = arith.constant 31 : i32
    %85 = tpu.dynamic_rotate %21 by %c31_i32 dim 1 : vector<64x32xf32>, i32 -> vector<64x32xf32>
    %c1_i32_26 = arith.constant 1 : i32
    %86 = tpu.dynamic_rotate %21 by %c1_i32_26 dim 1 : vector<64x32xf32>, i32 -> vector<64x32xf32>
    %cst_27 = arith.constant 0.000000e+00 : f32
    %87 = vector.broadcast %cst_27 : f32 to vector<64x32xf32>
    %88 = arith.subf %87, %85 : vector<64x32xf32>
    %89 = vector.shape_cast %73 : vector<1x32xi1> to vector<1x32xi1>
    %90 = vector.broadcast %89 : vector<1x32xi1> to vector<64x32xi1>
    %91 = arith.select %90, %88, %86 : vector<64x32xi1>, vector<64x32xf32>
    %92 = arith.mulf %83, %21 : vector<64x32xf32>
    %93 = arith.mulf %84, %91 : vector<64x32xf32>
    %94 = arith.addf %92, %93 : vector<64x32xf32>
    %95 = vector.extract_strided_slice %1 {offsets = [0, 3], sizes = [8, 1], strides = [1, 1]} : vector<8x8xf32> to vector<8x1xf32>
    %96 = vector.extract_strided_slice %1 {offsets = [0, 4], sizes = [8, 1], strides = [1, 1]} : vector<8x8xf32> to vector<8x1xf32>
    %97 = vector.shape_cast %55 : vector<1x32xi1> to vector<1x32xi1>
    %98 = vector.broadcast %97 : vector<1x32xi1> to vector<8x32xi1>
    %99 = vector.shape_cast %95 : vector<8x1xf32> to vector<8x1xf32>
    %100 = vector.broadcast %99 : vector<8x1xf32> to vector<8x32xf32>
    %101 = vector.shape_cast %96 : vector<8x1xf32> to vector<8x1xf32>
    %102 = vector.broadcast %101 : vector<8x1xf32> to vector<8x32xf32>
    %103 = arith.select %98, %100, %102 : vector<8x32xi1>, vector<8x32xf32>
    %104 = math.cos %103 : vector<8x32xf32>
    %105 = math.sin %103 : vector<8x32xf32>
    %c31_i32_28 = arith.constant 31 : i32
    %106 = tpu.dynamic_rotate %37 by %c31_i32_28 dim 1 : vector<8x32xf32>, i32 -> vector<8x32xf32>
    %c1_i32_29 = arith.constant 1 : i32
    %107 = tpu.dynamic_rotate %37 by %c1_i32_29 dim 1 : vector<8x32xf32>, i32 -> vector<8x32xf32>
    %cst_30 = arith.constant 0.000000e+00 : f32
    %108 = vector.broadcast %cst_30 : f32 to vector<8x32xf32>
    %109 = arith.subf %108, %106 : vector<8x32xf32>
    %110 = vector.shape_cast %73 : vector<1x32xi1> to vector<1x32xi1>
    %111 = vector.broadcast %110 : vector<1x32xi1> to vector<8x32xi1>
    %112 = arith.select %111, %109, %107 : vector<8x32xi1>, vector<8x32xf32>
    %113 = arith.mulf %104, %37 : vector<8x32xf32>
    %114 = arith.mulf %105, %112 : vector<8x32xf32>
    %115 = arith.addf %113, %114 : vector<8x32xf32>
    %116 = vector.shape_cast %94 : vector<64x32xf32> to vector<8x8x32xf32>
    %117 = vector.shape_cast %115 : vector<8x32xf32> to vector<8x1x32xf32>
    %118 = vector.broadcast %117 : vector<8x1x32xf32> to vector<8x8x32xf32>
    %119 = arith.mulf %118, %116 : vector<8x8x32xf32>
    %120 = vector.shape_cast %119 : vector<8x8x32xf32> to vector<64x32xf32>
    %cst_31 = arith.constant dense<0.000000e+00> : vector<64x8xf32>
    %121 = tpu.matmul %120, %13, %cst_31 {dimension_numbers = #tpu.dot_dimension_numbers<[1], [0], [0], [1], [0, 0, 1, 1], [], []>} : vector<64x32xf32>, vector<32x8xf32>, vector<64x8xf32> -> vector<64x8xf32>
    %cst_32 = arith.constant 5.000000e-01 : f32
    %122 = vector.broadcast %cst_32 : f32 to vector<64x8xf32>
    %123 = arith.mulf %121, %122 : vector<64x8xf32>
    %124 = vector.extract_strided_slice %0 {offsets = [0, 6], sizes = [64, 1], strides = [1, 1]} : vector<64x8xf32> to vector<64x1xf32>
    %cst_33 = arith.constant 1.000000e+00 : f32
    %125 = vector.broadcast %cst_33 : f32 to vector<64x1xf32>
    %126 = arith.mulf %125, %124 : vector<64x1xf32>
    %127 = vector.broadcast %126 : vector<64x1xf32> to vector<64x8xf32>
    %128 = arith.subf %123, %127 : vector<64x8xf32>
    %129 = vector.extract_strided_slice %0 {offsets = [0, 7], sizes = [64, 1], strides = [1, 1]} : vector<64x8xf32> to vector<64x1xf32>
    %cst_34 = arith.constant 5.000000e-01 : f32
    %130 = vector.broadcast %cst_34 : f32 to vector<64x1xf32>
    %131 = arith.cmpf ogt, %129, %130 : vector<64x1xf32>
    %cst_35 = arith.constant -1.000000e+30 : f32
    %132 = vector.shape_cast %131 : vector<64x1xi1> to vector<64x1xi1>
    %133 = vector.broadcast %132 : vector<64x1xi1> to vector<64x8xi1>
    %134 = vector.broadcast %cst_35 : f32 to vector<64x8xf32>
    %135 = arith.select %133, %134, %128 : vector<64x8xi1>, vector<64x8xf32>
    %136 = vector.shape_cast %135 : vector<64x8xf32> to vector<8x8x8xf32>
    %cst_36 = arith.constant dense<0xFF800000> : vector<8x8xf32>
    %137 = vector.multi_reduction <maximumf>, %136, %cst_36 [1] : vector<8x8x8xf32> to vector<8x8xf32>
    %138 = vector.shape_cast %137 : vector<8x8xf32> to vector<8x1x8xf32>
    %139 = vector.broadcast %138 : vector<8x1x8xf32> to vector<8x8x8xf32>
    %140 = arith.subf %136, %139 : vector<8x8x8xf32>
    %141 = math.exp %140 : vector<8x8x8xf32>
    %cst_37 = arith.constant dense<0.000000e+00> : vector<8x8xf32>
    %142 = vector.multi_reduction <add>, %141, %cst_37 [1] : vector<8x8x8xf32> to vector<8x8xf32>
    %143 = vector.shape_cast %142 : vector<8x8xf32> to vector<8x1x8xf32>
    %144 = vector.broadcast %143 : vector<8x1x8xf32> to vector<8x8x8xf32>
    %145 = arith.divf %141, %144 : vector<8x8x8xf32>
    %146 = vector.shape_cast %145 : vector<8x8x8xf32> to vector<64x8xf32>
    %cst_38 = arith.constant dense<0.000000e+00> : vector<64x32xf32>
    %147 = tpu.matmul %146, %12, %cst_38 {dimension_numbers = #tpu.dot_dimension_numbers<[1], [0], [0], [1], [0, 0, 1, 1], [], []>} : vector<64x8xf32>, vector<8x32xf32>, vector<64x32xf32> -> vector<64x32xf32>
    %148 = arith.mulf %147, %21 : vector<64x32xf32>
    %149 = vector.shape_cast %148 : vector<64x32xf32> to vector<8x8x32xf32>
    %cst_39 = arith.constant dense<0.000000e+00> : vector<8x32xf32>
    %150 = vector.multi_reduction <add>, %149, %cst_39 [1] : vector<8x8x32xf32> to vector<8x32xf32>
    %151 = vector.extract_strided_slice %5 {offsets = [0, 0], sizes = [32, 32], strides = [1, 1]} : vector<88x32xf32> to vector<32x32xf32>
    %152 = vector.extract_strided_slice %5 {offsets = [32, 0], sizes = [8, 32], strides = [1, 1]} : vector<88x32xf32> to vector<8x32xf32>
    %153 = vector.extract_strided_slice %5 {offsets = [40, 0], sizes = [32, 16], strides = [1, 1]} : vector<88x32xf32> to vector<32x16xf32>
    %154 = vector.extract_strided_slice %5 {offsets = [72, 0], sizes = [16, 8], strides = [1, 1]} : vector<88x32xf32> to vector<16x8xf32>
    %155 = vector.extract_strided_slice %6 {offsets = [0, 0], sizes = [1, 32], strides = [1, 1]} : vector<8x32xf32> to vector<1x32xf32>
    %156 = vector.extract_strided_slice %6 {offsets = [1, 0], sizes = [1, 16], strides = [1, 1]} : vector<8x32xf32> to vector<1x16xf32>
    %157 = vector.extract_strided_slice %6 {offsets = [2, 0], sizes = [1, 8], strides = [1, 1]} : vector<8x32xf32> to vector<1x8xf32>
    %cst_40 = arith.constant dense<0.000000e+00> : vector<8x32xf32>
    %158 = tpu.matmul %150, %151, %cst_40 {dimension_numbers = #tpu.dot_dimension_numbers<[1], [0], [0], [1], [0, 0, 1, 1], [], []>} : vector<8x32xf32>, vector<32x32xf32>, vector<8x32xf32> -> vector<8x32xf32>
    %cst_41 = arith.constant dense<0.000000e+00> : vector<8x32xf32>
    %159 = tpu.matmul %1, %152, %cst_41 {dimension_numbers = #tpu.dot_dimension_numbers<[1], [0], [0], [1], [0, 0, 1, 1], [], []>} : vector<8x8xf32>, vector<8x32xf32>, vector<8x32xf32> -> vector<8x32xf32>
    %160 = arith.addf %158, %159 : vector<8x32xf32>
    %161 = vector.broadcast %155 : vector<1x32xf32> to vector<8x32xf32>
    %162 = arith.addf %160, %161 : vector<8x32xf32>
    %163 = math.tanh %162 : vector<8x32xf32>
    %164 = arith.subf %162, %163 : vector<8x32xf32>
    %cst_42 = arith.constant dense<0.000000e+00> : vector<8x16xf32>
    %165 = tpu.matmul %164, %153, %cst_42 {dimension_numbers = #tpu.dot_dimension_numbers<[1], [0], [0], [1], [0, 0, 1, 1], [], []>} : vector<8x32xf32>, vector<32x16xf32>, vector<8x16xf32> -> vector<8x16xf32>
    %166 = vector.broadcast %156 : vector<1x16xf32> to vector<8x16xf32>
    %167 = arith.addf %165, %166 : vector<8x16xf32>
    %168 = math.tanh %167 : vector<8x16xf32>
    %169 = arith.subf %167, %168 : vector<8x16xf32>
    %cst_43 = arith.constant dense<0.000000e+00> : vector<8x8xf32>
    %170 = tpu.matmul %169, %154, %cst_43 {dimension_numbers = #tpu.dot_dimension_numbers<[1], [0], [0], [1], [0, 0, 1, 1], [], []>} : vector<8x16xf32>, vector<16x8xf32>, vector<8x8xf32> -> vector<8x8xf32>
    %171 = vector.broadcast %157 : vector<1x8xf32> to vector<8x8xf32>
    %172 = arith.addf %170, %171 : vector<8x8xf32>
    %c0_44 = arith.constant 0 : index
    %c0_45 = arith.constant 0 : index
    %173 = vector.load %arg8[%c0_44, %c0_45] : memref<8x8xf32, #tpu.memory_space<vmem>>, vector<8x8xf32>
    tpu.vector_store %arg8[%c0_44, %c0_45], %172 {strides = array<i32>} : memref<8x8xf32, #tpu.memory_space<vmem>>, vector<8x8xf32>,
    return
  }
  func.func @transform_0(%arg0: i32) -> (i32, i32) {
    %c0_i32 = arith.constant 0 : i32
    %c0_i32_0 = arith.constant 0 : i32
    return %arg0, %c0_i32 : i32, i32
  }
  func.func @transform_1(%arg0: i32) -> (i32, i32) {
    %c0_i32 = arith.constant 0 : i32
    %c0_i32_0 = arith.constant 0 : i32
    return %arg0, %c0_i32 : i32, i32
  }
  func.func @transform_2(%arg0: i32) -> (i32, i32) {
    %c0_i32 = arith.constant 0 : i32
    %c0_i32_0 = arith.constant 0 : i32
    %c0_i32_1 = arith.constant 0 : i32
    return %c0_i32, %c0_i32_0 : i32, i32
  }
  func.func @transform_3(%arg0: i32) -> (i32, i32) {
    %c0_i32 = arith.constant 0 : i32
    %c0_i32_0 = arith.constant 0 : i32
    %c0_i32_1 = arith.constant 0 : i32
    return %c0_i32, %c0_i32_0 : i32, i32
  }
  func.func @transform_4(%arg0: i32) -> (i32, i32) {
    %c0_i32 = arith.constant 0 : i32
    %c0_i32_0 = arith.constant 0 : i32
    %c0_i32_1 = arith.constant 0 : i32
    return %c0_i32, %c0_i32_0 : i32, i32
  }
  func.func @transform_5(%arg0: i32) -> (i32, i32) {
    %c0_i32 = arith.constant 0 : i32
    %c0_i32_0 = arith.constant 0 : i32
    %c0_i32_1 = arith.constant 0 : i32
    return %c0_i32, %c0_i32_0 : i32, i32
  }
  func.func @transform_6(%arg0: i32) -> (i32, i32) {
    %c0_i32 = arith.constant 0 : i32
    %c0_i32_0 = arith.constant 0 : i32
    %c0_i32_1 = arith.constant 0 : i32
    return %c0_i32, %c0_i32_0 : i32, i32
  }
  func.func @transform_7(%arg0: i32) -> (i32, i32) {
    %c0_i32 = arith.constant 0 : i32
    %c0_i32_0 = arith.constant 0 : i32
    return %arg0, %c0_i32 : i32, i32
  }
}

</mosaic_0001>

<bundles_post_ra>
// kernel: tpu_custom_call.1
= control target key start
LH: loop header
LB: loop body
LE: loop exit
PB: predicated region body
PF: predicated region fallthrough
CT: control target
= control target key end

     0   :  { %vm6174_vm0 = vcmask 64512   ;;  %v6169_v4 = vmov 0.0   ;;  %s6157_s0 = inlined_call_operand.vmem [shape: f32[64,8], index: 0, kind: input, shape index: {}]   ;;  %s6158_s1 = inlined_call_operand.vmem [shape: f32[8,8], index: 1, kind: input, shape index: {}]   ;;  %s6159_s2 = inlined_call_operand.vmem [shape: f32[40,32], index: 2, kind: input, shape index: {}]   ;;  %s6160_s3 = inlined_call_operand.vmem [shape: f32[8,32], index: 3, kind: input, shape index: {}]   ;;  %s6161_s4 = inlined_call_operand.vmem [shape: f32[40,32], index: 4, kind: input, shape index: {}]   ;;  %s6162_s5 = inlined_call_operand.vmem [shape: f32[88,32], index: 5, kind: input, shape index: {}]   ;;  %s6163_s6 = inlined_call_operand.vmem [shape: f32[8,32], index: 6, kind: input, shape index: {}]   ;;  %s6164_s7 = inlined_call_operand.hbm [shape: f32[8,8], index: 7, kind: output, shape index: {}]  }
   0x1   :  { %v36_v0 = vld [vmem:[%s6159_s2] sm:$0xff]  ;;  %v4222_v2 = vld [vmem:[%s6157_s0 + $0x8] sm:$0xff]  ;;  %v4229_v3 = vld [vmem:[%s6157_s0 + $0x10] sm:$0xff] }
   0x2   :  { %v4217_v1 = vld [vmem:[%s6157_s0] sm:$0xff]  ;;  %3840 = vmatprep.subr.mxu0 %v36_v0 }
   0x3   :  { %3842 = vmatprep.mubr.msk.f32.mxu0 %vm6174_vm0, %v4217_v1  ;;  %3841 = vmatpush3.msra.mxu0 %v36_v0 }
   0x4   :  { %3843 = vmatmul.mubr.msk.f32.vlgmr.msra.gmra.mxu0 %vm6174_vm0, %v4222_v2  ;;  %3874 = vmatprep.subr.mxu0 %v6169_v4 }
   0x5   :  { %12 = vsyncpa [#allocation3], 0  ;;  %3845 = vmatprep.mubr.msk.f32.mxu0 %vm6174_vm0, %v4229_v3  ;;  %3875 = vmatpush3.msra.mxu0 %v36_v0  ;;  %v4239_v5 = vld [vmem:[%s6157_s0 + $0x18] sm:$0xff]  ;;  %v4244_v6 = vld [vmem:[%s6157_s0 + $0x20] sm:$0xff]  ;;  %vm4154_vm1 = vmmov 0   ;;  %v59_v15 = vlaneseq  ;;  %vm213_vm2 = vcmask 261120  }
   0x6   :  { %v4253_v7 = vld [vmem:[%s6157_s0 + $0x28] sm:$0xff]  ;;  %v4258_v8 = vld [vmem:[%s6157_s0 + $0x30] sm:$0xff]  ;;  %v4267_v9 = vld [vmem:[%s6157_s0 + $0x38] sm:$0xff]  ;;  %v4155_v57 = vmov 3   ;;  %v4156_v58 = vmov 4   ;;  %vm2257_vm4 = vcmask 1047808  }
   0x7   :  { %v4276_v10 = vld [vmem:[%s6158_s1] sm:$0xff]  ;;  %v39_v12 = vld [vmem:[%s6159_s2 + $0x18] sm:$0xff]  ;;  %v38_v13 = vld [vmem:[%s6159_s2 + $0x10] sm:$0xff]  ;;  %v4294_v16 = vshrl.u32 %v59_v15, 7  ;;  %4012 = vset.pattern.permute.xlu1 %v4155_v57  ;;  %4013 = vset.pattern.permute.xlu0 %v4156_v58  ;;  %s4165_s8 = smov 127  }
   0x8   :  { %3846 = vmatmul.mubr.msk.f32.gmra.mxu0 %vm6174_vm0, %v4239_v5  ;;  %v40_v11 = vld [vmem:[%s6159_s2 + $0x20] sm:$0xff]  ;;  %v37_v14 = vld [vmem:[%s6159_s2 + $0x8] sm:$0xff]  ;;  %s4157_s2 = smov 32  }
   0x9   :  { %3848 = vmatprep.mubr.msk.f32.mxu0 %vm6174_vm0, %v4244_v6  ;;  %3854 = vmatprep.subr.mxu1 %v40_v11  ;;  %6238 = vst [vmem:[#allocation5_spill] sm:$0xff] %v4294_v16  ;;  %v4297_v17 = vsub.s32 0, %v4294_v16  ;;  %v4302_v18 = vld [vmem:[%s6160_s3] sm:$0xff]  ;;  %v6166_v59 = vsub.s32 1, %v4294_v16  ;;  %s4164_s3 = smov 97  }
   0xa   :  { %3855 = vmatpush3.msra.mxu1 %v40_v11 }
   0xb   :  { %3856 = vmatprep.subr.mxu1 %v39_v12  ;;  %6239 = vst [vmem:[#allocation6_spill] sm:$0xff] %v4297_v17  ;;  %v62_v19 = vrot.slane %v4302_v18, %v4297_v17  ;;  %v212_v60 = vrot.slane %v4302_v18, %v6166_v59 }
   0xc   :  { %3849 = vmatmul.mubr.msk.f32.gmra.mxu0 %vm6174_vm0, %v4253_v7  ;;  %3857 = vmatpush3.msra.mxu1 %v39_v12 }
   0xd   :  { %3851 = vmatprep.mubr.msk.f32.mxu0 %vm6174_vm0, %v4258_v8  ;;  %3858 = vmatprep.subr.mxu1 %v38_v13 }
   0xe   :  { %3859 = vmatpush3.msra.mxu1 %v38_v13 }
   0xf   :  { %3860 = vmatprep.subr.mxu1 %v37_v14 }
  0x10   :  { %3852 = vmatmul.mubr.msk.f32.gmra.mxu0 %vm6174_vm0, %v4267_v9  ;;  %3861 = vmatpush3.msra.mxu1 %v37_v14 }
  0x11   :  { %3876 = vmatprep.mubr.msk.f32.mxu0 %vm4154_vm1, %v6169_v4  ;;  %3879 = vmatprep.subr.mxu1 %v6169_v4 }
  0x14   :  { %3877 = vmatmul.mubr.msk.f32.vlgmr.msra.gmra.mxu0 %vm6174_vm0, %v4276_v10 }
  0xc4   :  { %v3844_v20 = vpop.f32.mrf.mxu0 }
  0xc5   :  { %v160_v21 = vadd.f32 %v3844_v20, %v62_v19  ;;  %v6165_v20 = vsub.s32 2, %v4294_v16 }
  0xc6   :  { %v154_v22 = vpop.f32.mrf.mxu0 }
  0xc7   :  { %v155_v23 = vadd.f32 %v154_v22, %v62_v19  ;;  %4032 = vtanh.f32 %v160_v21  ;;  %v4336_v22 = vand.u32 127, %v59_v15 }
  0xc8   :  { %v3847_v24 = vpop.f32.mrf.mxu0 }
  0xc9   :  { %4034 = vtanh.f32 %v155_v23  ;;  %v170_v25 = vadd.f32 %v3847_v24, %v62_v19  ;;  %6241 = vst [vmem:[#allocation8_spill] sm:$0xff] %v4336_v22  ;;  %vm493_vm3 = vcmp.ge.s32.totalorder %v4336_v22, 16 }
  0xca   :  { %v164_v26 = vpop.f32.mrf.mxu0 }
  0xcb   :  { %v165_v27 = vadd.f32 %v164_v26, %v62_v19  ;;  %4036 = vtanh.f32 %v170_v25 }
  0xcc   :  { %v3850_v28 = vpop.f32.mrf.mxu0 }
  0xcd   :  { %4038 = vtanh.f32 %v165_v27  ;;  %v180_v29 = vadd.f32 %v3850_v28, %v62_v19 }
  0xce   :  { %v174_v30 = vpop.f32.mrf.mxu0 }
  0xcf   :  { %v175_v31 = vadd.f32 %v174_v30, %v62_v19  ;;  %4040 = vtanh.f32 %v180_v29 }
  0xd0   :  { %v3853_v32 = vpop.f32.mrf.mxu0 }
  0xd1   :  { %4042 = vtanh.f32 %v175_v31  ;;  %v190_v33 = vadd.f32 %v3853_v32, %v62_v19 }
  0xd2   :  { %v184_v34 = vpop.f32.mrf.mxu0 }
  0xd3   :  { %v185_v35 = vadd.f32 %v184_v34, %v62_v19  ;;  %4044 = vtanh.f32 %v190_v33 }
  0xd4   :  { %v412_v36 = vpop.f32.mrf.mxu0  ;;  %v4033_v37 = vpop.eup %4032 }
  0xd5   :  { %4046 = vtanh.f32 %v185_v35  ;;  %v413_v38 = vadd.f32 %v412_v36, %v62_v19  ;;  %v202_v42 = vsub.f32 %v160_v21, %v4033_v37  ;;  %v505_v37 = vand.u32 3, %v4336_v22 }
  0xd6   :  { %v4035_v39 = vpop.eup %4034  ;;  %v3878_v40 = vpop.f32.mrf.mxu0  ;;  %v6268_v22 = vmov 2102212464  }
  0xd7   :  { %v201_v41 = vsub.f32 %v155_v23, %v4035_v39  ;;  %4048 = vtanh.f32 %v413_v38  ;;  %vm4408_vm5 = vcmp.lt.s32.totalorder %v505_v37, 2  ;;  %v6179_v37 = vmov 2475754826  }
  0xd8   :  { %v4037_v43 = vpop.eup %4036 }
  0xd9   :  { %3862 = vmatprep.mubr.msk.f32.mxu1 %vm213_vm2, %v201_v41  ;;  %v204_v46 = vsub.f32 %v170_v25, %v4037_v43  ;;  %v499_v25 = vrot.slane %v4302_v18, %v6165_v20 }
  0xda   :  { %v4039_v44 = vpop.eup %4038  ;;  %3863 = vmatmul.mubr.msk.f32.vlgmr.msra.gmra.mxu1 %vm213_vm2, %v202_v42 }
  0xdb   :  { %v203_v45 = vsub.f32 %v165_v27, %v4039_v44  ;;  %3880 = vmatpush3.msra.mxu1 %v40_v11 }
  0xdc   :  { %3881 = vmatprep.subr.mxu1 %v6169_v4  ;;  %v4041_v47 = vpop.eup %4040 }
  0xdd   :  { %3865 = vmatprep.mubr.msk.f32.mxu1 %vm213_vm2, %v203_v45  ;;  %3882 = vmatpush3.msra.mxu1 %v39_v12  ;;  %v206_v50 = vsub.f32 %v180_v29, %v4041_v47 }
  0xde   :  { %v4043_v48 = vpop.eup %4042  ;;  %3866 = vmatmul.mubr.msk.f32.gmra.mxu1 %vm213_vm2, %v204_v46  ;;  %3883 = vmatprep.subr.mxu1 %v6169_v4 }
  0xdf   :  { %v205_v49 = vsub.f32 %v175_v31, %v4043_v48  ;;  %3884 = vmatpush3.msra.mxu1 %v38_v13 }
  0xe0   :  { %3885 = vmatprep.subr.mxu1 %v6169_v4  ;;  %v4045_v51 = vpop.eup %4044 }
  0xe1   :  { %3868 = vmatprep.mubr.msk.f32.mxu1 %vm213_vm2, %v205_v49  ;;  %3886 = vmatpush3.msra.mxu1 %v37_v14  ;;  %v208_v54 = vsub.f32 %v190_v33, %v4045_v51 }
  0xe2   :  { %v4047_v52 = vpop.eup %4046  ;;  %3869 = vmatmul.mubr.msk.f32.gmra.mxu1 %vm213_vm2, %v206_v50 }
  0xe3   :  { %v207_v53 = vsub.f32 %v185_v35, %v4047_v52 }
  0xe4   :  { %v4049_v55 = vpop.eup %4048 }
  0xe5   :  { %3871 = vmatprep.mubr.msk.f32.mxu1 %vm213_vm2, %v207_v53  ;;  %v417_v56 = vsub.f32 %v413_v38, %v4049_v55 }
  0xe6   :  { %3872 = vmatmul.mubr.msk.f32.gmra.mxu1 %vm213_vm2, %v208_v54 }
  0xe7   :  { %3887 = vmatprep.mubr.msk.f32.mxu1 %vm4154_vm1, %v6169_v4 }
  0xea   :  { %3888 = vmatmul.mubr.msk.f32.vlgmr.msra.gmra.mxu1 %vm213_vm2, %v417_v56 }
 0x19a   :  { %v3864_v61 = vpop.f32.mrf.mxu1 }
 0x19b   :  { %v4324_v62 = vadd.f32 %v3864_v61, %v212_v60 }
 0x19c   :  { %v304_v63 = vpop.f32.mrf.mxu1 }
 0x19d   :  { %2261 = vrot.lane.b32.xlu1 %v4324_v62, %s4157_s2  ;;  %v4353_v29 = vadd.f32 %v304_v63, %v212_v60 }
 0x19e   :  { %v3867_v0 = vpop.f32.mrf.mxu1 }
 0x19f   :  { %v4358_v18 = vadd.f32 %v3867_v0, %v212_v60 }
 0x1a0   :  { %v314_v11 = vpop.f32.mrf.mxu1 }
 0x1a1   :  { %v4328_v12 = vadd.f32 %v314_v11, %v212_v60  ;;  %6243 = vst [vmem:[#allocation10_spill] sm:$0xff] %v4358_v18 }
 0x1a2   :  { %v3870_v13 = vpop.f32.mrf.mxu1 }
 0x1a3   :  { %2264 = vrot.lane.b32.xlu1 %v4328_v12, %s4157_s2  ;;  %v4362_v30 = vadd.f32 %v3870_v13, %v212_v60 }
 0x1a4   :  { %v324_v14 = vpop.f32.mrf.mxu1 }
 0x1a5   :  { %v4332_v19 = vadd.f32 %v324_v14, %v212_v60  ;;  %6244 = vst [vmem:[#allocation11_spill] sm:$0xff] %v4362_v30 }
 0x1a6   :  { %v3873_v21 = vpop.f32.mrf.mxu1 }
 0x1a7   :  { %6240 = vst [vmem:[#allocation7_spill] sm:$0xff] %v4332_v19  ;;  %2270 = vrot.lane.b32.xlu1 %v4332_v19, %s4157_s2  ;;  %v4367_v31 = vadd.f32 %v3873_v21, %v212_v60 }
 0x1a8   :  { %v334_v23 = vpop.f32.mrf.mxu1 }
 0x1a9   :  { %v4340_v24 = vadd.f32 %v334_v23, %v212_v60  ;;  %6245 = vst [vmem:[#allocation12_spill] sm:$0xff] %v4367_v31 }
 0x1aa   :  { %v487_v26 = vpop.f32.mrf.mxu1 }
 0x1ab   :  { %6242 = vst [vmem:[#allocation9_spill] sm:$0xff] %v4340_v24  ;;  %v488_v27 = vadd.f32 %v487_v26, %v212_v60  ;;  %2276 = vrot.lane.b32.xlu1 %v4340_v24, %s4157_s2 }
 0x1ac   :  { %v3889_v28 = vpop.f32.mrf.mxu1 }
 0x1ad   :  { %v4348_v15 = vsel %vm493_vm3, %v499_v25, %v488_v27 }
 0x1ae   :  { %2628 = vrot.lane.b32.xlu0 %v4348_v15, %s4157_s2 }
 0x1af   :  { %2413 = vperm.xlu1 %4012, %v4276_v10  }
 0x1b2   :  { %2258 = vrot.lane.b32.xlu0 %v4353_v29, %s4157_s2 }
 0x1b3   :  { %530 = vperm.xlu1 %4012, %v4217_v1  }
 0x1b6   :  { %2267 = vrot.lane.b32.xlu0 %v4358_v18, %s4157_s2 }
 0x1b7   :  { %4014 = vset.pattern.permute.xlu1 %v4156_v58 }
 0x1b8   :  { %562 = vperm.xlu1 %4014, %v4217_v1  }
 0x1ba   :  { %2273 = vrot.lane.b32.xlu0 %v4362_v30, %s4157_s2 }
 0x1bc   :  { %566 = vperm.xlu1 %4014, %v4222_v2  }
 0x1be   :  { %2279 = vrot.lane.b32.xlu0 %v4367_v31, %s4157_s2 }
 0x1c0   :  { %4016 = vset.pattern.permute.xlu1 %v4155_v57 }
 0x1c1   :  { %538 = vperm.xlu1 %4016, %v4229_v3  }
 0x1c2   :  { %2417 = vperm.xlu0 %4013, %v4276_v10  }
 0x1c5   :  { %542 = vperm.xlu1 %4016, %v4239_v5  }
 0x1c6   :  { %4015 = vset.pattern.permute.xlu0 %v4155_v57 }
 0x1c7   :  { %534 = vperm.xlu0 %4015, %v4222_v2  }
 0x1c9   :  { %4017 = vset.pattern.permute.xlu1 %v4156_v58 }
 0x1ca   :  { %574 = vperm.xlu1 %4017, %v4239_v5  }
 0x1cb   :  { %546 = vperm.xlu0 %4015, %v4244_v6  }
 0x1ce   :  { %578 = vperm.xlu1 %4017, %v4244_v6  }
 0x1cf   :  { %4018 = vset.pattern.permute.xlu0 %v4156_v58 }
 0x1d0   :  { %570 = vperm.xlu0 %4018, %v4229_v3  }
 0x1d2   :  { %4019 = vset.pattern.permute.xlu1 %v4155_v57 }
 0x1d3   :  { %550 = vperm.xlu1 %4019, %v4253_v7  }
 0x1d4   :  { %582 = vperm.xlu0 %4018, %v4253_v7  }
 0x1d7   :  { %554 = vperm.xlu1 %4019, %v4258_v8  }
 0x1d8   :  { %4021 = vset.pattern.permute.xlu0 %v4155_v57 }
 0x1d9   :  { %558 = vperm.xlu0 %4021, %v4267_v9  }
 0x1db   :  { %4020 = vset.pattern.permute.xlu1 %v4156_v58 }
 0x1dc   :  { %586 = vperm.xlu1 %4020, %v4258_v8  }
 0x1e0   :  { %590 = vperm.xlu1 %4020, %v4267_v9  }
 0x20f   :  { %v2262_v1 = vpop.permute.xlu1 %2261 }
 0x210   :  { %v2263_v10 = vsel %vm2257_vm4, %v2262_v1, %v4324_v62 }
 0x215   :  { %v2265_v2 = vpop.permute.xlu1 %2264 }
 0x216   :  { %v2266_v33 = vsel %vm2257_vm4, %v2265_v2, %v4328_v12 }
 0x219   :  { %v2271_v5 = vpop.permute.xlu1 %2270 }
 0x21a   :  { %v2272_v38 = vsel %vm2257_vm4, %v2271_v5, %v4332_v19 }
 0x21d   :  { %v2277_v8 = vpop.permute.xlu1 %2276 }
 0x21e   :  { %v2278_v43 = vsel %vm2257_vm4, %v2277_v8, %v4340_v24 }
 0x220   :  { %v2629_v6 = vpop.permute.xlu0 %2628 }
 0x221   :  { %v2630_v3 = vsel %vm2257_vm4, %v2629_v6, %v4348_v15  ;;  %v6181_v6 = vmov 2102212464  }
 0x222   :  { %2631 = vrot.lane.b32.xlu1 %v2630_v3, %s4157_s2 }
 0x224   :  { %v2259_v7 = vpop.permute.xlu0 %2258 }
 0x225   :  { %v2260_v32 = vsel %vm2257_vm4, %v2259_v7, %v4353_v29  ;;  %v6185_v7 = vmov 920167782  }
 0x226   :  { %2284 = vrot.lane.b32.xlu1 %v2263_v10, %s4157_s2  ;;  %2282 = vrot.lane.b32.xlu0 %v2260_v32, %s4157_s2 }
 0x228   :  { %v2268_v9 = vpop.permute.xlu0 %2267 }
 0x229   :  { %v2269_v34 = vsel %vm2257_vm4, %v2268_v9, %v4358_v18 }
 0x22a   :  { %2286 = vrot.lane.b32.xlu0 %v2266_v33, %s4157_s2  ;;  %2288 = vrot.lane.b32.xlu1 %v2269_v34, %s4157_s2  ;;  %v2414_v35 = vpop.permute.xlu1 %2413  ;;  %v6171_v33 = vmov 1326507024  }
 0x22c   :  { %v2274_v36 = vpop.permute.xlu0 %2273 }
 0x22d   :  { %v2275_v39 = vsel %vm2257_vm4, %v2274_v36, %v4362_v30 }
 0x22e   :  { %2290 = vrot.lane.b32.xlu0 %v2272_v38, %s4157_s2  ;;  %2292 = vrot.lane.b32.xlu1 %v2275_v39, %s4157_s2  ;;  %v531_v40 = vpop.permute.xlu1 %530 }
 0x230   :  { %v2280_v41 = vpop.permute.xlu0 %2279 }
 0x231   :  { %v2281_v44 = vsel %vm2257_vm4, %v2280_v41, %v4367_v31 }
 0x232   :  { %2294 = vrot.lane.b32.xlu0 %v2278_v43, %s4157_s2  ;;  %2296 = vrot.lane.b32.xlu1 %v2281_v44, %s4157_s2 }
 0x233   :  { %v563_v45 = vpop.permute.xlu1 %562 }
 0x234   :  { %v4420_v46 = vsel %vm4408_vm5, %v531_v40, %v563_v45  ;;  %v6175_v40 = vmov 2131351028  }
 0x235   :  { %6248 = vst [vmem:[#allocation13_spill] sm:$0xff] %v4420_v46  ;;  %v604_v51 = vand.u32 2139095040, %v4420_v46  ;;  %v6168_v32 = vand.u32 2147483647, %v4420_v46 }
 0x237   :  { %v567_v47 = vpop.permute.xlu1 %566  ;;  %v605_v53 = vshrl.u32 %v604_v51, 23 }
 0x239   :  { %v3684_v56 = vadd.s32 4294967169, %v605_v53 }
 0x23b   :  { %v611_v60 = vadd.s32 1, %v3684_v56 }
 0x23c   :  { %v539_v48 = vpop.permute.xlu1 %538 }
 0x23d   :  { %v2418_v49 = vpop.permute.xlu0 %2417  ;;  %vm612_vm6 = vcmp.gt.s32.totalorder %v611_v60, 0 }
 0x23e   :  { %v4424_v50 = vsel %vm4408_vm5, %v2414_v35, %v2418_v49  ;;  %v613_v11 = vsel %vm612_vm6, %v611_v60, 0  ;;  %v6190_v35 = vmov 683565275   ;;  %v608_v49 = vand.u32 8388607, %v6168_v32 }
 0x23f   :  { %6249 = vst [vmem:[#allocation14_spill] sm:$0xff] %v4424_v50  ;;  %v2424_v61 = vand.u32 2139095040, %v4424_v50  ;;  %v615_v14 = vand.u32 31, %v613_v11  ;;  %v4451_v8 = vshrl.u32 %v613_v11, 5 }
 0x240   :  { %v543_v52 = vpop.permute.xlu1 %542  ;;  %v609_v60 = vor.u32 8388608, %v608_v49 }
 0x241   :  { %v2425_v63 = vshrl.u32 %v2424_v61, 23  ;;  %v4437_v27 = vsub.s32 32, %v615_v14  ;;  %v627_v3 = vshll.u32 %v6181_v6, %v615_v14  ;;  %v630_v9 = vshll.u32 %v6185_v7, %v615_v14 }
 0x242   :  { %v535_v54 = vpop.permute.xlu0 %534  ;;  %v618_v36 = vshll.u32 %v6190_v35, %v615_v14  ;;  %v621_v39 = vshll.u32 %v6179_v37, %v615_v14  ;;  %v624_v41 = vshll.u32 %v6175_v40, %v615_v14  ;;  %vm636_vm8 = vcmp.lt.s32.totalorder %v4451_v8, 4 }
 0x243   :  { %v4429_v57 = vsel %vm4408_vm5, %v535_v54, %v567_v47  ;;  %v3748_v21 = vadd.s32 4294967169, %v2425_v63  ;;  %v628_v10 = vshrl.u32 %v6185_v7, %v4437_v27  ;;  %v631_v34 = vshrl.u32 %v6171_v33, %v4437_v27 }
 0x244   :  { %6250 = vst [vmem:[#allocation15_spill] sm:$0xff] %v4429_v57  ;;  %v707_v13 = vand.u32 2139095040, %v4429_v57  ;;  %v619_v38 = vshrl.u32 %v6179_v37, %v4437_v27  ;;  %v622_v43 = vshrl.u32 %v6175_v40, %v4437_v27  ;;  %v625_v44 = vshrl.u32 %v6181_v6, %v4437_v27 }
 0x245   :  { %v575_v55 = vpop.permute.xlu1 %574  ;;  %v2431_v28 = vadd.s32 1, %v3748_v21  ;;  %v632_v51 = vor.u32 %v631_v34, %v630_v9  ;;  %vm633_vm10 = vcmp.lt.s32.totalorder %v4451_v8, 1  ;;  %vm635_vm11 = vcmp.lt.s32.totalorder %v4451_v8, 3 }
 0x246   :  { %v4433_v58 = vsel %vm4408_vm5, %v543_v52, %v575_v55  ;;  %v547_v0 = vpop.permute.xlu0 %546  ;;  %v708_v26 = vshrl.u32 %v707_v13, 23  ;;  %v4468_v53 = vor.u32 %v619_v38, %v618_v36  ;;  %v4470_v54 = vor.u32 %v622_v43, %v621_v39 }
 0x247   :  { %6251 = vst [vmem:[#allocation16_spill] sm:$0xff] %v4433_v58  ;;  %vm2432_vm7 = vcmp.gt.s32.totalorder %v2431_v28, 0  ;;  %v4472_v55 = vor.u32 %v625_v44, %v624_v41  ;;  %v646_v61 = vsel %vm636_vm8, %v632_v51, 1326507024  ;;  %vm634_vm12 = vcmp.lt.s32.totalorder %v4451_v8, 2 }
 0x248   :  { %v3688_v5 = vadd.s32 4294967169, %v708_v26  ;;  %v2433_v45 = vsel %vm2432_vm7, %v2431_v28, 0  ;;  %v641_v11 = vsel %vm633_vm10, %v4468_v53, %v4470_v54  ;;  %v6167_v28 = vand.u32 2147483647, %v4424_v50 }
 0x249   :  { %v579_v23 = vpop.permute.xlu1 %578  ;;  %v2435_v52 = vand.u32 31, %v2433_v45  ;;  %v645_v14 = vsel %vm633_vm10, %v4470_v54, %v4472_v55  ;;  %v4510_v9 = vshrl.u32 %v2433_v45, 5 }
 0x24a   :  { %v4441_v1 = vsel %vm4408_vm5, %v547_v0, %v579_v23  ;;  %v714_v47 = vadd.s32 1, %v3688_v5  ;;  %v4496_v23 = vshll.u32 %v609_v60, 8  ;;  %v2428_v51 = vand.u32 8388607, %v6167_v28 }
 0x24b   :  { %v571_v25 = vpop.permute.xlu0 %570  ;;  %6252 = vst [vmem:[#allocation17_spill] sm:$0xff] %v4441_v1  ;;  %v4480_v63 = vsub.s32 32, %v2435_v52  ;;  %v2447_v5 = vshll.u32 %v6181_v6, %v2435_v52  ;;  %v2450_v34 = vshll.u32 %v6185_v7, %v2435_v52  ;;  %v2438_v38 = vshll.u32 %v6190_v35, %v2435_v52 }
 0x24c   :  { %v4445_v2 = vsel %vm4408_vm5, %v539_v48, %v571_v25  ;;  %v629_v48 = vor.u32 %v628_v10, %v627_v3  ;;  %vm715_vm9 = vcmp.gt.s32.totalorder %v714_v47, 0  ;;  %v2441_v41 = vshll.u32 %v6179_v37, %v2435_v52 }
 0x24d   :  { %6253 = vst [vmem:[#allocation18_spill] sm:$0xff] %v4445_v2  ;;  %v716_v0 = vsel %vm715_vm9, %v714_v47, 0  ;;  %v2448_v3 = vshrl.u32 %v6185_v7, %v4480_v63  ;;  %v2451_v36 = vshrl.u32 %v6171_v33, %v4480_v63  ;;  %v2439_v39 = vshrl.u32 %v6179_v37, %v4480_v63 }
 0x24e   :  { %v642_v56 = vsel %vm636_vm8, %v629_v48, 920167782  ;;  %v647_v21 = vsel %vm635_vm11, %v629_v48, %v646_v61  ;;  %v718_v25 = vand.u32 31, %v716_v0  ;;  %v2442_v43 = vshrl.u32 %v6175_v40, %v4480_v63 }
 0x24f   :  { %v643_v13 = vsel %vm635_vm11, %v4472_v55, %v642_v56  ;;  %v4508_v10 = vsel %vm634_vm12, %v645_v14, %v647_v21  ;;  %v2444_v44 = vshll.u32 %v6175_v40, %v2435_v52  ;;  %v2445_v45 = vshrl.u32 %v6181_v6, %v4480_v63  ;;  %v583_v8 = vpop.permute.xlu0 %582 }
 0x250   :  { %v4500_v26 = vsel %vm634_vm12, %v641_v11, %v643_v13  ;;  %v4524_v47 = vsub.s32 32, %v718_v25  ;;  %v4528_v48 = vmul.u32.u64.low %v4496_v23, %v4508_v10  ;;  %v4529_v49 = vmul.u32.u64.high %v4496_v23, %v4508_v10, %v4528_v48 }
 0x251   :  { %v2449_v56 = vor.u32 %v2448_v3, %v2447_v5  ;;  %v4536_v60 = vmul.u32.u64.low %v4496_v23, %v4500_v26  ;;  %v4537_v61 = vmul.u32.u64.high %v4496_v23, %v4500_v26, %v4536_v60  ;;  %v2452_v52 = vor.u32 %v2451_v36, %v2450_v34 }
 0x252   :  { %vm2456_vm13 = vcmp.lt.s32.totalorder %v4510_v9, 4  ;;  %v4541_v11 = vor.u32 %v2439_v39, %v2438_v38  ;;  %v4543_v13 = vor.u32 %v2442_v43, %v2441_v41  ;;  %vm2453_vm14 = vcmp.lt.s32.totalorder %v4510_v9, 1 }
 0x253   :  { %v6173_v14 = vand.u32 2147483647, %v4429_v57  ;;  %v2446_v21 = vor.u32 %v2445_v45, %v2444_v44  ;;  %vm2455_vm15 = vcmp.lt.s32.totalorder %v4510_v9, 3  ;;  %v730_v5 = vshll.u32 %v6181_v6, %v718_v25 }
 0x254   :  { %v731_v26 = vshrl.u32 %v6185_v7, %v4524_v47  ;;  %v2462_v3 = vsel %vm2456_vm13, %v2449_v56, 920167782  ;;  %v4553_v10 = vshrl.u32 %v716_v0, 5  ;;  %v733_v34 = vshll.u32 %v6185_v7, %v718_v25 }
 0x255   :  { %v734_v36 = vshrl.u32 %v6171_v33, %v4524_v47  ;;  %v2429_v38 = vor.u32 8388608, %v2428_v51  ;;  %v2466_v39 = vsel %vm2456_vm13, %v2452_v52, 1326507024  ;;  %v721_v41 = vshll.u32 %v6190_v35, %v718_v25 }
 0x256   :  { %v724_v43 = vshll.u32 %v6179_v37, %v718_v25  ;;  %v722_v44 = vshrl.u32 %v6179_v37, %v4524_v47  ;;  %v725_v0 = vshrl.u32 %v6175_v40, %v4524_v47  ;;  %v727_v45 = vshll.u32 %v6175_v40, %v718_v25 }
 0x257   :  { %v728_v48 = vshrl.u32 %v6181_v6, %v4524_v47  ;;  %vm2454_vm3 = vcmp.lt.s32.totalorder %v4510_v9, 2  ;;  %v2461_v51 = vsel %vm2453_vm14, %v4541_v11, %v4543_v13  ;;  %v2463_v52 = vsel %vm2455_vm15, %v2446_v21, %v2462_v3 }
 0x258   :  { %v732_v20 = vor.u32 %v731_v26, %v730_v5  ;;  %v711_v59 = vand.u32 8388607, %v6173_v14  ;;  %v735_v28 = vor.u32 %v734_v36, %v733_v34  ;;  %vm739_vm6 = vcmp.lt.s32.totalorder %v4553_v10, 4 }
 0x259   :  { %v2465_v25 = vsel %vm2453_vm14, %v4543_v13, %v2446_v21  ;;  %v2467_v32 = vsel %vm2455_vm15, %v2449_v56, %v2466_v39  ;;  %v4584_v4 = vshll.u32 %v2429_v38, 8  ;;  %v913_v33 = vand.u32 2139095040, %v4433_v58 }
 0x25a   :  { %v2464_v5 = vsel %vm2454_vm3, %v2461_v51, %v2463_v52  ;;  %v723_v26 = vor.u32 %v722_v44, %v721_v41  ;;  %v726_v3 = vor.u32 %v725_v0, %v724_v43  ;;  %v729_v14 = vor.u32 %v728_v48, %v727_v45 }
 0x25b   :  { %vm736_vm7 = vcmp.lt.s32.totalorder %v4553_v10, 1  ;;  %vm738_vm9 = vcmp.lt.s32.totalorder %v4553_v10, 3  ;;  %v745_v34 = vsel %vm739_vm6, %v732_v20, 920167782  ;;  %v617_v56 = vshrl.u32 %v6190_v35, %v4437_v27 }
 0x25c   :  { %v2468_v36 = vsel %vm2454_vm3, %v2465_v25, %v2467_v32  ;;  %v712_v38 = vor.u32 8388608, %v711_v59  ;;  %v749_v39 = vsel %vm739_vm6, %v735_v28, 1326507024  ;;  %v638_v41 = vsel %vm636_vm8, %v4472_v55, 2102212464 }
 0x25d   :  { %v4603_v43 = vmul.u32.u64.low %v4584_v4, %v2464_v5  ;;  %v4604_v44 = vmul.u32.u64.high %v4584_v4, %v2464_v5, %v4603_v43  ;;  %v914_v0 = vshrl.u32 %v913_v33, 23  ;;  %v2437_v27 = vshrl.u32 %v6190_v35, %v4480_v63 }
 0x25e   :  { %vm737_vm0 = vcmp.lt.s32.totalorder %v4553_v10, 2  ;;  %v744_v59 = vsel %vm736_vm7, %v723_v26, %v726_v3  ;;  %v746_v32 = vsel %vm738_vm9, %v729_v14, %v745_v34  ;;  %v748_v45 = vsel %vm736_vm7, %v726_v3, %v729_v14 }
 0x25f   :  { %6254 = vst [vmem:[#allocation19_spill] sm:$0xff] %v4603_v43  ;;  %v4615_v28 = vmul.u32.u64.low %v4584_v4, %v2468_v36  ;;  %v4616_v55 = vmul.u32.u64.high %v4584_v4, %v2468_v36, %v4615_v28  ;;  %v750_v33 = vsel %vm738_vm9, %v732_v20, %v749_v39  ;;  %v637_v63 = vsel %vm633_vm10, %v617_v56, %v4468_v53 }
 0x260   :  { %v639_v48 = vsel %vm635_vm11, %v4470_v54, %v638_v41  ;;  %v2458_v51 = vsel %vm2456_vm13, %v2446_v21, 2102212464  ;;  %v752_v52 = vshll.u32 %v712_v38, 8  ;;  %v747_v25 = vsel %vm737_vm0, %v744_v59, %v746_v32  ;;  %v551_v38 = vpop.permute.xlu1 %550 }
 0x261   :  { %6255 = vst [vmem:[#allocation20_spill] sm:$0xff] %v4616_v55  ;;  %v3696_v5 = vadd.s32 4294967169, %v914_v0  ;;  %v751_v34 = vsel %vm737_vm0, %v748_v45, %v750_v33  ;;  %v640_v20 = vsel %vm634_vm12, %v637_v63, %v639_v48  ;;  %v2457_v53 = vsel %vm2453_vm14, %v2437_v27, %v4541_v11 }
 0x262   :  { %v2459_v54 = vsel %vm2455_vm15, %v4543_v13, %v2458_v51  ;;  %vm658_vm8 = vc.u32 %v4529_v49, %v4536_v60  ;;  %v659_v21 = vadd.s32 1, %v4537_v61  ;;  %v720_v39 = vshrl.u32 %v6190_v35, %v4524_v47 }
 0x263   :  { %v4645_v56 = vmul.u32.u64.low %v752_v52, %v747_v25  ;;  %v4646_v36 = vmul.u32.u64.high %v752_v52, %v747_v25, %v4645_v56  ;;  %v4651_v41 = vmul.u32.u64.low %v752_v52, %v751_v34  ;;  %v4652_v11 = vmul.u32.u64.high %v752_v52, %v751_v34, %v4651_v41 }
 0x264   :  { %v920_v0 = vadd.s32 1, %v3696_v5  ;;  %v2460_v13 = vsel %vm2454_vm3, %v2457_v53, %v2459_v54  ;;  %v2479_v27 = vadd.s32 1, %v4604_v44  ;;  %v741_v59 = vsel %vm739_vm6, %v729_v14, 2102212464 }
 0x265   :  { %6256 = vst [vmem:[#allocation21_spill] sm:$0xff] %v4645_v56  ;;  %6257 = vst [vmem:[#allocation22_spill] sm:$0xff] %v4652_v11  ;;  %vm2478_vm10 = vc.u32 %v4616_v55, %v4603_v43  ;;  %v4663_v32 = vsel %vm4408_vm5, %v551_v38, %v583_v8  ;;  %v656_v47 = vmul.u32 %v4496_v23, %v640_v20  ;;  %v762_v51 = vadd.s32 1, %v4646_v36 }
 0x266   :  { %6258 = vst [vmem:[#allocation23_spill] sm:$0xff] %v4663_v32  ;;  %v660_v28 = vsel %vm658_vm8, %v659_v21, %v4537_v61  ;;  %v2476_v45 = vmul.u32 %v4584_v4, %v2460_v13  ;;  %v740_v9 = vsel %vm736_vm7, %v720_v39, %v723_v26  ;;  %v742_v33 = vsel %vm738_vm9, %v726_v3, %v741_v59 }
 0x267   :  { %vm921_vm11 = vcmp.gt.s32.totalorder %v920_v0, 0  ;;  %v2480_v14 = vsel %vm2478_vm10, %v2479_v27, %v4604_v44  ;;  %v661_v63 = vadd.s32 %v660_v28, %v656_v47  ;;  %v743_v48 = vsel %vm737_vm0, %v740_v9, %v742_v33 }
 0x268   :  { %v922_v23 = vsel %vm921_vm11, %v920_v0, 0  ;;  %v2481_v25 = vadd.s32 %v2480_v14, %v2476_v45  ;;  %vm761_vm12 = vc.u32 %v4652_v11, %v4645_v56  ;;  %v759_v4 = vmul.u32 %v752_v52, %v743_v48 }
 0x269   :  { %v924_v61 = vand.u32 31, %v922_v23  ;;  %v1016_v26 = vand.u32 2139095040, %v4441_v1  ;;  %v662_v5 = vadd.s32 536870912, %v661_v63  ;;  %v763_v3 = vsel %vm761_vm12, %v762_v51, %v4646_v36 }
 0x26a   :  { %v2482_v34 = vadd.s32 536870912, %v2481_v25  ;;  %v764_v44 = vadd.s32 %v763_v3, %v759_v4  ;;  %v810_v21 = vand.u32 2139095040, %v4445_v2  ;;  %v6178_v36 = vand.u32 2147483647, %v4433_v58 }
 0x26b   :  { %v925_v20 = vsub.s32 32, %v924_v61  ;;  %v1017_v53 = vshrl.u32 %v1016_v26, 23  ;;  %v4680_v10 = vshrl.u32 %v662_v5, 30  ;;  %v936_v8 = vshll.u32 %v6181_v6, %v924_v61 }
 0x26c   :  { %v4682_v54 = vshrl.u32 %v2482_v34, 30  ;;  %v765_v38 = vadd.s32 536870912, %v764_v44  ;;  %v4689_v0 = vshrl.u32 %v922_v23, 5  ;;  %v927_v27 = vshll.u32 %v6190_v35, %v924_v61 }
 0x26d   :  { %6259 = vst [vmem:[#allocation24_spill] sm:$0xff] %v4680_v10  ;;  %v937_v52 = vshrl.u32 %v6185_v7, %v925_v20  ;;  %v3700_v39 = vadd.s32 4294967169, %v1017_v53  ;;  %v664_v41 = vshll.u32 %v4680_v10, 30  ;;  %v928_v59 = vshrl.u32 %v6179_v37, %v925_v20 }
 0x26e   :  { %6260 = vst [vmem:[#allocation25_spill] sm:$0xff] %v4682_v54  ;;  %v2484_v13 = vshll.u32 %v4682_v54, 30  ;;  %v930_v47 = vshll.u32 %v6179_v37, %v924_v61  ;;  %v931_v28 = vshrl.u32 %v6175_v40, %v925_v20  ;;  %v933_v45 = vshll.u32 %v6175_v40, %v924_v61 }
 0x26f   :  { %v934_v9 = vshrl.u32 %v6181_v6, %v925_v20  ;;  %v811_v33 = vshrl.u32 %v810_v21, 23  ;;  %v4698_v14 = vshrl.u32 %v765_v38, 30  ;;  %v938_v48 = vor.u32 %v937_v52, %v936_v8 }
 0x270   :  { %v1023_v51 = vadd.s32 1, %v3700_v39  ;;  %v4700_v23 = vsub.s32 %v661_v63, %v664_v41  ;;  %v917_v4 = vand.u32 8388607, %v6178_v36  ;;  %vm945_vm0 = vcmp.lt.s32.totalorder %v4689_v0, 4 }
 0x271   :  { %6261 = vst [vmem:[#allocation26_spill] sm:$0xff] %v4698_v14  ;;  %v4705_v26 = vsub.s32 %v2481_v25, %v2484_v13  ;;  %v929_v5 = vor.u32 %v928_v59, %v927_v27  ;;  %v939_v3 = vshll.u32 %v6185_v7, %v924_v61  ;;  %v6263_v34 = vmov 1326507024  }
 0x272   :  { %v940_v53 = vshrl.u32 %v6263_v34, %v925_v20  ;;  %v932_v40 = vor.u32 %v931_v28, %v930_v47  ;;  %v935_v21 = vor.u32 %v934_v9, %v933_v45  ;;  %vm942_vm13 = vcmp.lt.s32.totalorder %v4689_v0, 1 }
 0x273   :  { %6262 = vst [vmem:[#allocation27_spill] sm:$0xff] %v4705_v26  ;;  %v3692_v38 = vadd.s32 4294967169, %v811_v33  ;;  %v767_v63 = vshll.u32 %v4698_v14, 30  ;;  %vm944_vm14 = vcmp.lt.s32.totalorder %v4689_v0, 3  ;;  %v951_v8 = vsel %vm945_vm0, %v938_v48, 920167782  ;;  %v4729_v33 = vpop.permute.xlu1 %554 }
 0x274   :  { %vm1024_vm15 = vcmp.gt.s32.totalorder %v1023_v51, 0  ;;  %v918_v25 = vor.u32 8388608, %v917_v4  ;;  %v926_v52 = vshrl.u32 %v6190_v35, %v925_v20  ;;  %v941_v39 = vor.u32 %v940_v53, %v939_v3 }
 0x275   :  { %vm943_vm3 = vcmp.lt.s32.totalorder %v4689_v0, 2  ;;  %v947_v61 = vsel %vm945_vm0, %v935_v21, 2102212464  ;;  %v950_v41 = vsel %vm942_vm13, %v929_v5, %v932_v40  ;;  %v952_v13 = vsel %vm944_vm14, %v935_v21, %v951_v8 }
 0x276   :  { %v1025_v27 = vsel %vm1024_vm15, %v1023_v51, 0  ;;  %v817_v59 = vadd.s32 1, %v3692_v38  ;;  %v667_v47 = vsub.s32 0, %v4700_v23  ;;  %v2487_v28 = vsub.s32 0, %v4705_v26 }
 0x277   :  { %v4724_v45 = vsub.s32 %v764_v44, %v767_v63  ;;  %v6177_v20 = vand.u32 2147483647, %v4441_v1  ;;  %v4727_v9 = vshll.u32 %v918_v25, 8  ;;  %v946_v4 = vsel %vm942_vm13, %v926_v52, %v929_v5 }
 0x278   :  { %v948_v3 = vsel %vm944_vm14, %v932_v40, %v947_v61  ;;  %v953_v51 = vsel %vm943_vm3, %v950_v41, %v952_v13  ;;  %v1027_v53 = vand.u32 31, %v1025_v27  ;;  %v955_v44 = vsel %vm945_vm0, %v941_v39, 1326507024 }
 0x279   :  { %6264 = vst [vmem:[#allocation28_spill] sm:$0xff] %v4724_v45  ;;  %vm818_vm6 = vcmp.gt.s32.totalorder %v817_v59, 0  ;;  %v4740_v38 = vmin.u32 %v667_v47, %v4700_v23  ;;  %v4743_v63 = vmin.u32 %v2487_v28, %v4705_v26  ;;  %v770_v8 = vsub.s32 0, %v4724_v45 }
 0x27a   :  { %v1020_v5 = vand.u32 8388607, %v6177_v20  ;;  %v4750_v25 = vsel %vm943_vm3, %v946_v4, %v948_v3  ;;  %v954_v52 = vsel %vm942_vm13, %v932_v40, %v935_v21  ;;  %v956_v41 = vsel %vm944_vm14, %v938_v48, %v955_v44  ;;  %v587_v4 = vpop.permute.xlu1 %586 }
 0x27b   :  { %v4755_v39 = vmul.u32.u64.low %v4727_v9, %v953_v51  ;;  %v4756_v61 = vmul.u32.u64.high %v4727_v9, %v953_v51, %v4755_v39  ;;  %v4761_v13 = vsub.s32 32, %v1027_v53  ;;  %v819_v47 = vsel %vm818_vm6, %v817_v59, 0 }
 0x27c   :  { %v1119_v28 = vand.u32 2139095040, %v4663_v32  ;;  %v4768_v21 = vmin.u32 %v770_v8, %v4724_v45  ;;  %v957_v48 = vsel %vm943_vm3, %v954_v52, %v956_v41  ;;  %v1021_v44 = vor.u32 8388608, %v1020_v5  ;;  %v559_v5 = vpop.permute.xlu0 %558 }
 0x27d   :  { %6265 = vst [vmem:[#allocation29_spill] sm:$0xff] %v4755_v39  ;;  %v1039_v59 = vshll.u32 %v6181_v6, %v1027_v53  ;;  %v821_v36 = vand.u32 31, %v819_v47  ;;  %v1040_v20 = vshrl.u32 %v6185_v7, %v4761_v13  ;;  %v1042_v3 = vshll.u32 %v6185_v7, %v1027_v53 }
 0x27e   :  { %v1043_v40 = vshrl.u32 %v6263_v34, %v4761_v13  ;;  %v1120_v8 = vshrl.u32 %v1119_v28, 23  ;;  %v4780_v37 = vshrl.u32 %v1025_v27, 5  ;;  %v1030_v51 = vshll.u32 %v6190_v35, %v1027_v53  ;;  %v591_v58 = vpop.permute.xlu1 %590 }
 0x27f   :  { %v6266_v0 = vmov 2475754826   ;;  %v6267_v6 = vmov 2131351028   ;;  %v1037_v16 = vshrl.u32 %v6268_v22, %v4761_v13  ;;  %v968_v35 = vadd.s32 1, %v4756_v61 }
 0x280   :  { %v1031_v52 = vshrl.u32 %v6266_v0, %v4761_v13  ;;  %v1033_v41 = vshll.u32 %v6266_v0, %v1027_v53  ;;  %v1034_v17 = vshrl.u32 %v6267_v6, %v4761_v13  ;;  %v1036_v7 = vshll.u32 %v6267_v6, %v1027_v53 }
 0x281   :  { %v4793_v27 = vmul.u32.u64.low %v4727_v9, %v957_v48  ;;  %v4794_v28 = vmul.u32.u64.high %v4727_v9, %v957_v48, %v4793_v27  ;;  %v4797_v1 = vsub.s32 32, %v821_v36  ;;  %v1041_v14 = vor.u32 %v1040_v20, %v1039_v59 }
 0x282   :  { %v1044_v54 = vor.u32 %v1043_v40, %v1042_v3  ;;  %v4799_v57 = vshll.u32 %v1021_v44, 8  ;;  %v3704_v50 = vadd.s32 4294967169, %v1120_v8  ;;  %v4801_v10 = vor.u32 %v1031_v52, %v1030_v51 }
 0x283   :  { %6269 = vst [vmem:[#allocation30_spill] sm:$0xff] %v4794_v28  ;;  %vm1045_vm7 = vcmp.lt.s32.totalorder %v4780_v37, 1  ;;  %vm1048_vm9 = vcmp.lt.s32.totalorder %v4780_v37, 4  ;;  %v6270_v53 = vand.u32 2147483647, %v4445_v2  ;;  %v4807_v27 = vor.u32 %v1034_v17, %v1033_v41 }
 0x284   :  { %v4809_v26 = vor.u32 %v1037_v16, %v1036_v7  ;;  %v1126_v43 = vadd.s32 1, %v3704_v50  ;;  %v4813_v20 = vsel %vm4408_vm5, %v559_v5, %v591_v58  ;;  %vm1046_vm8 = vcmp.lt.s32.totalorder %v4780_v37, 2 }
 0x285   :  { %v814_v48 = vand.u32 8388607, %v6270_v53  ;;  %vm1047_vm10 = vcmp.lt.s32.totalorder %v4780_v37, 3  ;;  %v833_v3 = vshll.u32 %v6268_v22, %v821_v36  ;;  %v6271_v40 = vmov 920167782  }
 0x286   :  { %v834_v51 = vshrl.u32 %v6271_v40, %v4797_v1  ;;  %v1054_v17 = vsel %vm1048_vm9, %v1041_v14, 920167782  ;;  %v1058_v16 = vsel %vm1048_vm9, %v1044_v54, 1326507024  ;;  %v4824_v50 = vshrl.u32 %v819_v47, 5 }
 0x287   :  { %vm1127_vm11 = vcmp.gt.s32.totalorder %v1126_v43, 0  ;;  %v6272_v58 = vmov 683565275   ;;  %v825_v44 = vshrl.u32 %v6266_v0, %v4797_v1  ;;  %v827_v59 = vshll.u32 %v6266_v0, %v821_v36 }
 0x288   :  { %v824_v7 = vshll.u32 %v6272_v58, %v821_v36  ;;  %v1128_v8 = vsel %vm1127_vm11, %v1126_v43, 0  ;;  %v828_v52 = vshrl.u32 %v6267_v6, %v4797_v1  ;;  %v830_v5 = vshll.u32 %v6267_v6, %v821_v36 }
 0x289   :  { %v831_v41 = vshrl.u32 %v6268_v22, %v4797_v1  ;;  %v4838_v54 = vsel %vm4408_vm5, %v4729_v33, %v587_v4  ;;  %v1053_v47 = vsel %vm1045_vm7, %v4801_v10, %v4807_v27  ;;  %v1055_v43 = vsel %vm1047_vm10, %v4809_v26, %v1054_v17 }
 0x28a   :  { %v835_v53 = vor.u32 %v834_v51, %v833_v3  ;;  %v1130_v2 = vand.u32 31, %v1128_v8  ;;  %v815_v55 = vor.u32 8388608, %v814_v48  ;;  %v836_v46 = vshll.u32 %v6271_v40, %v821_v36 }
 0x28b   :  { %v837_v45 = vshrl.u32 %v6263_v34, %v4797_v1  ;;  %vm842_vm5 = vcmp.lt.s32.totalorder %v4824_v50, 4  ;;  %vm967_vm12 = vc.u32 %v4794_v28, %v4755_v39  ;;  %v1057_v42 = vsel %vm1045_vm7, %v4807_v27, %v4809_v26 }
 0x28c   :  { %v1059_v33 = vsel %vm1047_vm10, %v1041_v14, %v1058_v16  ;;  %v1222_v4 = vand.u32 2139095040, %v4838_v54  ;;  %v1056_v36 = vsel %vm1046_vm8, %v1053_v47, %v1055_v43  ;;  %v4862_v48 = vor.u32 %v825_v44, %v824_v7 }
 0x28d   :  { %v4864_v3 = vor.u32 %v828_v52, %v827_v59  ;;  %v832_v51 = vor.u32 %v831_v41, %v830_v5  ;;  %vm839_vm0 = vcmp.lt.s32.totalorder %v4824_v50, 1  ;;  %vm841_vm13 = vcmp.lt.s32.totalorder %v4824_v50, 3 }
 0x28e   :  { %v848_v17 = vsel %vm842_vm5, %v835_v53, 920167782  ;;  %v4870_v39 = vsub.s32 32, %v1130_v2  ;;  %v969_v14 = vsel %vm967_vm12, %v968_v35, %v4756_v61  ;;  %v1060_v16 = vsel %vm1046_vm8, %v1057_v42, %v1059_v33 }
 0x28f   :  { %v838_v47 = vor.u32 %v837_v45, %v836_v46  ;;  %v4875_v7 = vshll.u32 %v815_v55, 8  ;;  %v4878_v44 = vmul.u32.u64.low %v4799_v57, %v1056_v36  ;;  %v4879_v59 = vmul.u32.u64.high %v4799_v57, %v1056_v36, %v4878_v44 }
 0x290   :  { %v1223_v5 = vshrl.u32 %v1222_v4, 23  ;;  %v1029_v41 = vshrl.u32 %v6272_v58, %v4761_v13  ;;  %vm840_vm14 = vcmp.lt.s32.totalorder %v4824_v50, 2  ;;  %v847_v46 = vsel %vm839_vm0, %v4862_v48, %v4864_v3 }
 0x291   :  { %v849_v35 = vsel %vm841_vm13, %v832_v51, %v848_v17  ;;  %v4893_v55 = vmul.u32.u64.low %v4799_v57, %v1060_v16  ;;  %v4894_v45 = vmul.u32.u64.high %v4799_v57, %v1060_v16, %v4893_v55  ;;  %v1142_v61 = vshll.u32 %v6268_v22, %v1130_v2 }
 0x292   :  { %v1143_v43 = vshrl.u32 %v6271_v40, %v4870_v39  ;;  %v852_v13 = vsel %vm842_vm5, %v838_v47, 1326507024  ;;  %v4901_v42 = vshrl.u32 %v1128_v8, 5  ;;  %v1145_v33 = vshll.u32 %v6271_v40, %v1130_v2 }
 0x293   :  { %v1146_v4 = vshrl.u32 %v6263_v34, %v4870_v39  ;;  %v850_v36 = vsel %vm840_vm14, %v847_v46, %v849_v35  ;;  %v1133_v17 = vshll.u32 %v6272_v58, %v1130_v2  ;;  %v1136_v16 = vshll.u32 %v6266_v0, %v1130_v2 }
 0x294   :  { %v3708_v55 = vadd.s32 4294967169, %v1223_v5  ;;  %v1134_v52 = vshrl.u32 %v6266_v0, %v4870_v39  ;;  %v1137_v8 = vshrl.u32 %v6267_v6, %v4870_v39  ;;  %v1139_v47 = vshll.u32 %v6267_v6, %v1130_v2 }
 0x295   :  { %v1140_v28 = vshrl.u32 %v6268_v22, %v4870_v39  ;;  %v6273_v31 = vmul.u32 %v4727_v9, %v4750_v25  ;;  %v851_v5 = vsel %vm839_vm0, %v4864_v3, %v832_v51  ;;  %v853_v35 = vsel %vm841_vm13, %v835_v53, %v852_v13 }
 0x296   :  { %v1144_v56 = vor.u32 %v1143_v43, %v1142_v61  ;;  %v1050_v2 = vsel %vm1048_vm9, %v4809_v26, 2102212464  ;;  %v6274_v11 = vand.u32 2147483647, %v4663_v32  ;;  %v1147_v30 = vor.u32 %v1146_v4, %v1145_v33 }
 0x297   :  { %v4920_v46 = vadd.s32 %v969_v14, %v6273_v31  ;;  %vm1151_vm15 = vcmp.lt.s32.totalorder %v4901_v42, 4  ;;  %v1049_v31 = vsel %vm1045_vm7, %v1029_v41, %v4801_v10  ;;  %v1229_v53 = vadd.s32 1, %v3708_v55 }
 0x298   :  { %v1123_v24 = vand.u32 8388607, %v6274_v11  ;;  %v4937_v9 = vmul.u32.u64.low %v4875_v7, %v850_v36  ;;  %v4938_v25 = vmul.u32.u64.high %v4875_v7, %v850_v36, %v4937_v9  ;;  %v854_v14 = vsel %vm840_vm14, %v851_v5, %v853_v35 }
 0x299   :  { %v1135_v26 = vor.u32 %v1134_v52, %v1133_v17  ;;  %v4943_v61 = vor.u32 %v1137_v8, %v1136_v16  ;;  %v1141_v11 = vor.u32 %v1140_v28, %v1139_v47  ;;  %v1051_v43 = vsel %vm1047_vm10, %v4807_v27, %v1050_v2 }
 0x29a   :  { %vm1148_vm3 = vcmp.lt.s32.totalorder %v4901_v42, 1  ;;  %vm1150_vm6 = vcmp.lt.s32.totalorder %v4901_v42, 3  ;;  %v1157_v10 = vsel %vm1151_vm15, %v1144_v56, 920167782  ;;  %v823_v41 = vshrl.u32 %v6272_v58, %v4797_v1 }
 0x29b   :  { %v1124_v13 = vor.u32 8388608, %v1123_v24  ;;  %v1161_v52 = vsel %vm1151_vm15, %v1147_v30, 1326507024  ;;  %vm1230_vm7 = vcmp.gt.s32.totalorder %v1229_v53, 0  ;;  %v844_v28 = vsel %vm842_vm5, %v832_v51, 2102212464 }
 0x29c   :  { %v4959_v27 = vmul.u32.u64.low %v4875_v7, %v854_v14  ;;  %v4960_v33 = vmul.u32.u64.high %v4875_v7, %v854_v14, %v4959_v27  ;;  %v1231_v4 = vsel %vm1230_vm7, %v1229_v53, 0  ;;  %vm1149_vm9 = vcmp.lt.s32.totalorder %v4901_v42, 2 }
 0x29d   :  { %v1156_v36 = vsel %vm1148_vm3, %v1135_v26, %v4943_v61  ;;  %v1158_v24 = vsel %vm1150_vm6, %v1141_v11, %v1157_v10  ;;  %v1233_v1 = vand.u32 31, %v1231_v4  ;;  %v772_v30 = vclz %v4768_v21 }
 0x29e   :  { %v971_v17 = vadd.s32 536870912, %v4920_v46  ;;  %v1160_v51 = vsel %vm1148_vm3, %v4943_v61, %v1141_v11  ;;  %v1162_v16 = vsel %vm1150_vm6, %v1144_v56, %v1161_v52  ;;  %v1052_v55 = vsel %vm1046_vm8, %v1049_v31, %v1051_v43 }
 0x29f   :  { %v843_v8 = vsel %vm839_vm0, %v823_v41, %v4862_v48  ;;  %v845_v21 = vsel %vm841_vm13, %v4864_v3, %v844_v28  ;;  %v4983_v47 = vshll.u32 %v1124_v13, 8  ;;  %v4987_v5 = vadd.s32 %v4536_v60, %v4529_v49 }
 0x2a0   :  { %v6275_v35 = vclz %v4740_v38  ;;  %v1071_v37 = vadd.s32 1, %v4879_v59  ;;  %v1159_v2 = vsel %vm1149_vm9, %v1156_v36, %v1158_v24  ;;  %v6276_v48 = vclz %v4743_v63 }
 0x2a1   :  { %vm1070_vm8 = vc.u32 %v4894_v45, %v4878_v44  ;;  %v1163_v49 = vsel %vm1149_vm9, %v1160_v51, %v1162_v16  ;;  %v5004_v60 = vsub.s32 32, %v1233_v1  ;;  %v5006_v38 = vadd.s32 4294967294, %v772_v30 }
 0x2a2   :  { %v4991_v56 = vadd.s32 4294967294, %v6275_v35  ;;  %v4998_v31 = vadd.s32 4294967294, %v6276_v48  ;;  %v5008_v3 = vshrl.u32 %v971_v17, 30  ;;  %v1068_v53 = vmul.u32 %v4799_v57, %v1052_v55  ;;  %v5040_v17 = vpop.permute.xlu1 %2631 }
 0x2a3   :  { %v846_v14 = vsel %vm840_vm14, %v843_v8, %v845_v21  ;;  %v865_v63 = vadd.s32 1, %v4938_v25  ;;  %v1132_v43 = vshrl.u32 %v6272_v58, %v4870_v39  ;;  %v1072_v13 = vsel %vm1070_vm8, %v1071_v37, %v4879_v59 }
 0x2a4   :  { %v5017_v10 = vmul.u32.u64.low %v4983_v47, %v1159_v2  ;;  %v5018_v41 = vmul.u32.u64.high %v4983_v47, %v1159_v2, %v5017_v10  ;;  %vm864_vm10 = vc.u32 %v4960_v33, %v4937_v9  ;;  %v862_v50 = vmul.u32 %v4875_v7, %v846_v14 }
 0x2a5   :  { %v5025_v57 = vmul.u32.u64.low %v4983_v47, %v1163_v49  ;;  %v5026_v52 = vmul.u32.u64.high %v4983_v47, %v1163_v49, %v5025_v57  ;;  %v6225_v28 = vand.u32 2147483647, %v4838_v54  ;;  %v1248_v39 = vshll.u32 %v6271_v40, %v1233_v1 }
 0x2a6   :  { %v1249_v27 = vshrl.u32 %v6263_v34, %v5004_v60  ;;  %v1153_v36 = vsel %vm1151_vm15, %v1141_v11, 2102212464  ;;  %v5035_v59 = vshrl.u32 %v1231_v4, 5  ;;  %v1245_v24 = vshll.u32 %v6268_v22, %v1233_v1  ;;  %v2283_v57 = vpop.permute.xlu0 %2282 }
 0x2a7   :  { %v1246_v30 = vshrl.u32 %v6271_v40, %v5004_v60  ;;  %vm3687_vm11 = vcmp.lt.s32.totalorder %v4991_v56, 0  ;;  %v973_v7 = vshll.u32 %v5008_v3, 30  ;;  %v5044_v51 = vadd.s32 %v1072_v13, %v1068_v53  ;;  %v2285_v13 = vpop.permute.xlu1 %2284 }
 0x2a8   :  { %v866_v16 = vsel %vm864_vm10, %v865_v63, %v4938_v25  ;;  %v1152_v11 = vsel %vm1148_vm3, %v1132_v43, %v1135_v26  ;;  %v1239_v4 = vshll.u32 %v6266_v0, %v1233_v1  ;;  %v1240_v55 = vshrl.u32 %v6267_v6, %v5004_v60 }
 0x2a9   :  { %v1242_v8 = vshll.u32 %v6267_v6, %v1233_v1  ;;  %v1243_v21 = vshrl.u32 %v6268_v22, %v5004_v60  ;;  %v1154_v35 = vsel %vm1150_vm6, %v4943_v61, %v1153_v36  ;;  %v1236_v37 = vshll.u32 %v6272_v58, %v1233_v1 }
 0x2aa   :  { %v1237_v25 = vshrl.u32 %v6266_v0, %v5004_v60  ;;  %v1250_v26 = vor.u32 %v1249_v27, %v1248_v39  ;;  %v5061_v2 = vadd.s32 %v866_v16, %v862_v50  ;;  %v1226_v48 = vand.u32 8388607, %v6225_v28 }
 0x2ab   :  { %v1247_v49 = vor.u32 %v1246_v30, %v1245_v24  ;;  %vm1254_vm5 = vcmp.lt.s32.totalorder %v5035_v59, 4  ;;  %vm3691_vm12 = vcmp.lt.s32.totalorder %v5006_v38, 0  ;;  %v5068_v53 = vsub.s32 %v4920_v46, %v973_v7 }
 0x2ac   :  { %v1074_v61 = vadd.s32 536870912, %v5044_v51  ;;  %v1174_v1 = vadd.s32 1, %v5018_v41  ;;  %v1155_v14 = vsel %vm1149_vm9, %v1152_v11, %v1154_v35  ;;  %vm1173_vm0 = vc.u32 %v5026_v52, %v5017_v10 }
 0x2ad   :  { %v5076_v63 = vor.u32 %v1240_v55, %v1239_v4  ;;  %v1244_v43 = vor.u32 %v1243_v21, %v1242_v8  ;;  %v5078_v50 = vor.u32 %v1237_v25, %v1236_v37  ;;  %vm1251_vm13 = vcmp.lt.s32.totalorder %v5035_v59, 1 }
 0x2ae   :  { %vm1253_vm14 = vcmp.lt.s32.totalorder %v5035_v59, 3  ;;  %v1264_v46 = vsel %vm1254_vm5, %v1250_v26, 1326507024  ;;  %v868_v42 = vadd.s32 536870912, %v5061_v2  ;;  %v1227_v39 = vor.u32 8388608, %v1226_v48  ;;  %v2287_v48 = vpop.permute.xlu0 %2286 }
 0x2af   :  { %v1260_v27 = vsel %vm1254_vm5, %v1247_v49, 920167782  ;;  %v1325_v36 = vand.u32 2139095040, %v4813_v20  ;;  %v1171_v24 = vmul.u32 %v4983_v47, %v1155_v14  ;;  %v1175_v30 = vsel %vm1173_vm0, %v1174_v1, %v5018_v41 }
 0x2b0   :  { %vm1252_vm15 = vcmp.lt.s32.totalorder %v5035_v59, 2  ;;  %v2299_v7 = vsel %vm2257_vm4, %v2285_v13, %v4324_v62  ;;  %v1263_v16 = vsel %vm1251_vm13, %v5076_v63, %v1244_v43  ;;  %v1265_v11 = vsel %vm1253_vm14, %v1247_v49, %v1264_v46 }
 0x2b1   :  { %v1326_v4 = vshrl.u32 %v1325_v36, 23  ;;  %v2307_v55 = vsub.f32 0.0, %v2299_v7  ;;  %2358 = vrot.lane.b32.xlu1 %v2299_v7, %s4164_s3  ;;  %v5099_v47 = vshrl.u32 %v1074_v61, 30  ;;  %v1259_v41 = vsel %vm1251_vm13, %v5078_v50, %v5076_v63 }
 0x2b2   :  { %v1261_v8 = vsel %vm1253_vm14, %v1244_v43, %v1260_v27  ;;  %v2298_v21 = vsel %vm2257_vm4, %v2283_v57, %v4353_v29  ;;  %v5112_v35 = vsel %vm3687_vm11, 0, %v4991_v56  ;;  %v5114_v37 = vshrl.u32 %v868_v42, 30 }
 0x2b3   :  { %v5116_v25 = vshll.u32 %v1227_v39, 8  ;;  %v3712_v26 = vadd.s32 4294967169, %v1326_v4  ;;  %2326 = vrot.lane.b32.xlu0 %v2307_v55, %s4165_s8  ;;  %v673_v49 = vsub.s32 32, %v5112_v35  ;;  %v5122_v1 = vadd.s32 %v1175_v30, %v1171_v24 }
 0x2b4   :  { %v1266_v56 = vsel %vm1252_vm15, %v1263_v16, %v1265_v11  ;;  %vm3751_vm3 = vcmp.lt.s32.totalorder %v4998_v31, 0  ;;  %v5130_v14 = vsel %vm3691_vm12, 0, %v5006_v38  ;;  %v1262_v13 = vsel %vm1252_vm15, %v1259_v41, %v1261_v8 }
 0x2b5   :  { %2356 = vrot.lane.b32.xlu1 %v2298_v21, %s4164_s3  ;;  %v2306_v57 = vsub.f32 0.0, %v2298_v21  ;;  %v976_v46 = vsub.s32 0, %v5068_v53  ;;  %v1076_v42 = vshll.u32 %v5099_v47, 30  ;;  %v1332_v39 = vadd.s32 1, %v3712_v26 }
 0x2b6   :  { %v2300_v27 = vsel %vm2257_vm4, %v2287_v48, %v4328_v12  ;;  %v870_v36 = vshll.u32 %v5114_v37, 30  ;;  %v1235_v38 = vshrl.u32 %v6272_v58, %v5004_v60  ;;  %v1177_v7 = vadd.s32 536870912, %v5122_v1  ;;  %v2289_v48 = vpop.permute.xlu1 %2288 }
 0x2b7   :  { %v5143_v24 = vmul.u32.u64.low %v5116_v25, %v1266_v56  ;;  %v5144_v30 = vmul.u32.u64.high %v5116_v25, %v1266_v56, %v5143_v24  ;;  %2324 = vrot.lane.b32.xlu0 %v2306_v57, %s4165_s8  ;;  %v5149_v16 = vmul.u32.u64.low %v5116_v25, %v1262_v13  ;;  %v5150_v11 = vmul.u32.u64.high %v5116_v25, %v1262_v13, %v5149_v16 }
 0x2b8   :  { %vm1333_vm6 = vcmp.gt.s32.totalorder %v1332_v39, 0  ;;  %v677_v4 = vsub.s32 4294967266, %v5112_v35  ;;  %v1256_v55 = vsel %vm1254_vm5, %v1244_v43, 2102212464  ;;  %v2308_v41 = vsub.f32 0.0, %v2300_v27 }
 0x2b9   :  { %v1334_v60 = vsel %vm1333_vm6, %v1332_v39, 0  ;;  %2360 = vrot.lane.b32.xlu1 %v2300_v27, %s4164_s3  ;;  %v5160_v8 = vsel %vm3751_vm3, 0, %v4998_v31  ;;  %v780_v21 = vsub.s32 4294967266, %v5130_v14  ;;  %v2633_v56 = vsel %vm2257_vm4, %v5040_v17, %v4348_v15 }
 0x2ba   :  { %v1336_v26 = vand.u32 31, %v1334_v60  ;;  %v5167_v13 = vmin.u32 %v976_v46, %v5068_v53  ;;  %v5170_v43 = vsub.s32 %v5044_v51, %v1076_v42  ;;  %v5173_v57 = vsub.s32 %v5061_v2, %v870_v36 }
 0x2bb   :  { %v6224_v31 = vand.u32 2147483647, %v4813_v20  ;;  %2328 = vrot.lane.b32.xlu0 %v2308_v41, %s4165_s8  ;;  %v5177_v39 = vshrl.u32 %v1177_v7, 30  ;;  %v1255_v27 = vsel %vm1251_vm13, %v1235_v38, %v5078_v50  ;;  %v1257_v17 = vsel %vm1253_vm14, %v5076_v63, %v1256_v55  ;;  %v2291_v7 = vpop.permute.xlu0 %2290 }
 0x2bc   :  { %v5185_v46 = vsub.s32 32, %v1336_v26  ;;  %v1339_v51 = vshll.u32 %v6272_v58, %v1336_v26  ;;  %v1342_v2 = vshll.u32 %v6266_v0, %v1336_v26  ;;  %v2634_v42 = vsub.f32 0.0, %v2633_v56 }
 0x2bd   :  { %2640 = vrot.lane.b32.xlu1 %v2633_v56, %s4164_s3  ;;  %v2301_v36 = vsel %vm2257_vm4, %v2289_v48, %v4358_v18  ;;  %v5192_v24 = vshrl.u32 %v1334_v60, 5  ;;  %v1345_v38 = vshll.u32 %v6267_v6, %v1336_v26  ;;  %v1348_v63 = vshll.u32 %v6268_v22, %v1336_v26 }
 0x2be   :  { %v1340_v50 = vshrl.u32 %v6266_v0, %v5185_v46  ;;  %v1258_v55 = vsel %vm1252_vm15, %v1255_v27, %v1257_v17  ;;  %v1329_v41 = vand.u32 8388607, %v6224_v31  ;;  %v1343_v56 = vshrl.u32 %v6267_v6, %v5185_v46  ;;  %v45_v31 = vld [vmem:[%s6161_s4 + $0x18] sm:$0xff] }
 0x2bf   :  { %v1346_v60 = vshrl.u32 %v6268_v22, %v5185_v46  ;;  %2636 = vrot.lane.b32.xlu0 %v2634_v42, %s4165_s8  ;;  %vm1276_vm7 = vc.u32 %v5144_v30, %v5149_v16  ;;  %v1277_v0 = vadd.s32 1, %v5150_v11  ;;  %v1349_v59 = vshrl.u32 %v6271_v40, %v5185_v46  ;;  %v46_v42 = vld [vmem:[%s6161_s4 + $0x20] sm:$0xff] }
 0x2c0   :  { %v2309_v48 = vsub.f32 0.0, %v2301_v36  ;;  %v5212_v27 = vor.u32 %v1340_v50, %v1339_v51  ;;  %v5214_v17 = vor.u32 %v1343_v56, %v1342_v2  ;;  %v1351_v6 = vshll.u32 %v6271_v40, %v1336_v26  ;;  %3890 = vmatprep.subr.mxu0 %v46_v42  ;;  %v44_v50 = vld [vmem:[%s6161_s4 + $0x10] sm:$0xff] }
 0x2c1   :  { %2362 = vrot.lane.b32.xlu1 %v2301_v36, %s4164_s3  ;;  %v2302_v22 = vsel %vm2257_vm4, %v2291_v7, %v4332_v19  ;;  %v5226_v28 = vor.u32 %v1346_v60, %v1345_v38  ;;  %v1350_v51 = vor.u32 %v1349_v59, %v1348_v63  ;;  %v1352_v2 = vshrl.u32 %v6263_v34, %v5185_v46  ;;  %v2293_v36 = vpop.permute.xlu1 %2292  ;;  %v6277_v59 = vld [vmem:[#allocation11_spill] sm:$0xff]  ;;  %v6305_v19 = vld [vmem:[#allocation16_spill] sm:$0xff] }
 0x2c2   :  { %vm1354_vm9 = vcmp.lt.s32.totalorder %v5192_v24, 1  ;;  %v1274_v40 = vmul.u32 %v5116_v25, %v1258_v55  ;;  %v1330_v26 = vor.u32 8388608, %v1329_v41  ;;  %vm1356_vm8 = vcmp.lt.s32.totalorder %v5192_v24, 3  ;;  %3891 = vmatpush3.msra.mxu0 %v46_v42  ;;  %v2295_v42 = vpop.permute.xlu0 %2294 }
 0x2c3   :  { %vm1357_vm10 = vcmp.lt.s32.totalorder %v5192_v24, 4  ;;  %2330 = vrot.lane.b32.xlu0 %v2309_v48, %s4165_s8  ;;  %v1079_v34 = vsub.s32 0, %v5170_v43  ;;  %v1179_v38 = vshll.u32 %v5177_v39, 30  ;;  %v1278_v25 = vsel %vm1276_vm7, %v1277_v0, %v5150_v11  ;;  %3892 = vmatprep.subr.mxu0 %v45_v31  ;;  %v43_v11 = vld [vmem:[%s6161_s4 + $0x8] sm:$0xff] }
 0x2c4   :  { %v1353_v63 = vor.u32 %v1352_v2, %v1351_v6  ;;  %vm1355_vm11 = vcmp.lt.s32.totalorder %v5192_v24, 2  ;;  %v1362_v7 = vsel %vm1354_vm9, %v5212_v27, %v5214_v17  ;;  %v1363_v55 = vsel %vm1357_vm10, %v1350_v51, 920167782  ;;  %3893 = vmatpush3.msra.mxu0 %v45_v31 }
 0x2c5   :  { %2364 = vrot.lane.b32.xlu1 %v2302_v22, %s4164_s3  ;;  %v2310_v41 = vsub.f32 0.0, %v2302_v22  ;;  %v978_v56 = vclz %v5167_v13  ;;  %v873_v60 = vsub.s32 0, %v5173_v57  ;;  %v1364_v0 = vsel %vm1356_vm8, %v5226_v28, %v1363_v55  ;;  %3894 = vmatprep.subr.mxu0 %v44_v50 }
 0x2c6   :  { %v2303_v48 = vsel %vm2257_vm4, %v2293_v36, %v6277_v59  ;;  %v5262_v6 = vadd.s32 %v1278_v25, %v1274_v40  ;;  %v1366_v31 = vsel %vm1354_vm9, %v5214_v17, %v5226_v28  ;;  %v1367_v13 = vsel %vm1357_vm10, %v1353_v63, 1326507024  ;;  %3895 = vmatpush3.msra.mxu0 %v44_v50 }
 0x2c7   :  { %v5270_v22 = vshll.u32 %v1330_v26, 8  ;;  %2332 = vrot.lane.b32.xlu0 %v2310_v41, %s4165_s8  ;;  %v675_v2 = vshrl.u32 %v4987_v5, %v673_v49  ;;  %v3701_v40 = vmin.u32 %v1079_v34, %v5170_v43  ;;  %v1365_v36 = vsel %vm1355_vm11, %v1362_v7, %v1364_v0  ;;  %3896 = vmatprep.subr.mxu0 %v43_v11  ;;  %v6278_v34 = vld [vmem:[#allocation9_spill] sm:$0xff] }
 0x2c8   :  { %v1368_v25 = vsel %vm1356_vm8, %v1350_v51, %v1367_v13  ;;  %v678_v26 = vadd.s32 127, %v677_v4  ;;  %v5284_v63 = vsub.s32 %v5122_v1, %v1179_v38  ;;  %v2311_v55 = vsub.f32 0.0, %v2303_v48  ;;  %3897 = vmatpush3.msra.mxu0 %v43_v11  ;;  %v2297_v11 = vpop.permute.xlu1 %2296 }
 0x2c9   :  { %v1369_v50 = vsel %vm1355_vm11, %v1366_v31, %v1368_v25  ;;  %2366 = vrot.lane.b32.xlu1 %v2303_v48, %s4164_s3  ;;  %v2497_v5 = vsub.s32 4294967266, %v5160_v8  ;;  %v781_v49 = vadd.s32 127, %v780_v21  ;;  %v3693_v51 = vmin.u32 %v873_v60, %v5173_v57  ;;  %v6280_v25 = vld [vmem:[#allocation22_spill] sm:$0xff] }
 0x2ca   :  { %v2304_v4 = vsel %vm2257_vm4, %v2295_v42, %v6278_v34  ;;  %v6279_v7 = vmov 0.0   ;;  %v3698_v1 = vadd.s32 4294967294, %v978_v56  ;;  %v1280_v38 = vadd.s32 536870912, %v5262_v6 }
 0x2cb   :  { %3924 = vmatprep.subr.mxu0 %v6279_v7  ;;  %v5298_v41 = vmul.u32.u64.low %v5270_v22, %v1365_v36  ;;  %v5299_v0 = vmul.u32.u64.high %v5270_v22, %v1365_v36, %v5298_v41  ;;  %2334 = vrot.lane.b32.xlu0 %v2311_v55, %s4165_s8  ;;  %v1081_v48 = vclz %v3701_v40  ;;  %v1338_v21 = vshrl.u32 %v6272_v58, %v5185_v46  ;;  %v6281_v55 = vld [vmem:[#allocation21_spill] sm:$0xff]  ;;  %v6282_v46 = vld [vmem:[#allocation12_spill] sm:$0xff] }
 0x2cc   :  { %v5306_v60 = vmul.u32.u64.low %v5270_v22, %v1369_v50  ;;  %v5307_v31 = vmul.u32.u64.high %v5270_v22, %v1369_v50, %v5306_v60  ;;  %v679_v13 = vshll.u32 %v678_v26, 23  ;;  %v1182_v56 = vsub.s32 0, %v5284_v63 }
 0x2cd   :  { %v1359_v42 = vsel %vm1357_vm10, %v5226_v28, 2102212464  ;;  %2368 = vrot.lane.b32.xlu1 %v2304_v4, %s4164_s3  ;;  %v2312_v36 = vsub.f32 0.0, %v2304_v4  ;;  %v760_v40 = vadd.s32 %v6281_v55, %v6280_v25  ;;  %v776_v61 = vsub.s32 32, %v5130_v14  ;;  %v6287_v55 = vld [vmem:[#allocation19_spill] sm:$0xff] }
 0x2ce   :  { %v875_v58 = vclz %v3693_v51  ;;  %v2305_v50 = vsel %vm2257_vm4, %v2297_v11, %v6282_v46  ;;  %v6283_v26 = vshll.u32 %v4700_v23, %v5112_v35  ;;  %v2498_v7 = vadd.s32 127, %v2497_v5  ;;  %v6284_v5 = vld [vmem:[#allocation28_spill] sm:$0xff] }
 0x2cf   :  { %vm3699_vm5 = vcmp.lt.s32.totalorder %v3698_v1, 0  ;;  %v5322_v34 = vshrl.u32 %v1280_v38, 30  ;;  %2336 = vrot.lane.b32.xlu0 %v2312_v36, %s4165_s8  ;;  %v782_v28 = vshll.u32 %v781_v49, 23  ;;  %v3702_v4 = vadd.s32 4294967294, %v1081_v48 }
 0x2d0   :  { %v676_v60 = vor.u32 %v675_v2, %v6283_v26  ;;  %v1358_v25 = vsel %vm1354_vm9, %v1338_v21, %v5212_v27  ;;  %v1360_v51 = vsel %vm1356_vm8, %v5214_v17, %v1359_v42  ;;  %v680_v11 = vor.u32 4788187, %v679_v13  ;;  %v6286_v42 = vld [vmem:[#allocation20_spill] sm:$0xff] }
 0x2d1   :  { %v2493_v23 = vsub.s32 32, %v5160_v8  ;;  %v3705_v35 = vmin.u32 %v1182_v56, %v5284_v63  ;;  %v2313_v2 = vsub.f32 0.0, %v2305_v50  ;;  %2370 = vrot.lane.b32.xlu1 %v2305_v50, %s4164_s3  ;;  %v777_v49 = vshll.u32 %v6284_v5, %v5130_v14  ;;  %v6285_v56 = vld [vmem:[#allocation13_spill] sm:$0xff]  ;;  %v6288_v5 = vld [vmem:[#allocation27_spill] sm:$0xff] }
 0x2d2   :  { %v778_v38 = vshrl.u32 %v760_v40, %v776_v61  ;;  %v5337_v48 = vsel %vm3699_vm5, 0, %v3698_v1  ;;  %v3694_v27 = vadd.s32 4294967294, %v875_v58  ;;  %v2499_v21 = vshll.u32 %v2498_v7, 23 }
 0x2d3   :  { %v1282_v36 = vshll.u32 %v5322_v34, 30  ;;  %v1361_v17 = vsel %vm1355_vm11, %v1358_v25, %v1360_v51  ;;  %v1380_v13 = vadd.s32 1, %v5299_v0  ;;  %2338 = vrot.lane.b32.xlu0 %v2313_v2, %s4165_s8  ;;  %vm603_vm4 = vcmp.lt.s32.totalorder %v6285_v56, 0 }
 0x2d4   :  { %v2477_v14 = vadd.s32 %v6287_v55, %v6286_v42  ;;  %v783_v61 = vor.u32 4788187, %v782_v28  ;;  %vm3703_vm12 = vcmp.lt.s32.totalorder %v3702_v4, 0  ;;  %vm1379_vm0 = vc.u32 %v5307_v31, %v5298_v41  ;;  %v6290_v55 = vld [vmem:[#allocation29_spill] sm:$0xff] }
 0x2d5   :  { %v681_v7 = vand.u32 2147483647, %v680_v11  ;;  %v683_v1 = vcvt.s32.f32 %v676_v60  ;;  %v986_v40 = vsub.s32 4294967266, %v5337_v48  ;;  %v1184_v24 = vclz %v3705_v35  ;;  %v6289_v60 = vld [vmem:[#allocation30_spill] sm:$0xff] }
 0x2d6   :  { %v2495_v58 = vshrl.u32 %v2477_v14, %v2493_v23  ;;  %v779_v50 = vor.u32 %v778_v38, %v777_v49  ;;  %vm3695_vm13 = vcmp.lt.s32.totalorder %v3694_v27, 0  ;;  %v1377_v26 = vmul.u32 %v5270_v22, %v1361_v17  ;;  %v6294_v17 = vld [vmem:[#allocation24_spill] sm:$0xff] }
 0x2d7   :  { %v2500_v25 = vor.u32 4788187, %v2499_v21  ;;  %v1084_v51 = vsel %vm3703_vm12, 0, %v3702_v4  ;;  %v5352_v2 = vsub.s32 %v5262_v6, %v1282_v36  ;;  %v1381_v28 = vsel %vm1379_vm0, %v1380_v13, %v5299_v0 }
 0x2d8   :  { %v2494_v42 = vshll.u32 %v6288_v5, %v5160_v8  ;;  %v784_v11 = vand.u32 2147483647, %v783_v61  ;;  %v966_v46 = vadd.s32 %v6290_v55, %v6289_v60  ;;  %v982_v23 = vsub.s32 32, %v5337_v48 }
 0x2d9   :  { %v6291_v35 = vand.u32 2147483647, %v6285_v56  ;;  %v987_v4 = vadd.s32 127, %v986_v40  ;;  %v5366_v6 = vsel %vm3695_vm13, 0, %v3694_v27  ;;  %v3706_v49 = vadd.s32 4294967294, %v1184_v24 }
 0x2da   :  { %v2496_v0 = vor.u32 %v2495_v58, %v2494_v42  ;;  %v786_v38 = vcvt.s32.f32 %v779_v50  ;;  %v1089_v21 = vsub.s32 4294967266, %v1084_v51  ;;  %v5368_v8 = vadd.s32 %v1381_v28, %v1377_v26  ;;  %v6295_v50 = vld [vmem:[#allocation14_spill] sm:$0xff] }
 0x2db   :  { %vm5362_vm14 = vcmp.le.f32.partialorder %v6291_v35, 0.7853982  ;;  %v684_v36 = vmul.f32 %v683_v1, %v681_v7  ;;  %v687_v13 = vsub.s32 4, %v6294_v17  ;;  %v2501_v14 = vand.u32 2147483647, %v2500_v25 }
 0x2dc   :  { %v1285_v61 = vsub.s32 0, %v5352_v2  ;;  %v787_v5 = vmul.f32 %v786_v38, %v784_v11  ;;  %v983_v60 = vshll.u32 %v5068_v53, %v5337_v48  ;;  %v984_v55 = vshrl.u32 %v966_v46, %v982_v23  ;;  %v6296_v46 = vld [vmem:[#allocation15_spill] sm:$0xff] }
 0x2dd   :  { %v883_v27 = vsub.s32 4294967266, %v5366_v6  ;;  %v988_v40 = vshll.u32 %v987_v4, 23  ;;  %v1069_v24 = vadd.s32 %v4878_v44, %v4894_v45  ;;  %v1085_v58 = vsub.s32 32, %v1084_v51 }
 0x2de   :  { %vm3707_vm15 = vcmp.lt.s32.totalorder %v3706_v49, 0  ;;  %vm2423_vm3 = vcmp.lt.s32.totalorder %v6295_v50, 0  ;;  %v2503_v7 = vcvt.s32.f32 %v2496_v0  ;;  %v1090_v1 = vadd.s32 127, %v1089_v21 }
 0x2df   :  { %v1383_v26 = vadd.s32 536870912, %v5368_v8  ;;  %v685_v25 = vxor.u32 2147483648, %v684_v36  ;;  %v688_v53 = vsel %vm603_vm4, %v687_v13, %v6294_v17  ;;  %vm706_vm6 = vcmp.lt.s32.totalorder %v6296_v46, 0 }
 0x2e0   :  { %v3709_v48 = vmin.u32 %v1285_v61, %v5352_v2  ;;  %v2504_v28 = vmul.f32 %v2503_v7, %v2501_v14  ;;  %v6297_v44 = vand.u32 2147483647, %v6296_v46  ;;  %v788_v42 = vxor.u32 2147483648, %v787_v5  ;;  %v6303_v7 = vld [vmem:[#allocation25_spill] sm:$0xff] }
 0x2e1   :  { %v884_v11 = vadd.s32 127, %v883_v27  ;;  %v5390_v23 = vsel %vm3707_vm15, 0, %v3706_v49  ;;  %v6300_v35 = vand.u32 2147483647, %v6295_v50  ;;  %v985_v0 = vor.u32 %v984_v55, %v983_v60 }
 0x2e2   :  { %vm5386_vm7 = vcmp.le.f32.partialorder %v6297_v44, 0.7853982  ;;  %v989_v38 = vor.u32 4788187, %v988_v40  ;;  %v1086_v21 = vshll.u32 %v5170_v43, %v1084_v51  ;;  %v1087_v17 = vshrl.u32 %v1069_v24, %v1085_v58  ;;  %v6304_v40 = vld [vmem:[#allocation26_spill] sm:$0xff] }
 0x2e3   :  { %vm5394_vm9 = vcmp.le.f32.partialorder %v6300_v35, 0.7853982  ;;  %v1091_v13 = vshll.u32 %v1090_v1, 23  ;;  %v863_v14 = vadd.s32 %v4937_v9, %v4960_v33  ;;  %v879_v61 = vsub.s32 32, %v5366_v6 }
 0x2e4   :  { %v5402_v27 = vshrl.u32 %v1383_v26, 30  ;;  %v5406_v49 = vsel %vm5362_vm14, 0, %v688_v53  ;;  %v2507_v44 = vsub.s32 4, %v6303_v7  ;;  %v1192_v60 = vsub.s32 4294967266, %v5390_v23 }
 0x2e5   :  { %v1287_v55 = vclz %v3709_v48  ;;  %v686_v43 = vsel %vm603_vm4, %v685_v25, %v684_v36  ;;  %v2505_v51 = vxor.u32 2147483648, %v2504_v28  ;;  %v790_v24 = vsub.s32 4, %v6304_v40 }
 0x2e6   :  { %v885_v9 = vshll.u32 %v884_v11, 23  ;;  %v789_v33 = vsel %vm706_vm6, %v788_v42, %v787_v5  ;;  %v990_v58 = vand.u32 2147483647, %v989_v38  ;;  %v992_v1 = vcvt.s32.f32 %v985_v0 }
 0x2e7   :  { %v1088_v26 = vor.u32 %v1087_v17, %v1086_v21  ;;  %v1092_v53 = vor.u32 4788187, %v1091_v13  ;;  %v880_v35 = vshll.u32 %v5173_v57, %v5366_v6  ;;  %v881_v59 = vshrl.u32 %v863_v14, %v879_v61 }
 0x2e8   :  { %v1385_v48 = vshll.u32 %v5402_v27, 30  ;;  %vm912_vm8 = vcmp.lt.s32.totalorder %v6305_v19, 0  ;;  %v1172_v36 = vadd.s32 %v5017_v10, %v5026_v52  ;;  %v1188_v25 = vsub.s32 32, %v5390_v23 }
 0x2e9   :  { %v1193_v11 = vadd.s32 127, %v1192_v60  ;;  %v3710_v18 = vadd.s32 4294967294, %v1287_v55  ;;  %v689_v5 = vsel %vm5362_vm14, %v6285_v56, %v686_v43  ;;  %v5426_v42 = vand.u32 3, %v5406_v49 }
 0x2ea   :  { %v2508_v57 = vsel %vm2423_vm3, %v2507_v44, %v6303_v7  ;;  %v886_v6 = vor.u32 4788187, %v885_v9  ;;  %v2506_v0 = vsel %vm2423_vm3, %v2505_v51, %v2504_v28  ;;  %v791_v10 = vsel %vm706_vm6, %v790_v24, %v6304_v40 }
 0x2eb   :  { %v792_v52 = vsel %vm5386_vm7, %v6296_v46, %v789_v33  ;;  %v993_v22 = vmul.f32 %v992_v1, %v990_v58  ;;  %v1093_v38 = vand.u32 2147483647, %v1092_v53  ;;  %v1095_v21 = vcvt.s32.f32 %v1088_v26  ;;  %v6313_v53 = vld [vmem:[#allocation18_spill] sm:$0xff] }
 0x2ec   :  { %v882_v17 = vor.u32 %v881_v59, %v880_v35  ;;  %v5440_v13 = vsub.s32 %v5368_v8, %v1385_v48  ;;  %v6306_v14 = vand.u32 2147483647, %v6305_v19  ;;  %v1189_v28 = vshll.u32 %v5284_v63, %v5390_v23  ;;  %v6309_v59 = vld [vmem:[#allocation17_spill] sm:$0xff] }
 0x2ed   :  { %v1190_v7 = vshrl.u32 %v1172_v36, %v1188_v25  ;;  %v1194_v44 = vshll.u32 %v1193_v11, 23  ;;  %vm3711_vm11 = vcmp.lt.s32.totalorder %v3710_v18, 0  ;;  %4050 = vcosq.f32 %v689_v5 }
 0x2ee   :  { %vm5444_vm10 = vcmp.le.f32.partialorder %v6306_v14, 0.7853982  ;;  %v5452_v60 = vsel %vm5394_vm9, 0, %v2508_v57  ;;  %vm1015_vm5 = vcmp.lt.s32.totalorder %v6309_v59, 0  ;;  %v887_v8 = vand.u32 2147483647, %v886_v6 }
 0x2ef   :  { %v2509_v55 = vsel %vm5394_vm9, %v6295_v50, %v2506_v0  ;;  %v5460_v43 = vsel %vm5386_vm7, 0, %v791_v10  ;;  %4052 = vcosq.f32 %v792_v52  ;;  %v996_v63 = vsub.s32 4, %v5008_v3 }
 0x2f0   :  { %v1096_v23 = vmul.f32 %v1095_v21, %v1093_v38  ;;  %v889_v51 = vcvt.s32.f32 %v882_v17  ;;  %v1290_v40 = vsel %vm3711_vm11, 0, %v3710_v18  ;;  %v1388_v24 = vsub.s32 0, %v5440_v13 }
 0x2f1   :  { %4054 = vsinq.f32 %v792_v52  ;;  %v994_v9 = vxor.u32 2147483648, %v993_v22  ;;  %v1191_v33 = vor.u32 %v1190_v7, %v1189_v28  ;;  %v1195_v58 = vor.u32 4788187, %v1194_v44 }
 0x2f2   :  { %4056 = vsinq.f32 %v689_v5  ;;  %v5465_v4 = vand.u32 3, %v5452_v60  ;;  %v6310_v45 = vand.u32 2147483647, %v6309_v59  ;;  %v890_v26 = vmul.f32 %v889_v51, %v887_v8 }
 0x2f3   :  { %4058 = vcosq.f32 %v2509_v55  ;;  %v5474_v18 = vand.u32 3, %v5460_v43  ;;  %vm809_vm12 = vcmp.lt.s32.totalorder %v6313_v53, 0  ;;  %v1295_v35 = vsub.s32 4294967266, %v1290_v40 }
 0x2f4   :  { %vm5469_vm4 = vcmp.le.f32.partialorder %v6310_v45, 0.7853982  ;;  %v997_v48 = vsel %vm912_vm8, %v996_v63, %v5008_v3  ;;  %v1097_v36 = vxor.u32 2147483648, %v1096_v23  ;;  %v1099_v25 = vsub.s32 4, %v5099_v47 }
 0x2f5   :  { %v3713_v11 = vmin.u32 %v1388_v24, %v5440_v13  ;;  %v995_v5 = vsel %vm912_vm8, %v994_v9, %v993_v22  ;;  %v893_v57 = vsub.s32 4, %v5114_v37  ;;  %v1196_v6 = vand.u32 2147483647, %v1195_v58 }
 0x2f6   :  { %v1198_v0 = vcvt.s32.f32 %v1191_v33  ;;  %v891_v10 = vxor.u32 2147483648, %v890_v26  ;;  %v1202_v52 = vsub.s32 4, %v5177_v39  ;;  %v1275_v38 = vadd.s32 %v5149_v16, %v5144_v30 }
 0x2f7   :  { %v1291_v21 = vsub.s32 32, %v1290_v40  ;;  %4060 = vsinq.f32 %v2509_v55  ;;  %v6314_v3 = vand.u32 2147483647, %v6313_v53  ;;  %vm1118_vm13 = vcmp.lt.s32.totalorder %v4663_v32, 0 }
 0x2f8   :  { %v1296_v22 = vadd.s32 127, %v1295_v35  ;;  %v998_v14 = vsel %vm5444_vm10, %v6305_v19, %v995_v5  ;;  %v5500_v28 = vsel %vm5444_vm10, 0, %v997_v48  ;;  %v1098_v30 = vsel %vm1015_vm5, %v1097_v36, %v1096_v23 }
 0x2f9   :  { %vm5490_vm0 = vcmp.le.f32.partialorder %v6314_v3, 0.7853982  ;;  %v1390_v16 = vclz %v3713_v11  ;;  %v1100_v7 = vsel %vm1015_vm5, %v1099_v25, %v5099_v47  ;;  %v894_v44 = vsel %vm809_vm12, %v893_v57, %v5114_v37 }
 0x2fa   :  { %v6317_v8 = vand.u32 2147483647, %v4663_v32  ;;  %v1199_v61 = vmul.f32 %v1198_v0, %v1196_v6  ;;  %v892_v63 = vsel %vm809_vm12, %v891_v10, %v890_v26  ;;  %v1203_v23 = vsel %vm1118_vm13, %v1202_v52, %v5177_v39  ;;  %v5522_v24 = vpop.eup %4050  ;;  %v5707_v6 = vld [vmem:[%s6157_s0 + $0x30] sm:$0xff] }
 0x2fb   :  { %v1292_v47 = vshll.u32 %v5352_v2, %v1290_v40  ;;  %v1293_v51 = vshrl.u32 %v1275_v38, %v1291_v21  ;;  %4062 = vcosq.f32 %v998_v14  ;;  %v5525_v37 = vand.u32 3, %v5500_v28 }
 0x2fc   :  { %vm5512_vm14 = vcmp.le.f32.partialorder %v6317_v8, 0.7853982  ;;  %v1101_v9 = vsel %vm5469_vm4, %v6309_v59, %v1098_v30  ;;  %v1297_v33 = vshll.u32 %v1296_v22, 23  ;;  %v5530_v58 = vpop.eup %4052  ;;  %4064 = vsinq.f32 %v998_v14 }
 0x2fd   :  { %v5534_v39 = vsel %vm5469_vm4, 0, %v1100_v7  ;;  %v5538_v2 = vsel %vm5490_vm0, 0, %v894_v44  ;;  %v3714_v40 = vadd.s32 4294967294, %v1390_v16  ;;  %v895_v45 = vsel %vm5490_vm0, %v6313_v53, %v892_v63  ;;  %v4122_v44 = vld [vmem:[%s6157_s0] sm:$0xff]  ;;  %v4123_v63 = vld [vmem:[%s6157_s0 + $0x8] sm:$0xff] }
 0x2fe   :  { %v1200_v26 = vxor.u32 2147483648, %v1199_v61  ;;  %v5545_v35 = vsel %vm5512_vm14, 0, %v1203_v23  ;;  %v1305_v48 = vsub.s32 4, %v5322_v34  ;;  %v4055_v36 = vpop.eup %4054  ;;  %4066 = vcosq.f32 %v1101_v9 }
 0x2ff   :  { %vm1221_vm15 = vcmp.lt.s32.totalorder %v4838_v54, 0  ;;  %v1294_v1 = vor.u32 %v1293_v51, %v1292_v47  ;;  %v1622_v25 = vadd.s32 3, %v5460_v43  ;;  %v5550_v11 = vpop.eup %4056  ;;  %4068 = vsinq.f32 %v1101_v9 }
 0x300   :  { %v5553_v5 = vand.u32 3, %v5534_v39  ;;  %v6320_v57 = vand.u32 2147483647, %v4838_v54  ;;  %v1298_v0 = vor.u32 4788187, %v1297_v33  ;;  %v5561_v10 = vpop.eup %4058  ;;  %4070 = vsinq.f32 %v895_v45 }
 0x301   :  { %v5564_v52 = vand.u32 3, %v5538_v2  ;;  %v5567_v43 = vand.u32 3, %v5545_v35  ;;  %vm3715_vm6 = vcmp.lt.s32.totalorder %v3714_v40, 0  ;;  %v1201_v38 = vsel %vm1118_vm13, %v1200_v26, %v1199_v61 }
 0x302   :  { %vm5557_vm3 = vcmp.le.f32.partialorder %v6320_v57, 0.7853982  ;;  %v1306_v21 = vsel %vm1221_vm15, %v1305_v48, %v5322_v34  ;;  %v800_v3 = vxor.u32 2147483648, %v4055_v36  ;;  %v803_v17 = vxor.u32 2147483648, %v5530_v58  ;;  %v5619_v57 = vld [vmem:[%s6157_s0 + $0x20] sm:$0xff] }
 0x303   :  { %4072 = vcosq.f32 %v895_v45  ;;  %v1301_v22 = vcvt.s32.f32 %v1294_v1  ;;  %v5575_v14 = vand.u32 3, %v1622_v25  ;;  %v1299_v30 = vand.u32 2147483647, %v1298_v0 }
 0x304   :  { %v5577_v16 = vsel %vm3715_vm6, 0, %v3714_v40  ;;  %v4166_v7 = vmov 6   ;;  %vm2922_vm7 = vcmp.gt.f32.partialorder %v4122_v44, 0.5  ;;  %v5584_v34 = vpop.eup %4060  ;;  %v5589_v8 = vsel %vm5512_vm14, %v4663_v32, %v1201_v38 }
 0x305   :  { %4023 = vset.pattern.permute.xlu1 %v4166_v7  ;;  %4022 = vset.pattern.permute.xlu0 %v4166_v7  ;;  %v5593_v61 = vsel %vm5557_vm3, 0, %v1306_v21  ;;  %vm799_vm9 = vcmp.eq.s32.totalorder %v5474_v18, 0  ;;  %vm802_vm8 = vcmp.eq.s32.totalorder %v5474_v18, 2  ;;  %v6231_v55 = vxor.u32 2147483648, %v5550_v11 }
 0x306   :  { %2887 = vperm.xlu1 %4023, %v4123_v63   ;;  %2883 = vperm.xlu0 %4022, %v4122_v44   ;;  %v801_v23 = vsel %vm799_vm9, %v5530_v58, %v800_v3  ;;  %v804_v47 = vsel %vm802_vm8, %v803_v17, %v4055_v36  ;;  %v1398_v51 = vsub.s32 4294967266, %v5577_v16  ;;  %vm798_vm10 = vcmp.lt.s32.totalorder %v5474_v18, 2 }
 0x307   :  { %v6230_v9 = vxor.u32 2147483648, %v5522_v24  ;;  %v6232_v33 = vmov 0   ;;  %v1302_v45 = vmul.f32 %v1301_v22, %v1299_v30  ;;  %vm1625_vm11 = vcmp.eq.s32.totalorder %v5575_v14, 0 }
 0x308   :  { %v2930_v40 = vsel %vm2922_vm7, 1, %v6232_v33  ;;  %vm696_vm5 = vcmp.eq.s32.totalorder %v5426_v42, 0  ;;  %vm2923_vm4 = vcmp.gt.f32.partialorder %v4123_v63, 0.5  ;;  %v5609_v26 = vpop.eup %4062  ;;  %v1378_v48 = vadd.s32 %v5298_v41, %v5307_v31 }
 0x309   :  { %v805_v1 = vsel %vm798_vm10, %v801_v23, %v804_v47  ;;  %v1627_v18 = vsel %vm1625_vm11, %v5530_v58, %v800_v3  ;;  %vm1628_vm12 = vcmp.eq.s32.totalorder %v5575_v14, 2  ;;  %v6234_v25 = vmov 7   ;;  %v5622_v0 = vpop.eup %4064 }
 0x30a   :  { %4024 = vset.pattern.permute.xlu1 %v6234_v25  ;;  %2899 = vperm.xlu0 %4022, %v5619_v57   ;;  %v1630_v38 = vsel %vm1628_vm12, %v803_v17, %v4055_v36  ;;  %v698_v41 = vsel %vm696_vm5, %v5522_v24, %v6231_v55  ;;  %vm699_vm0 = vcmp.eq.s32.totalorder %v5426_v42, 2  ;;  %v1518_v31 = vadd.s32 3, %v5406_v49  ;;  %v4125_v49 = vld [vmem:[%s6157_s0 + $0x10] sm:$0xff] }
 0x30b   :  { %2939 = vperm.xlu1 %4024, %v2930_v40   ;;  %v1394_v58 = vsub.s32 32, %v5577_v16  ;;  %v1399_v21 = vadd.s32 127, %v1398_v51  ;;  %v701_v3 = vsel %vm699_vm0, %v6230_v9, %v5550_v11  ;;  %v2931_v22 = vsel %vm2923_vm4, 1, %v6232_v33  ;;  %v5635_v36 = vpop.eup %4066 }
 0x30c   :  { %v1303_v17 = vxor.u32 2147483648, %v1302_v45  ;;  %vm1324_vm13 = vcmp.lt.s32.totalorder %v4813_v20, 0  ;;  %vm796_vm14 = vweird.f32 %v6296_v46  ;;  %vm2924_vm6 = vcmp.gt.f32.partialorder %v4125_v49, 0.5  ;;  %v5642_v30 = vpop.eup %4068 }
 0x30d   :  { %4074 = vcosq.f32 %v5589_v8  ;;  %v5646_v44 = vand.u32 3, %v5593_v61  ;;  %v6323_v63 = vand.u32 2147483647, %v4813_v20  ;;  %vm1624_vm9 = vcmp.lt.s32.totalorder %v5575_v14, 2  ;;  %v5657_v47 = vpop.eup %4070 }
 0x30e   :  { %vm695_vm8 = vcmp.lt.s32.totalorder %v5426_v42, 2  ;;  %4027 = vset.pattern.permute.xlu0 %v6234_v25  ;;  %v806_v51 = vsel %vm796_vm14, nan, %v805_v1  ;;  %v1631_v40 = vsel %vm1624_vm9, %v1627_v18, %v1630_v38  ;;  %v1519_v55 = vand.u32 3, %v1518_v31  ;;  %v5675_v38 = vld [vmem:[%s6157_s0 + $0x28] sm:$0xff] }
 0x30f   :  { %vm5650_vm7 = vcmp.le.f32.partialorder %v6323_v63, 0.7853982  ;;  %v702_v9 = vsel %vm695_vm8, %v698_v41, %v701_v3  ;;  %4025 = vset.pattern.permute.xlu1 %v4166_v7  ;;  %2942 = vperm.xlu0 %4027, %v2931_v22   ;;  %v1395_v63 = vshll.u32 %v5440_v13, %v5577_v16  ;;  %v1396_v33 = vshrl.u32 %v1378_v48, %v1394_v58  ;;  %v4127_v48 = vld [vmem:[%s6157_s0 + $0x18] sm:$0xff] }
 0x310   :  { %v1400_v14 = vshll.u32 %v1399_v21, 23  ;;  %2891 = vperm.xlu1 %4025, %v4125_v49   ;;  %v6326_v42 = vmov 0   ;;  %v5666_v32 = vpop.eup %4072  ;;  %4076 = vsinq.f32 %v5589_v8  ;;  %v1304_v1 = vsel %vm1221_vm15, %v1303_v17, %v1302_v45 }
 0x311   :  { %v2932_v25 = vsel %vm2924_vm6, 1, %v6326_v42  ;;  %v1408_v18 = vsub.s32 4, %v5402_v27  ;;  %vm2927_vm10 = vcmp.gt.f32.partialorder %v5675_v38, 0.5  ;;  %v5680_v13 = vsel %vm796_vm14, nan, %v1631_v40 }
 0x312   :  { %v5683_v16 = vmul.f32 %v806_v51, %v4324_v62  ;;  %vm693_vm11 = vweird.f32 %v6285_v56  ;;  %vm902_vm15 = vcmp.eq.s32.totalorder %v5564_v52, 0  ;;  %vm1520_vm5 = vcmp.lt.s32.totalorder %v1519_v55, 2 }
 0x313   :  { %v703_v8 = vsel %vm693_vm11, nan, %v702_v9  ;;  %v903_v45 = vxor.u32 2147483648, %v5657_v47  ;;  %vm2925_vm4 = vcmp.gt.f32.partialorder %v4127_v48, 0.5  ;;  %2945 = vperm.xlu0 %4027, %v2932_v25   ;;  %v1307_v46 = vsel %vm5557_vm3, %v4838_v54, %v1304_v1 }
 0x314   :  { %v1397_v41 = vor.u32 %v1396_v33, %v1395_v63  ;;  %v1401_v31 = vor.u32 4788187, %v1400_v14  ;;  %vm901_vm12 = vcmp.lt.s32.totalorder %v5564_v52, 2  ;;  %2895 = vperm.xlu1 %4025, %v4127_v48   ;;  %v2935_v9 = vsel %vm2927_vm10, 1, %v6326_v42 }
 0x315   :  { %v1409_v58 = vsel %vm1324_vm13, %v1408_v18, %v5402_v27  ;;  %vm1521_vm0 = vcmp.eq.s32.totalorder %v1519_v55, 0  ;;  %v1726_v25 = vadd.s32 3, %v5538_v2  ;;  %vm2928_vm3 = vcmp.gt.f32.partialorder %v5707_v6, 0.5 }
 0x316   :  { %v6327_v33 = vxor.u32 2147483648, %v5550_v11  ;;  %vm1524_vm14 = vcmp.eq.s32.totalorder %v1519_v55, 2  ;;  %v906_v3 = vxor.u32 2147483648, %v5666_v32  ;;  %v2933_v27 = vsel %vm2925_vm4, 1, %v6326_v42 }
 0x317   :  { %4078 = vcosq.f32 %v1307_v46  ;;  %v6328_v2 = vxor.u32 2147483648, %v5522_v24  ;;  %v2517_v17 = vxor.u32 2147483648, %v5584_v34  ;;  %v2617_v49 = vadd.s32 3, %v5452_v60  ;;  %2954 = vperm.xlu0 %4027, %v2935_v9  }
 0x318   :  { %v1523_v21 = vsel %vm1521_vm0, %v5522_v24, %v6327_v33  ;;  %v1402_v51 = vand.u32 2147483647, %v1401_v31  ;;  %v1404_v40 = vcvt.s32.f32 %v1397_v41  ;;  %v2520_v63 = vxor.u32 2147483648, %v5561_v10 }
 0x319   :  { %v1526_v22 = vsel %vm1524_vm14, %v6328_v2, %v5550_v11  ;;  %v6329_v14 = vmov 7   ;;  %v2936_v1 = vsel %vm2928_vm3, 1, %v6326_v42  ;;  %v5726_v18 = vsel %vm5650_vm7, 0, %v1409_v58 }
 0x31a   :  { %4026 = vset.pattern.permute.xlu1 %v6329_v14  ;;  %v5729_v24 = vmul.f32 %v703_v8, %v4353_v29  ;;  %vm899_vm6 = vweird.f32 %v6313_v53  ;;  %vm905_vm9 = vcmp.eq.s32.totalorder %v5564_v52, 2  ;;  %v1727_v60 = vand.u32 3, %v1726_v25  ;;  %v5738_v31 = vpop.eup %4074 }
 0x31b   :  { %2948 = vperm.xlu1 %4026, %v2933_v27   ;;  %4080 = vsinq.f32 %v1307_v46  ;;  %v1527_v11 = vsel %vm1520_vm5, %v1523_v21, %v1526_v22  ;;  %v904_v48 = vsel %vm902_vm15, %v5666_v32, %v903_v45  ;;  %v907_v41 = vsel %vm905_vm9, %v906_v3, %v5657_v47  ;;  %2957 = vperm.xlu0 %4027, %v2936_v1  }
 0x31c   :  { %vm2513_vm8 = vweird.f32 %v6295_v50  ;;  %vm2516_vm10 = vcmp.eq.s32.totalorder %v5465_v4, 0  ;;  %vm2519_vm4 = vcmp.eq.s32.totalorder %v5465_v4, 2  ;;  %v2618_v8 = vand.u32 3, %v2617_v49 }
 0x31d   :  { %v1405_v9 = vmul.f32 %v1404_v40, %v1402_v51  ;;  %vm2515_vm0 = vcmp.lt.s32.totalorder %v5465_v4, 2  ;;  %v2518_v55 = vsel %vm2516_vm10, %v5561_v10, %v2517_v17  ;;  %v2521_v46 = vsel %vm2519_vm4, %v2520_v63, %v5584_v34  ;;  %v5750_v25 = vpop.eup %4076 }
 0x31e   :  { %v908_v58 = vsel %vm901_vm12, %v904_v48, %v907_v41  ;;  %vm1729_vm15 = vcmp.eq.s32.totalorder %v1727_v60, 0  ;;  %vm2926_vm5 = vcmp.gt.f32.partialorder %v5619_v57, 0.5  ;;  %vm1732_vm3 = vcmp.eq.s32.totalorder %v1727_v60, 2 }
 0x31f   :  { %4028 = vset.pattern.permute.xlu1 %v4166_v7  ;;  %v1731_v33 = vsel %vm1729_vm15, %v5666_v32, %v903_v45  ;;  %v1006_v21 = vxor.u32 2147483648, %v5622_v0  ;;  %v1009_v4 = vxor.u32 2147483648, %v5609_v26  ;;  %v1734_v27 = vsel %vm1732_vm3, %v906_v3, %v5657_v47 }
 0x320   :  { %2903 = vperm.xlu1 %4028, %v5675_v38   ;;  %v2522_v52 = vsel %vm2515_vm0, %v2518_v55, %v2521_v46  ;;  %vm2620_vm12 = vcmp.eq.s32.totalorder %v2618_v8, 0  ;;  %vm2623_vm14 = vcmp.eq.s32.totalorder %v2618_v8, 2  ;;  %v1406_v2 = vxor.u32 2147483648, %v1405_v9 }
 0x321   :  { %v2622_v22 = vsel %vm2620_vm12, %v5561_v10, %v2517_v17  ;;  %v4169_v57 = vmov 1966171168   ;;  %v2934_v51 = vsel %vm2926_vm5, 1, %v6326_v42  ;;  %v2625_v32 = vsel %vm2623_vm14, %v2520_v63, %v5584_v34 }
 0x322   :  { %v2650_v49 = vunpack.c.l.s4 %v4169_v57  ;;  %vm1005_vm9 = vcmp.eq.s32.totalorder %v5525_v37, 0  ;;  %vm1008_vm10 = vcmp.eq.s32.totalorder %v5525_v37, 2  ;;  %v1830_v38 = vadd.s32 3, %v5500_v28 }
 0x323   :  { %v909_v47 = vsel %vm899_vm6, nan, %v908_v58  ;;  %vm1728_vm4 = vcmp.lt.s32.totalorder %v1727_v60, 2  ;;  %v1007_v45 = vsel %vm1005_vm9, %v5609_v26, %v1006_v21  ;;  %v1010_v10 = vsel %vm1008_vm10, %v1009_v4, %v5622_v0  ;;  %v5803_v46 = vpop.permute.xlu1 %2358 }
 0x324   :  { %4029 = vset.pattern.permute.xlu1 %v6329_v14  ;;  %v5771_v34 = vand.u32 3, %v5726_v18  ;;  %v1735_v3 = vsel %vm1728_vm4, %v1731_v33, %v1734_v27  ;;  %v2523_v17 = vsel %vm2513_vm8, nan, %v2522_v52  ;;  %vm2619_vm0 = vcmp.lt.s32.totalorder %v2618_v8, 2  ;;  %v5775_v28 = vpop.eup %4078  ;;  %v6330_v33 = vld [vmem:[#allocation5_spill] sm:$0xff] }
 0x325   :  { %2951 = vperm.xlu1 %4029, %v2934_v51   ;;  %v1407_v40 = vsel %vm1324_vm13, %v1406_v2, %v1405_v9  ;;  %v2626_v63 = vsel %vm2619_vm0, %v2622_v22, %v2625_v32  ;;  %v2651_v1 = vunpack.c.0.s8 %v2650_v49  ;;  %vm1004_vm15 = vcmp.lt.s32.totalorder %v5525_v37, 2  ;;  %v5822_v50 = vpop.permute.xlu0 %2326  ;;  %v4129_v51 = vld [vmem:[%s6157_s0 + $0x38] sm:$0xff]  ;;  %v6331_v32 = vld [vmem:[#allocation8_spill] sm:$0xff] }
 0x326   :  { %v5782_v60 = vsel %vm693_vm11, nan, %v1527_v11  ;;  %v5785_v48 = vmul.f32 %v909_v47, %v4328_v12  ;;  %v1011_v41 = vsel %vm1004_vm15, %v1007_v45, %v1010_v10  ;;  %v5787_v55 = vand.u32 3, %v1830_v38  ;;  %v42_v47 = vld [vmem:[%s6161_s4] sm:$0xff] }
 0x327   :  { %v5791_v8 = vsel %vm899_vm6, nan, %v1735_v3  ;;  %v5794_v9 = vmul.f32 %v2523_v17, %v4348_v15  ;;  %vm1002_vm13 = vweird.f32 %v6305_v19  ;;  %v1934_v37 = vadd.s32 3, %v5534_v39  ;;  %v5831_v22 = vpop.permute.xlu1 %2356  ;;  %3910 = vmatprep.subr.mxu1 %v42_v47 }
 0x328   :  { %v5798_v56 = vpop.eup %4080  ;;  %v1410_v11 = vsel %vm5650_vm7, %v4813_v20, %v1407_v40  ;;  %v5807_v53 = vsel %vm2513_vm8, nan, %v2626_v63  ;;  %v1109_v58 = vxor.u32 2147483648, %v5642_v30  ;;  %v1112_v15 = vxor.u32 2147483648, %v5635_v36  ;;  %3911 = vmatpush3.msra.mxu1 %v42_v47 }
 0x329   :  { %4030 = vset.pattern.permute.xlu1 %v4166_v7  ;;  %v5813_v39 = vsub.s32 %v2651_v1, %v6330_v33  ;;  %v5817_v27 = vsel %vm1002_vm13, nan, %v1011_v41  ;;  %vm1107_vm7 = vcmp.lt.s32.totalorder %v5553_v5, 2  ;;  %vm1108_vm11 = vcmp.eq.s32.totalorder %v5553_v5, 0 }
 0x32a   :  { %2907 = vperm.xlu1 %4030, %v5707_v6   ;;  %vm1833_vm6 = vcmp.eq.s32.totalorder %v5787_v55, 0  ;;  %vm1105_vm8 = vweird.f32 %v6309_v59  ;;  %vm1111_vm5 = vcmp.eq.s32.totalorder %v5553_v5, 2  ;;  %v1212_v7 = vxor.u32 2147483648, %v5750_v25 }
 0x32b   :  { %v1215_v23 = vxor.u32 2147483648, %v5738_v31  ;;  %4082 = vcosq.f32 %v1410_v11  ;;  %v1835_v52 = vsel %vm1833_vm6, %v5609_v26, %v1006_v21  ;;  %vm1836_vm3 = vcmp.eq.s32.totalorder %v5787_v55, 2  ;;  %v5859_v17 = vpop.permute.xlu1 %2360 }
 0x32c   :  { %v1935_v2 = vand.u32 3, %v1934_v37  ;;  %v1110_v6 = vsel %vm1108_vm11, %v5635_v36, %v1109_v58  ;;  %v1113_v57 = vsel %vm1111_vm5, %v1112_v15, %v5642_v30  ;;  %v2038_v49 = vadd.s32 3, %v5545_v35  ;;  %v5850_v35 = vpop.permute.xlu0 %2324 }
 0x32d   :  { %vm2929_vm12 = vcmp.gt.f32.partialorder %v4129_v51, 0.5  ;;  %4084 = vsinq.f32 %v1410_v11  ;;  %v1838_v21 = vsel %vm1836_vm3, %v1009_v4, %v5622_v0  ;;  %vm1211_vm14 = vcmp.eq.s32.totalorder %v5567_v43, 0 }
 0x32e   :  { %vm1214_vm9 = vcmp.eq.s32.totalorder %v5567_v43, 2  ;;  %2911 = vperm.xlu1 %4030, %v4129_v51   ;;  %v6332_v38 = vand.u32 1, %v6331_v32  ;;  %v1213_v45 = vsel %vm1211_vm14, %v5738_v31, %v1212_v7  ;;  %v1315_v26 = vxor.u32 2147483648, %v5798_v56 }
 0x32f   :  { %v1216_v10 = vsel %vm1214_vm9, %v1215_v23, %v5750_v25  ;;  %v1318_v0 = vxor.u32 2147483648, %v5775_v28  ;;  %v1114_v4 = vsel %vm1107_vm7, %v1110_v6, %v1113_v57  ;;  %vm1937_vm4 = vcmp.eq.s32.totalorder %v1935_v2, 0 }
 0x330   :  { %vm5846_vm10 = vcmp.eq.s32.totalorder %v6332_v38, 0  ;;  %vm1940_vm0 = vcmp.eq.s32.totalorder %v1935_v2, 2  ;;  %v2937_v3 = vsel %vm2929_vm12, 1, %v6326_v42  ;;  %v1939_v40 = vsel %vm1937_vm4, %v5635_v36, %v1109_v58  ;;  %v5868_v37 = vpop.permute.xlu0 %2328  ;;  %v6335_v58 = vld [vmem:[#allocation23_spill] sm:$0xff] }
 0x331   :  { %v1942_v63 = vsel %vm1940_vm0, %v1112_v15, %v5642_v30  ;;  %vm1210_vm15 = vcmp.lt.s32.totalorder %v5567_v43, 2  ;;  %v2039_v1 = vand.u32 3, %v2038_v49  ;;  %vm1314_vm11 = vcmp.eq.s32.totalorder %v5646_v44, 0  ;;  %v6336_v49 = vld [vmem:[#allocation10_spill] sm:$0xff] }
 0x332   :  { %v1217_v41 = vsel %vm1210_vm15, %v1213_v45, %v1216_v10  ;;  %vm1317_vm6 = vcmp.eq.s32.totalorder %v5646_v44, 2  ;;  %v2142_v5 = vadd.s32 3, %v5593_v61  ;;  %4031 = vset.pattern.permute.xlu1 %v6329_v14  ;;  %vm1832_vm7 = vcmp.lt.s32.totalorder %v5787_v55, 2  ;;  %v2641_v61 = vpop.permute.xlu1 %2640 }
 0x333   :  { %vm1936_vm5 = vcmp.lt.s32.totalorder %v1935_v2, 2  ;;  %v1316_v36 = vsel %vm1314_vm11, %v5775_v28, %v1315_v26  ;;  %v1319_v30 = vsel %vm1317_vm6, %v1318_v0, %v5798_v56  ;;  %2960 = vperm.xlu1 %4031, %v2937_v3   ;;  %v1839_v43 = vsel %vm1832_vm7, %v1835_v52, %v1838_v21  ;;  %v6337_v21 = vld [vmem:[#allocation7_spill] sm:$0xff] }
 0x334   :  { %v1115_v42 = vsel %vm1105_vm8, nan, %v1114_v4  ;;  %v1943_v11 = vsel %vm1936_vm5, %v1939_v40, %v1942_v63  ;;  %vm1208_vm3 = vweird.f32 %v6335_v58  ;;  %vm2041_vm12 = vcmp.eq.s32.totalorder %v2039_v1, 0  ;;  %v2637_v6 = vpop.permute.xlu0 %2636 }
 0x335   :  { %v1218_v14 = vsel %vm1208_vm3, nan, %v1217_v41  ;;  %vm2044_vm14 = vcmp.eq.s32.totalorder %v2039_v1, 2  ;;  %vm1313_vm9 = vcmp.lt.s32.totalorder %v5646_v44, 2  ;;  %v2043_v55 = vsel %vm2041_vm12, %v5738_v31, %v1212_v7 }
 0x336   :  { %v2046_v15 = vsel %vm2044_vm14, %v1215_v23, %v5750_v25  ;;  %v1320_v2 = vsel %vm1313_vm9, %v1316_v36, %v1319_v30  ;;  %v2143_v52 = vand.u32 3, %v2142_v5  ;;  %v1840_v57 = vsel %vm1002_vm13, nan, %v1839_v43  ;;  %v6338_v23 = vld [vmem:[#allocation11_spill] sm:$0xff] }
 0x337   :  { %v5885_v51 = vmul.f32 %v5817_v27, %v6336_v49  ;;  %v5888_v32 = vmul.f32 %v1115_v42, %v6337_v21  ;;  %v2246_v38 = vadd.s32 3, %v5726_v18  ;;  %v2643_v44 = vsel %vm5846_vm10, %v2637_v6, %v2641_v61  ;;  %v2363_v27 = vpop.permute.xlu1 %2362  ;;  %v6340_v6 = vld [vmem:[#allocation6_spill] sm:$0xff] }
 0x338   :  { %v1944_v31 = vsel %vm1105_vm8, nan, %v1943_v11  ;;  %vm2040_vm4 = vcmp.lt.s32.totalorder %v2039_v1, 2  ;;  %vm1311_vm0 = vweird.f32 %v4838_v54  ;;  %v5896_v19 = vpop.eup %4082  ;;  %v2645_v25 = vmul.f32 %v2643_v44, %v5807_v53  ;;  %v2331_v3 = vpop.permute.xlu0 %2330 }
 0x339   :  { %v2047_v7 = vsel %vm2040_vm4, %v2043_v55, %v2046_v15  ;;  %v5900_v45 = vmul.f32 %v1218_v14, %v6338_v23  ;;  %v1321_v18 = vsel %vm1311_vm0, nan, %v1320_v2  ;;  %v2381_v59 = vsel %vm5846_vm10, %v5822_v50, %v5803_v46  ;;  %v6339_v50 = vld [vmem:[#allocation9_spill] sm:$0xff] }
 0x33a   :  { %v2380_v10 = vsel %vm5846_vm10, %v5850_v35, %v5831_v22  ;;  %vm2145_vm13 = vcmp.eq.s32.totalorder %v2143_v52, 0  ;;  %vm2148_vm8 = vcmp.eq.s32.totalorder %v2143_v52, 2  ;;  %v4085_v53 = vpop.eup %4084  ;;  %v2646_v4 = vadd.f32 %v2645_v25, %v5794_v9 }
 0x33b   :  { %v2147_v40 = vsel %vm2145_vm13, %v5775_v28, %v1315_v26  ;;  %v2150_v63 = vsel %vm2148_vm8, %v1318_v0, %v5798_v56  ;;  %vm1417_vm15 = vcmp.eq.s32.totalorder %v5771_v34, 0  ;;  %v5916_v1 = vand.u32 3, %v2246_v38  ;;  %v2365_v26 = vpop.permute.xlu1 %2364 }
 0x33c   :  { %v2048_v46 = vsel %vm1208_vm3, nan, %v2047_v7  ;;  %vm2144_vm11 = vcmp.lt.s32.totalorder %v2143_v52, 2  ;;  %v5921_v22 = vmul.f32 %v1321_v18, %v6339_v50  ;;  %v1421_v35 = vxor.u32 2147483648, %v5896_v19  ;;  %v2333_v43 = vpop.permute.xlu0 %2332 }
 0x33d   :  { %v2397_v9 = vmul.f32 %v2381_v59, %v5680_v13  ;;  %v2396_v41 = vmul.f32 %v2380_v10, %v5782_v60  ;;  %v2648_v28 = vcombine.high %v2646_v4, %v2646_v4  ;;  %v2655_v56 = vrot.slane %v2646_v4, %v5813_v39 }
 0x33e   :  { %v2382_v0 = vsel %vm5846_vm10, %v5868_v37, %v5859_v17  ;;  %v2151_v5 = vsel %vm2144_vm11, %v2147_v40, %v2150_v63  ;;  %vm1416_vm6 = vcmp.lt.s32.totalorder %v5771_v34, 2  ;;  %v1418_v36 = vxor.u32 2147483648, %v4085_v53 }
 0x33f   :  { %vm1420_vm7 = vcmp.eq.s32.totalorder %v5771_v34, 2  ;;  %v2662_v30 = vrot.slane %v2648_v28, %v5813_v39  ;;  %v2663_v13 = vcombine.high %v2655_v56, %v2655_v56  ;;  %v2671_v60 = vrot.slane %v2655_v56, %v5813_v39  ;;  %v2367_v55 = vpop.permute.xlu1 %2366 }
 0x340   :  { %vm2249_vm5 = vcmp.eq.s32.totalorder %v5916_v1, 0  ;;  %v2383_v42 = vsel %vm5846_vm10, %v2331_v3, %v2363_v27  ;;  %v2384_v17 = vsel %vm5846_vm10, %v2333_v43, %v2365_v26  ;;  %v1422_v37 = vsel %vm1420_vm7, %v1421_v35, %v4085_v53  ;;  %v2335_v7 = vpop.permute.xlu0 %2334 }
 0x341   :  { %vm2252_vm3 = vcmp.eq.s32.totalorder %v5916_v1, 2  ;;  %v2405_v11 = vadd.f32 %v2397_v9, %v5683_v16  ;;  %v2404_v58 = vadd.f32 %v2396_v41, %v5729_v24  ;;  %v2398_v61 = vmul.f32 %v2382_v0, %v5791_v8 }
 0x342   :  { %v2685_v14 = vrot.slane %v2663_v13, %v5813_v39  ;;  %vm1414_vm12 = vweird.f32 %v4813_v20  ;;  %v2693_v15 = vcombine.high %v2671_v60, %v2671_v60  ;;  %v2678_v2 = vrot.slane %v2662_v30, %v5813_v39 }
 0x343   :  { %v2400_v52 = vmul.f32 %v2384_v17, %v1944_v31  ;;  %v2700_v38 = vrot.slane %v2671_v60, %v6340_v6  ;;  %v2664_v44 = vcombine.high %v2662_v30, %v2662_v30  ;;  %v2399_v16 = vmul.f32 %v2383_v42, %v1840_v57  ;;  %v2369_v4 = vpop.permute.xlu1 %2368 }
 0x344   :  { %v2704_v25 = vrot.slane %v2685_v14, %v6340_v6  ;;  %v2695_v27 = vcombine.high %v2685_v14, %v2685_v14  ;;  %v2385_v24 = vsel %vm5846_vm10, %v2335_v7, %v2367_v55  ;;  %v1419_v18 = vsel %vm1417_vm15, %v5896_v19, %v1418_v36  ;;  %v2337_v28 = vpop.permute.xlu0 %2336 }
 0x345   :  { %v2737_v8 = vmul.f32 %v2700_v38, %v2404_v58  ;;  %v2254_v59 = vsel %vm2252_vm3, %v1421_v35, %v4085_v53  ;;  %v2401_v10 = vmul.f32 %v2385_v24, %v2048_v46  ;;  %v2251_v57 = vsel %vm2249_vm5, %v5896_v19, %v1418_v36 }
 0x346   :  { %v2712_v31 = vrot.slane %v2695_v27, %v6340_v6  ;;  %v2738_v3 = vmul.f32 %v2704_v25, %v2405_v11  ;;  %v2406_v40 = vadd.f32 %v2398_v61, %v5785_v48  ;;  %v2716_v63 = vrot.slane %v2678_v2, %v6340_v6 }
 0x347   :  { %v2408_v9 = vadd.f32 %v2400_v52, %v5888_v32  ;;  %3898 = vmatprep.mubr.msk.f32.mxu0 %vm213_vm2, %v2737_v8  ;;  %v2708_v41 = vrot.slane %v2693_v15, %v6340_v6  ;;  %v2407_v53 = vadd.f32 %v2399_v16, %v5885_v51  ;;  %v2692_v46 = vrot.slane %v2664_v44, %v5813_v39  ;;  %v2371_v13 = vpop.permute.xlu1 %2370 }
 0x348   :  { %v2694_v35 = vcombine.high %v2678_v2, %v2678_v2  ;;  %3899 = vmatmul.mubr.msk.f32.vlgmr.msra.gmra.mxu0 %vm213_vm2, %v2738_v3  ;;  %v1423_v19 = vsel %vm1416_vm6, %v1419_v18, %v1422_v37  ;;  %v2152_v48 = vsel %vm1311_vm0, nan, %v2151_v5  ;;  %v2386_v32 = vsel %vm5846_vm10, %v2337_v28, %v2369_v4  ;;  %v6341_v37 = vld [vmem:[#allocation12_spill] sm:$0xff] }
 0x349   :  { %v2739_v56 = vmul.f32 %v2708_v41, %v2406_v40  ;;  %vm2248_vm14 = vcmp.lt.s32.totalorder %v5916_v1, 2  ;;  %v2740_v26 = vmul.f32 %v2712_v31, %v2407_v53  ;;  %v2409_v51 = vadd.f32 %v2401_v10, %v5900_v45  ;;  %v2339_v1 = vpop.permute.xlu0 %2338 }
 0x34a   :  { %v2402_v39 = vmul.f32 %v2386_v32, %v2152_v48  ;;  %v2255_v0 = vsel %vm2248_vm14, %v2251_v57, %v2254_v59  ;;  %v2741_v36 = vmul.f32 %v2716_v63, %v2408_v9  ;;  %v1424_v34 = vsel %vm1414_vm12, nan, %v1423_v19 }
 0x34b   :  { %3901 = vmatprep.mubr.msk.f32.mxu0 %vm213_vm2, %v2739_v56  ;;  %v2720_v54 = vrot.slane %v2692_v46, %v6340_v6  ;;  %v2724_v5 = vrot.slane %v2694_v35, %v6340_v6  ;;  %v2696_v60 = vcombine.high %v2692_v46, %v2692_v46  ;;  %v2256_v45 = vsel %vm1414_vm12, nan, %v2255_v0 }
 0x34c   :  { %v2410_v30 = vadd.f32 %v2402_v39, %v5921_v22  ;;  %3902 = vmatmul.mubr.msk.f32.gmra.mxu0 %vm213_vm2, %v2740_v26  ;;  %v2387_v43 = vsel %vm5846_vm10, %v2339_v1, %v2371_v13  ;;  %v2395_v11 = vmul.f32 %v1424_v34, %v6341_v37  ;;  %v6342_v20 = vmov 0.0  }
 0x34d   :  { %3904 = vmatprep.mubr.msk.f32.mxu0 %vm213_vm2, %v2741_v36  ;;  %v2742_v42 = vmul.f32 %v2720_v54, %v2409_v51  ;;  %v2403_v58 = vmul.f32 %v2387_v43, %v2256_v45  ;;  %v2728_v22 = vrot.slane %v2696_v60, %v6340_v6  ;;  %3929 = vmatprep.subr.mxu1 %v6342_v20  ;;  %vm6343_vm4 = vcmask 64512  }
 0x34e   :  { %v2743_v17 = vmul.f32 %v2724_v5, %v2410_v30  ;;  %vm6344_vm8 = vmmov %vm6343_vm4 }
 0x34f   :  { %v2411_v61 = vadd.f32 %v2403_v58, %v2395_v11  ;;  %vm6345_vm6 = vmmov %vm6343_vm4 }
 0x350   :  { %3905 = vmatmul.mubr.msk.f32.gmra.mxu0 %vm213_vm2, %v2742_v42  ;;  %vm6346_vm5 = vmmov %vm6343_vm4 }
 0x351   :  { %3907 = vmatprep.mubr.msk.f32.mxu0 %vm213_vm2, %v2743_v17  ;;  %v2744_v14 = vmul.f32 %v2728_v22, %v2411_v61  ;;  %vm6347_vm12 = vmmov %vm6343_vm4 }
 0x352   :  { %vm6348_vm14 = vmmov %vm6343_vm4 }
 0x354   :  { %3908 = vmatmul.mubr.msk.f32.gmra.mxu0 %vm213_vm2, %v2744_v14 }
 0x355   :  { %3926 = vmatprep.mubr.msk.f32.mxu0 %vm4154_vm1, %v6342_v20 }
 0x381   :  { %v2888_v55 = vpop.permute.xlu1 %2887  ;;  %v2884_v38 = vpop.permute.xlu0 %2883 }
 0x385   :  { %v5999_v25 = vpop.permute.xlu0 %2899 }
 0x386   :  { %v2940_v15 = vpop.permute.xlu1 %2939 }
 0x387   :  { %vm2962_vm9 = vcmp.eq.s32.totalorder %v2940_v15, 1 }
 0x38a   :  { %v2943_v16 = vpop.permute.xlu0 %2942 }
 0x38b   :  { %v2892_v2 = vpop.permute.xlu1 %2891  ;;  %vm2963_vm10 = vcmp.eq.s32.totalorder %v2943_v16, 1 }
 0x38e   :  { %v2946_v24 = vpop.permute.xlu0 %2945 }
 0x38f   :  { %v2896_v52 = vpop.permute.xlu1 %2895  ;;  %vm2964_vm13 = vcmp.eq.s32.totalorder %v2946_v24, 1 }
 0x392   :  { %v2955_v4 = vpop.permute.xlu0 %2954 }
 0x393   :  { %vm2967_vm11 = vcmp.eq.s32.totalorder %v2955_v4, 1 }
 0x396   :  { %v2949_v44 = vpop.permute.xlu1 %2948  ;;  %v2958_v0 = vpop.permute.xlu0 %2957 }
 0x397   :  { %vm2965_vm0 = vcmp.eq.s32.totalorder %v2949_v44, 1  ;;  %vm2968_vm7 = vcmp.eq.s32.totalorder %v2958_v0, 1 }
 0x39b   :  { %v2904_v27 = vpop.permute.xlu1 %2903 }
 0x3a0   :  { %v2952_v7 = vpop.permute.xlu1 %2951 }
 0x3a1   :  { %vm2966_vm15 = vcmp.eq.s32.totalorder %v2952_v7, 1 }
 0x3a5   :  { %v6001_v59 = vpop.permute.xlu1 %2907 }
 0x3a9   :  { %v2912_v48 = vpop.permute.xlu1 %2911 }
 0x3ae   :  { %v2961_v45 = vpop.permute.xlu1 %2960 }
 0x3af   :  { %vm2969_vm3 = vcmp.eq.s32.totalorder %v2961_v45, 1 }
 0x408   :  { %v3900_v8 = vpop.f32.mrf.mxu0 }
 0x409   :  { %v2875_v18 = vmul.f32 0.5, %v3900_v8 }
 0x40a   :  { %v2835_v31 = vpop.f32.mrf.mxu0 }
 0x40b   :  { %v2915_v10 = vsub.f32 %v2875_v18, %v2888_v55  ;;  %v2874_v3 = vmul.f32 0.5, %v2835_v31 }
 0x40c   :  { %v3903_v57 = vpop.f32.mrf.mxu0 }
 0x40d   :  { %v6003_v40 = vsel %vm2963_vm10, -1e+30, %v2915_v10  ;;  %v2914_v63 = vsub.f32 %v2874_v3, %v2884_v38  ;;  %v2877_v9 = vmul.f32 0.5, %v3903_v57  ;;  %vm6349_vm10 = vmmov %vm6343_vm4 }
 0x40e   :  { %v2985_v41 = vsel %vm6343_vm4, %v6003_v40, -inf  ;;  %v2845_v53 = vpop.f32.mrf.mxu0 }
 0x40f   :  { %v2986_v46 = vrot.slane %v2985_v41, 4  ;;  %v6007_v35 = vsel %vm2962_vm9, -1e+30, %v2914_v63  ;;  %v2917_v28 = vsub.f32 %v2877_v9, %v2896_v52  ;;  %v2876_v19 = vmul.f32 0.5, %v2845_v53  ;;  %vm6350_vm9 = vmmov %vm6343_vm4 }
 0x410   :  { %v2978_v32 = vsel %vm6344_vm8, %v6007_v35, -inf  ;;  %v3906_v56 = vpop.f32.mrf.mxu0 }
 0x411   :  { %v2987_v26 = vmax.f32 %v2985_v41, %v2986_v46  ;;  %v2979_v51 = vrot.slane %v2978_v32, 4  ;;  %v6011_v39 = vsel %vm2965_vm0, -1e+30, %v2917_v28  ;;  %v2916_v36 = vsub.f32 %v2876_v19, %v2892_v2  ;;  %vm6351_vm0 = vmmov %vm6343_vm4 }
 0x412   :  { %v2999_v34 = vsel %vm6345_vm6, %v6011_v39, -inf  ;;  %v2879_v54 = vmul.f32 0.5, %v3906_v56  ;;  %v2855_v5 = vpop.f32.mrf.mxu0  ;;  %vm6353_vm8 = vmmov %vm6351_vm0 }
 0x413   :  { %v2988_v30 = vrot.slane %v2987_v26, 2  ;;  %v2980_v13 = vmax.f32 %v2978_v32, %v2979_v51  ;;  %v3000_v60 = vrot.slane %v2999_v34, 4  ;;  %v6016_v1 = vsel %vm2964_vm13, -1e+30, %v2916_v36  ;;  %vm6352_vm13 = vmmov %vm6351_vm0 }
 0x414   :  { %v2992_v43 = vsel %vm6346_vm5, %v6016_v1, -inf  ;;  %v2919_v42 = vsub.f32 %v2879_v54, %v2904_v27  ;;  %v2878_v17 = vmul.f32 0.5, %v2855_v5  ;;  %v3909_v11 = vpop.f32.mrf.mxu0  ;;  %vm6356_vm6 = vmmov %vm6351_vm0 }
 0x415   :  { %v2989_v58 = vmax.f32 %v2987_v26, %v2988_v30  ;;  %v2981_v22 = vrot.slane %v2980_v13, 2  ;;  %v3001_v61 = vmax.f32 %v2999_v34, %v3000_v60  ;;  %v2993_v14 = vrot.slane %v2992_v43, 4  ;;  %vm6358_vm5 = vmmov %vm6351_vm0 }
 0x416   :  { %v6021_v47 = vsel %vm2967_vm11, -1e+30, %v2919_v42  ;;  %v2918_v55 = vsub.f32 %v2878_v17, %v5999_v25  ;;  %v2881_v15 = vmul.f32 0.5, %v3909_v11  ;;  %v2865_v2 = vpop.f32.mrf.mxu0  ;;  %vm6355_vm11 = vmmov %vm6351_vm0 }
 0x417   :  { %v2990_v52 = vrot.slane %v2989_v58, 1  ;;  %v2982_v38 = vmax.f32 %v2980_v13, %v2981_v22  ;;  %v3002_v44 = vrot.slane %v3001_v61, 2  ;;  %v2994_v16 = vmax.f32 %v2992_v43, %v2993_v14 }
 0x418   :  { %v3013_v27 = vsel %vm6347_vm12, %v6021_v47, -inf  ;;  %v2974_v24 = vsel %vm2966_vm15, -1e+30, %v2918_v55  ;;  %v2921_v8 = vsub.f32 %v2881_v15, %v2912_v48  ;;  %v2880_v18 = vmul.f32 0.5, %v2865_v2  ;;  %vm6354_vm15 = vmmov %vm6351_vm0 }
 0x419   :  { %v2991_v31 = vmax.f32 %v2989_v58, %v2990_v52  ;;  %v2983_v10 = vrot.slane %v2982_v38, 1  ;;  %v3003_v4 = vmax.f32 %v3001_v61, %v3002_v44  ;;  %v2995_v3 = vrot.slane %v2994_v16, 2  ;;  %vm6360_vm12 = vmmov %vm6351_vm0 }
 0x41a   :  { %v3014_v57 = vrot.slane %v3013_v27, 4  ;;  %v3006_v25 = vsel %vm6348_vm14, %v2974_v24, -inf  ;;  %v2920_v63 = vsub.f32 %v2880_v18, %v6001_v59  ;;  %v2977_v9 = vsel %vm2969_vm3, -1e+30, %v2921_v8  ;;  %vm6359_vm3 = vmmov %vm6351_vm0 }
 0x41b   :  { %v3035_v41 = vsub.f32 %v6003_v40, %v2991_v31  ;;  %v2984_v53 = vmax.f32 %v2982_v38, %v2983_v10  ;;  %v3004_v46 = vrot.slane %v3003_v4, 1  ;;  %v2996_v28 = vmax.f32 %v2994_v16, %v2995_v3  ;;  %vm6361_vm14 = vmmov %vm6351_vm0 }
 0x41c   :  { %v3015_v7 = vmax.f32 %v3013_v27, %v3014_v57  ;;  %v3007_v19 = vrot.slane %v3006_v25, 4  ;;  %v2976_v48 = vsel %vm2968_vm7, -1e+30, %v2920_v63  ;;  %v3027_v32 = vsel %vm6349_vm10, %v2977_v9, -inf  ;;  %vm6357_vm7 = vmmov %vm6351_vm0 }
 0x41d   :  { %v3044_v56 = vmul.f32 1.442695, %v3035_v41  ;;  %v3034_v26 = vsub.f32 %v6007_v35, %v2984_v53  ;;  %v3005_v51 = vmax.f32 %v3003_v4, %v3004_v46  ;;  %v2997_v36 = vrot.slane %v2996_v28, 1  ;;  %vm6362_vm10 = vmmov %vm6351_vm0 }
 0x41e   :  { %v3016_v34 = vrot.slane %v3015_v7, 2  ;;  %v3008_v59 = vmax.f32 %v3006_v25, %v3007_v19  ;;  %v3020_v54 = vsel %vm6350_vm9, %v2976_v48, -inf  ;;  %v3028_v5 = vrot.slane %v3027_v32, 4  ;;  %vm6363_vm9 = vmmov %vm6351_vm0 }
 0x41f   :  { %4086 = vpow2.f32 %v3044_v56  ;;  %v3042_v40 = vmul.f32 1.442695, %v3034_v26  ;;  %v3037_v30 = vsub.f32 %v6011_v39, %v3005_v51  ;;  %v2998_v13 = vmax.f32 %v2996_v28, %v2997_v36 }
 0x420   :  { %v3017_v60 = vmax.f32 %v3015_v7, %v3016_v34  ;;  %v3009_v0 = vrot.slane %v3008_v59, 2  ;;  %v3021_v45 = vrot.slane %v3020_v54, 4  ;;  %v3029_v43 = vmax.f32 %v3027_v32, %v3028_v5 }
 0x421   :  { %4088 = vpow2.f32 %v3042_v40  ;;  %v3048_v42 = vmul.f32 1.442695, %v3037_v30  ;;  %v3036_v35 = vsub.f32 %v6016_v1, %v2998_v13 }
 0x422   :  { %v3018_v17 = vrot.slane %v3017_v60, 1  ;;  %v3010_v11 = vmax.f32 %v3008_v59, %v3009_v0  ;;  %v3022_v58 = vmax.f32 %v3020_v54, %v3021_v45  ;;  %v3030_v22 = vrot.slane %v3029_v43, 2 }
 0x423   :  { %4090 = vpow2.f32 %v3048_v42  ;;  %v3046_v61 = vmul.f32 1.442695, %v3036_v35 }
 0x424   :  { %v3019_v14 = vmax.f32 %v3017_v60, %v3018_v17  ;;  %v3011_v55 = vrot.slane %v3010_v11, 1  ;;  %v3023_v15 = vrot.slane %v3022_v58, 2  ;;  %v3031_v2 = vmax.f32 %v3029_v43, %v3030_v22 }
 0x425   :  { %4092 = vpow2.f32 %v3046_v61 }
 0x426   :  { %v3039_v39 = vsub.f32 %v6021_v47, %v3019_v14  ;;  %v3012_v52 = vmax.f32 %v3010_v11, %v3011_v55  ;;  %v3024_v38 = vmax.f32 %v3022_v58, %v3023_v15  ;;  %v3032_v44 = vrot.slane %v3031_v2, 1 }
 0x428   :  { %v3052_v16 = vmul.f32 1.442695, %v3039_v39  ;;  %v3038_v27 = vsub.f32 %v2974_v24, %v3012_v52  ;;  %v3025_v8 = vrot.slane %v3024_v38, 1  ;;  %v3033_v1 = vmax.f32 %v3031_v2, %v3032_v44 }
 0x42a   :  { %4094 = vpow2.f32 %v3052_v16  ;;  %v3050_v18 = vmul.f32 1.442695, %v3038_v27  ;;  %v3026_v31 = vmax.f32 %v3024_v38, %v3025_v8  ;;  %v3041_v10 = vsub.f32 %v2977_v9, %v3033_v1 }
 0x42c   :  { %v6038_v4 = vpop.eup %4086  ;;  %4096 = vpow2.f32 %v3050_v18  ;;  %v3040_v3 = vsub.f32 %v2976_v48, %v3026_v31  ;;  %v3056_v57 = vmul.f32 1.442695, %v3041_v10 }
 0x42d   :  { %v3065_v25 = vsel %vm6343_vm4, %v6038_v4, 0.0  ;;  %vm6364_vm4 = vmmov %vm6351_vm0 }
 0x42e   :  { %v6042_v47 = vpop.eup %4088  ;;  %v3066_v63 = vrot.slane %v3065_v25, 4  ;;  %v3054_v41 = vmul.f32 1.442695, %v3040_v3  ;;  %4098 = vpow2.f32 %v3056_v57 }
 0x42f   :  { %v3058_v24 = vsel %vm6351_vm0, %v6042_v47, 0.0 }
 0x430   :  { %v6046_v53 = vpop.eup %4090  ;;  %v3067_v46 = vadd.f32 %v3066_v63, %v3065_v25  ;;  %v3059_v9 = vrot.slane %v3058_v24, 4  ;;  %4100 = vpow2.f32 %v3054_v41 }
 0x431   :  { %v3079_v28 = vsel %vm6352_vm13, %v6046_v53, 0.0  ;;  %vm6365_vm13 = vmmov %vm6351_vm0 }
 0x432   :  { %v6050_v7 = vpop.eup %4092  ;;  %v3068_v19 = vrot.slane %v3067_v46, 2  ;;  %v3060_v48 = vadd.f32 %v3059_v9, %v3058_v24  ;;  %v3080_v32 = vrot.slane %v3079_v28, 4 }
 0x433   :  { %v3072_v56 = vsel %vm6353_vm8, %v6050_v7, 0.0  ;;  %vm3401_vm8 = vcmask 1041409  }
 0x434   :  { %v3069_v26 = vadd.f32 %v3068_v19, %v3067_v46  ;;  %v3061_v51 = vrot.slane %v3060_v48, 2  ;;  %v3081_v36 = vadd.f32 %v3080_v32, %v3079_v28  ;;  %v3073_v34 = vrot.slane %v3072_v56, 4 }
 0x436   :  { %v3070_v59 = vrot.slane %v3069_v26, 1  ;;  %v3062_v54 = vadd.f32 %v3061_v51, %v3060_v48  ;;  %v3082_v5 = vrot.slane %v3081_v36, 2  ;;  %v3074_v40 = vadd.f32 %v3073_v34, %v3072_v56 }
 0x437   :  { %v6054_v30 = vpop.eup %4094 }
 0x438   :  { %v3071_v13 = vadd.f32 %v3070_v59, %v3069_v26  ;;  %v3083_v60 = vadd.f32 %v3082_v5, %v3081_v36  ;;  %v3075_v0 = vrot.slane %v3074_v40, 2  ;;  %v3093_v45 = vsel %vm6354_vm15, %v6054_v30, 0.0 }
 0x439   :  { %v4097_v43 = vpop.eup %4096  ;;  %v3094_v42 = vrot.slane %v3093_v45, 4  ;;  %v3063_v35 = vrot.slane %v3062_v54, 1  ;;  %vm3403_vm15 = vcmask 1042434  }
 0x43a   :  { %v3076_v17 = vadd.f32 %v3075_v0, %v3074_v40  ;;  %v3086_v11 = vsel %vm6355_vm11, %v4097_v43, 0.0  ;;  %v3084_v58 = vrot.slane %v3083_v60, 1  ;;  %4102 = vrcp.f32 %v3071_v13 }
 0x43b   :  { %v4099_v22 = vpop.eup %4098  ;;  %v3095_v61 = vadd.f32 %v3094_v42, %v3093_v45  ;;  %v3087_v14 = vrot.slane %v3086_v11, 4  ;;  %v3064_v55 = vadd.f32 %v3063_v35, %v3062_v54  ;;  %vm3405_vm11 = vcmask 1043459  }
 0x43c   :  { %v3107_v15 = vsel %vm6356_vm6, %v4099_v22, 0.0  ;;  %v3077_v2 = vrot.slane %v3076_v17, 1  ;;  %v3085_v39 = vadd.f32 %v3084_v58, %v3083_v60  ;;  %v47_v58 = vld [vmem:[%s6162_s5] sm:$0xff]  ;;  %vm3407_vm6 = vcmask 1044484  }
 0x43d   :  { %v4101_v52 = vpop.eup %4100  ;;  %v3096_v38 = vrot.slane %v3095_v61, 2  ;;  %v3088_v44 = vadd.f32 %v3087_v14, %v3086_v11  ;;  %v3108_v16 = vrot.slane %v3107_v15, 4  ;;  %4104 = vrcp.f32 %v3064_v55  ;;  %v4130_v11 = vld [vmem:[%s6158_s1] sm:$0xff] }
 0x43e   :  { %v3100_v27 = vsel %vm6357_vm7, %v4101_v52, 0.0  ;;  %v3078_v8 = vadd.f32 %v3077_v2, %v3076_v17  ;;  %4106 = vrcp.f32 %v3085_v39  ;;  %vm3409_vm7 = vcmask 1045509  }
 0x43f   :  { %v3097_v1 = vadd.f32 %v3096_v38, %v3095_v61  ;;  %v3089_v18 = vrot.slane %v3088_v44, 2  ;;  %v3101_v31 = vrot.slane %v3100_v27, 4  ;;  %v3109_v10 = vadd.f32 %v3108_v16, %v3107_v15 }
 0x440   :  { %4108 = vrcp.f32 %v3078_v8 }
 0x441   :  { %v3090_v3 = vadd.f32 %v3089_v18, %v3088_v44  ;;  %v3102_v57 = vadd.f32 %v3101_v31, %v3100_v27  ;;  %v3110_v25 = vrot.slane %v3109_v10, 2  ;;  %v3098_v63 = vrot.slane %v3097_v1, 1 }
 0x443   :  { %v3103_v41 = vrot.slane %v3102_v57, 2  ;;  %v3111_v24 = vadd.f32 %v3110_v25, %v3109_v10  ;;  %v3091_v46 = vrot.slane %v3090_v3, 1  ;;  %v3099_v9 = vadd.f32 %v3098_v63, %v3097_v1 }
 0x445   :  { %v3104_v28 = vadd.f32 %v3103_v41, %v3102_v57  ;;  %v3112_v19 = vrot.slane %v3111_v24, 1  ;;  %v3092_v48 = vadd.f32 %v3091_v46, %v3090_v3  ;;  %4110 = vrcp.f32 %v3099_v9 }
 0x447   :  { %v3113_v32 = vadd.f32 %v3112_v19, %v3111_v24  ;;  %4112 = vrcp.f32 %v3092_v48  ;;  %v3105_v56 = vrot.slane %v3104_v28, 1  ;;  %v4103_v26 = vpop.eup %4102 }
 0x448   :  { %v3117_v54 = vmul.f32 %v4103_v26, %v6038_v4 }
 0x449   :  { %v3106_v51 = vadd.f32 %v3105_v56, %v3104_v28  ;;  %4114 = vrcp.f32 %v3113_v32 }
 0x44a   :  { %v4105_v36 = vpop.eup %4104 }
 0x44b   :  { %v4107_v34 = vpop.eup %4106  ;;  %v3115_v59 = vmul.f32 %v4105_v36, %v6042_v47  ;;  %4116 = vrcp.f32 %v3106_v51 }
 0x44c   :  { %v3121_v13 = vmul.f32 %v4107_v34, %v6046_v53  ;;  %v51_v53 = vld [vmem:[%s6162_s5 + $0x20] sm:$0xff] }
 0x44d   :  { %v4109_v5 = vpop.eup %4108  ;;  %3912 = vmatprep.mubr.msk.f32.mxu1 %vm6358_vm5, %v3115_v59  ;;  %3925 = vmatpush3.msra.mxu0 %v51_v53  ;;  %vm3411_vm5 = vcmask 1046534  }
 0x44e   :  { %3913 = vmatmul.mubr.msk.f32.vlgmr.msra.gmra.mxu1 %vm6359_vm3, %v3117_v54  ;;  %v3119_v40 = vmul.f32 %v4109_v5, %v6050_v7  ;;  %v50_v7 = vld [vmem:[%s6162_s5 + $0x18] sm:$0xff]  ;;  %3927 = vmatmul.mubr.msk.f32.vlgmr.msra.gmra.mxu0 %vm6365_vm13, %v4130_v11  ;;  %vm3413_vm3 = vcmask 1047559  }
 0x44f   :  { %3930 = vmatpush3.msra.mxu1 %v50_v7  ;;  %3940 = vmatprep.subr.mxu0 %v6342_v20 }
 0x450   :  { %3915 = vmatprep.mubr.msk.f32.mxu1 %vm6360_vm12, %v3119_v40  ;;  %3931 = vmatprep.subr.mxu1 %v6342_v20 }
 0x451   :  { %3948 = vmatprep.mubr.msk.f32.mxu0 %vm4154_vm1, %v6342_v20 }
 0x452   :  { %3916 = vmatmul.mubr.msk.f32.gmra.mxu1 %vm6361_vm14, %v3121_v13  ;;  %v4111_v60 = vpop.eup %4110 }
 0x453   :  { %v3125_v47 = vmul.f32 %v4111_v60, %v6054_v30  ;;  %v49_v30 = vld [vmem:[%s6162_s5 + $0x10] sm:$0xff] }
 0x454   :  { %v4113_v0 = vpop.eup %4112  ;;  %3932 = vmatpush3.msra.mxu1 %v49_v30 }
 0x455   :  { %v3123_v45 = vmul.f32 %v4113_v0, %v4097_v43  ;;  %v48_v43 = vld [vmem:[%s6162_s5 + $0x8] sm:$0xff]  ;;  %3933 = vmatprep.subr.mxu1 %v6342_v20 }
 0x456   :  { %v4115_v42 = vpop.eup %4114  ;;  %3934 = vmatpush3.msra.mxu1 %v48_v43 }
 0x457   :  { %3918 = vmatprep.mubr.msk.f32.mxu1 %vm6362_vm10, %v3123_v45  ;;  %v3129_v17 = vmul.f32 %v4115_v42, %v4099_v22  ;;  %3935 = vmatprep.subr.mxu1 %v6342_v20 }
 0x458   :  { %v4117_v4 = vpop.eup %4116  ;;  %3919 = vmatmul.mubr.msk.f32.gmra.mxu1 %vm6363_vm9, %v3125_v47 }
 0x459   :  { %v3127_v35 = vmul.f32 %v4117_v4, %v4101_v52  ;;  %3936 = vmatpush3.msra.mxu1 %v47_v58 }
 0x45a   :  { %3951 = vmatprep.subr.mxu1 %v6342_v20 }
 0x45b   :  { %3921 = vmatprep.mubr.msk.f32.mxu1 %vm6364_vm4, %v3127_v35 }
 0x45c   :  { %3922 = vmatmul.mubr.msk.f32.gmra.mxu1 %vm6351_vm0, %v3129_v17 }
 0x45d   :  { %3937 = vmatprep.mubr.msk.f32.mxu1 %vm4154_vm1, %v6342_v20 }
 0x50e   :  { %v3914_v22 = vpop.f32.mrf.mxu1 }
 0x50f   :  { %v3260_v61 = vmul.f32 %v3914_v22, %v4324_v62 }
 0x510   :  { %v3220_v14 = vpop.f32.mrf.mxu1 }
 0x511   :  { %v3274_v55 = vsel %vm213_vm2, %v3260_v61, 0.0  ;;  %v3259_v15 = vmul.f32 %v3220_v14, %v4353_v29 }
 0x512   :  { %v3275_v2 = vrot.slane %v3274_v55, 4  ;;  %v3917_v39 = vpop.f32.mrf.mxu1 }
 0x513   :  { %v3267_v52 = vsel %vm213_vm2, %v3259_v15, 0.0  ;;  %v3262_v38 = vmul.f32 %v3917_v39, %v6336_v49 }
 0x514   :  { %v3276_v44 = vadd.f32 %v3275_v2, %v3274_v55  ;;  %v3268_v16 = vrot.slane %v3267_v52, 4  ;;  %v3230_v27 = vpop.f32.mrf.mxu1 }
 0x515   :  { %v3288_v8 = vsel %vm213_vm2, %v3262_v38, 0.0  ;;  %v3261_v1 = vmul.f32 %v3230_v27, %v4328_v12 }
 0x516   :  { %v3277_v18 = vrot.slane %v3276_v44, 2  ;;  %v3269_v62 = vadd.f32 %v3268_v16, %v3267_v52  ;;  %v3289_v31 = vrot.slane %v3288_v8, 4 }
 0x517   :  { %v3281_v10 = vsel %vm213_vm2, %v3261_v1, 0.0 }
 0x518   :  { %v3270_v3 = vrot.slane %v3269_v62, 2  ;;  %v3290_v29 = vadd.f32 %v3289_v31, %v3288_v8  ;;  %v3282_v57 = vrot.slane %v3281_v10, 4  ;;  %v3920_v25 = vpop.f32.mrf.mxu1  ;;  %v3278_v41 = vadd.f32 %v3277_v18, %v3276_v44 }
 0x519   :  { %v3264_v63 = vmul.f32 %v3920_v25, %v6338_v23  ;;  %v54_v25 = vld [vmem:[%s6162_s5 + $0x38] sm:$0xff] }
 0x51a   :  { %v3271_v49 = vadd.f32 %v3270_v3, %v3269_v62  ;;  %v3283_v24 = vadd.f32 %v3282_v57, %v3281_v10  ;;  %v3240_v46 = vpop.f32.mrf.mxu1  ;;  %v3291_v9 = vrot.slane %v3290_v29, 2  ;;  %v3279_v36 = vrot.slane %v3278_v41, 1  ;;  %v3389_v3 = vpop.f32.mrf.mxu0  ;;  %v55_v57 = vld [vmem:[%s6162_s5 + $0x40] sm:$0xff] }
 0x51b   :  { %v3302_v28 = vsel %vm213_vm2, %v3264_v63, 0.0  ;;  %v3263_v12 = vmul.f32 %v3240_v46, %v6337_v21  ;;  %3941 = vmatpush3.msra.mxu0 %v55_v57  ;;  %v53_v63 = vld [vmem:[%s6162_s5 + $0x30] sm:$0xff] }
 0x51c   :  { %v3284_v19 = vrot.slane %v3283_v24, 2  ;;  %v3923_v48 = vpop.f32.mrf.mxu1  ;;  %v3272_v32 = vrot.slane %v3271_v49, 1  ;;  %v3303_v56 = vrot.slane %v3302_v28, 4  ;;  %v3292_v54 = vadd.f32 %v3291_v9, %v3290_v29  ;;  %v3928_v29 = vpop.f32.mrf.mxu0  ;;  %3942 = vmatprep.subr.mxu0 %v6342_v20 }
 0x51d   :  { %v3295_v26 = vsel %vm213_vm2, %v3263_v12, 0.0  ;;  %v3266_v51 = vmul.f32 %v3923_v48, %v6341_v37  ;;  %v3280_v17 = vadd.f32 %v3279_v36, %v3278_v41  ;;  %3943 = vmatpush3.msra.mxu0 %v54_v25  ;;  %v52_v41 = vld [vmem:[%s6162_s5 + $0x28] sm:$0xff] }
 0x51e   :  { %v3285_v34 = vadd.f32 %v3284_v19, %v3283_v24  ;;  %v3296_v23 = vrot.slane %v3295_v26, 4  ;;  %v3250_v59 = vpop.f32.mrf.mxu1  ;;  %v3304_v5 = vadd.f32 %v3303_v56, %v3302_v28  ;;  %v3273_v0 = vadd.f32 %v3272_v32, %v3271_v49  ;;  %3944 = vmatprep.subr.mxu0 %v6342_v20  ;;  %v58_v49 = vld [vmem:[%s6163_s6] sm:$0xff]  ;;  %v57_v32 = vld [vmem:[%s6162_s5 + $0x50] sm:$0xff]  ;;  %v56_v56 = vld [vmem:[%s6162_s5 + $0x48] sm:$0xff]  ;;  %s4170_s6 = smov [#allocation2]  }
 0x51f   :  { %v3316_v40 = vsel %vm213_vm2, %v3266_v51, 0.0  ;;  %v3265_v13 = vmul.f32 %v3250_v59, %v6339_v50  ;;  %v3293_v53 = vrot.slane %v3292_v54, 1  ;;  %3945 = vmatpush3.msra.mxu0 %v53_v63  ;;  %v3490_v24 = vrot.slane %v58_v49, %v6340_v6  ;;  %s3658_s5 = sshll.u32 %s4170_s6, 4  ;;  %s3659_s5 = int_to_ptr.vmem [resolvable:$true] %s3658_s5 }
 0x520   :  { %v3286_v21 = vrot.slane %v3285_v34, 1  ;;  %v3297_v60 = vadd.f32 %v3296_v23, %v3295_v26  ;;  %v3305_v45 = vrot.slane %v3304_v5, 2  ;;  %v3317_v47 = vrot.slane %v3316_v40, 4  ;;  %3946 = vmatprep.subr.mxu0 %v6342_v20  ;;  %s4131_s0 = scalar_lea.vmem %s3659_s5, 128  ;;  %p4136_p1 = scmp.lt.s32.totalorder %s3659_s5, %s3659_s5 }
 0x521   :  { %v3309_v42 = vsel %vm213_vm2, %v3265_v13, 0.0  ;;  %v3402_v50 = vsel %vm3401_vm8, %v3280_v17, %v3273_v0  ;;  %v3294_v55 = vadd.f32 %v3293_v53, %v3292_v54  ;;  %3947 = vmatpush3.msra.mxu0 %v52_v41  ;;  %v6366_v6 = vsub.s32 1, %v6330_v33  ;;  %p4132_p0 = scmp.ne.s32.totalorder %s3659_s5, %s4131_s0  ;;  %p4137_p2 = scmp.lt.s32.totalorder %s4131_s0, %s4131_s0 }
 0x522   :  { %v3287_v4 = vadd.f32 %v3286_v21, %v3285_v34  ;;  %v3298_v37 = vrot.slane %v3297_v60, 2  ;;  %v3310_v35 = vrot.slane %v3309_v42, 4  ;;  %v3306_v7 = vadd.f32 %v3305_v45, %v3304_v5 }
 0x523   :  { %v3318_v30 = vadd.f32 %v3317_v47, %v3316_v40  ;;  %v3497_v26 = vrot.slane %v58_v49, %v6366_v6  ;;  %v6367_v54 = vsub.s32 2, %v6330_v33  ;;  %p4138_p3 = por %p4137_p2, %p4136_p1 }
 0x524   :  { %v3299_v43 = vadd.f32 %v3298_v37, %v3297_v60  ;;  %v3311_v11 = vadd.f32 %v3310_v35, %v3309_v42  ;;  %v3404_v22 = vsel %vm3403_vm15, %v3287_v4, %v3402_v50  ;;  %v3307_v15 = vrot.slane %v3306_v7, 1 }
 0x525   :  { %v3319_v58 = vrot.slane %v3318_v30, 2  ;;  %v3406_v38 = vsel %vm3405_vm11, %v3294_v55, %v3404_v22  ;;  %v3576_v5 = vrot.slane %v58_v49, %v6367_v54  ;;  %p4139_p4 = pnand %p4138_p3, %p4132_p0 }
 0x526   :  { %v3300_v61 = vrot.slane %v3299_v43, 1  ;;  %v3312_v14 = vrot.slane %v3311_v11, 2  ;;  %v3308_v8 = vadd.f32 %v3307_v15, %v3306_v7 }
 0x527   :  { %v3320_v2 = vadd.f32 %v3319_v58, %v3318_v30 }
 0x528   :  { %v3301_v39 = vadd.f32 %v3300_v61, %v3299_v43  ;;  %v3313_v52 = vadd.f32 %v3312_v14, %v3311_v11 }
 0x529   :  { %v3321_v44 = vrot.slane %v3320_v2, 1 }
 0x52a   :  { %v3408_v16 = vsel %vm3407_vm6, %v3301_v39, %v3406_v38  ;;  %v3314_v27 = vrot.slane %v3313_v52, 1 }
 0x52b   :  { %v3322_v18 = vadd.f32 %v3321_v44, %v3320_v2  ;;  %v3410_v62 = vsel %vm3409_vm7, %v3308_v8, %v3408_v16 }
 0x52c   :  { %v3315_v1 = vadd.f32 %v3314_v27, %v3313_v52 }
 0x52e   :  { %v3412_v31 = vsel %vm3411_vm5, %v3315_v1, %v3410_v62 }
 0x52f   :  { %v3414_v10 = vsel %vm3413_vm3, %v3322_v18, %v3412_v31 }
 0x530   :  { %3938 = vmatmul.mubr.msk.f32.vlgmr.msra.gmra.mxu1 %vm213_vm2, %v3414_v10 }
 0x531   :  { %3955 = vmatprep.mubr.msk.f32.mxu1 %vm4154_vm1, %v6342_v20  ;;  %3952 = vmatpush3.msra.mxu1 %v57_v32  ;;  %vm3577_vm1 = vcmask 130048  }
 0x532   :  { %3953 = vmatprep.subr.mxu1 %v6342_v20 }
 0x533   :  { %3954 = vmatpush3.msra.mxu1 %v56_v56 }
 0x5f0   :  { %v3483_v46 = vpop.f32.mrf.mxu1 }
 0x5f1   :  { %v3484_v9 = vadd.f32 %v3483_v46, %v3389_v3 }
 0x5f2   :  { %v3939_v28 = vpop.f32.mrf.mxu1 }
 0x5f3   :  { %v3491_v12 = vadd.f32 %v3490_v24, %v3484_v9 }
 0x5f5   :  { %4118 = vtanh.f32 %v3491_v12 }
 0x602   :  { %v4119_v19 = vpop.eup %4118 }
 0x603   :  { %v3493_v48 = vsub.f32 %v3491_v12, %v4119_v19 }
 0x605   :  { %3949 = vmatmul.mubr.msk.f32.vlgmr.msra.gmra.mxu0 %vm213_vm2, %v3493_v48  ;;  %vm6368_vm2 = vmmov %vm6351_vm0 }
 0x6c5   :  { %v3567_v51 = vpop.f32.mrf.mxu0 }
 0x6c6   :  { %v3568_v36 = vadd.f32 %v3567_v51, %v3497_v26 }
 0x6c7   :  { %v3950_v34 = vpop.f32.mrf.mxu0 }
 0x6c8   :  { %4120 = vtanh.f32 %v3568_v36 }
 0x6d5   :  { %v4121_v23 = vpop.eup %4120 }
 0x6d6   :  { %v3572_v59 = vsub.f32 %v3568_v36, %v4121_v23 }
 0x6d8   :  { %3956 = vmatmul.mubr.msk.f32.vlgmr.msra.gmra.mxu1 %vm3577_vm1, %v3572_v59 }
 0x798   :  { %v3647_v40 = vpop.f32.mrf.mxu1 }
 0x799   :  { %v3648_v13 = vadd.f32 %v3647_v40, %v3576_v5 }
 0x79a   :  { %v3957_v20 = vpop.f32.mrf.mxu1 }
 0x79b   :  { %3651 = vst.msk [vmem:[#allocation2] sm:$0xff] %vm6368_vm2, %v3648_v13 }
 0x79c   :  { %4142 = shalt.err (!%p4139_p4)
}
 0x79d   :  { %3661 = dma.vmem_to_hbm [thread:$0]  %s3659_s5, 128, %s6164_s7, [#allocation3]  }
 0x79e   :  { %4151 = dma.done.wait [#allocation3], 128  }
 0x79f   :  { %4152 = vsyncadd [#allocation3], 4294967168 }
 0x7a0   :  { %3665 = vsyncpa [#allocation3], 1 }

</bundles_post_ra>
